<compile_context>
chip_gen: v7x
topology: tpu7x:2x2x1
jax: 0.10.0
libtpu: 0.0.40
codegen_flags: <defaults>
</compile_context>

<pallas_src>
import functools

import jax
import jax.numpy as jnp
from jax import lax
from jax.experimental import pallas as pl
from jax.experimental.pallas import tpu as pltpu


# -----------------------------------------------------------------------------
# Kernel
# -----------------------------------------------------------------------------
def seaice_gru_kernel(x_ref, w_ih_ref, w_hh_ref, b_i_ref, b_hn_ref,
                      fc1_w_ref, fc1_b_ref, fc2_w_ref, fc2_b_ref, out_ref,
                      *, batch_pad, seq_len):
    """Inputs (all VMEM-resident, f32):
      x_ref     : (L*Bp, D)    time-major flattened input, row = t*Bp + b
      w_ih_ref  : (D, 3*Hp)    W_ih^T, per-gate hidden dim zero-padded to Hp
      w_hh_ref  : (Hp, 3*Hp)   W_hh^T, padded on both hidden dims
      b_i_ref   : (1, 3*Hp)    b_ih with b_hh[r], b_hh[z] folded in
      b_hn_ref  : (1, Hp)      b_hh[n] (cannot be folded: gated by r)
      fc1_w_ref : (Hp, FC)     fc1 W^T, padded rows are zero
      fc1_b_ref : (1, FC)
      fc2_w_ref : (1, FC)      fc2 weight as a row (VPU mul + lane reduce)
      fc2_b_ref : (1, 1)
      out_ref   : (Bp, 1)
    """
    Bp = batch_pad
    L = seq_len
    Hp = w_hh_ref.shape[0]                       # lane-padded hidden size

    # ---- Hoisted input projection: one big MXU matmul for all timesteps ----
    # Constant per-gate biases (b_ih + b_hh for r/z) are folded in once.
    gi_all = jnp.dot(x_ref[...], w_ih_ref[...],
                     preferred_element_type=jnp.float32) + b_i_ref[...]    # (L*Bp, 3*Hp)

    # Hoist the b_hh[n] broadcast out of the unrolled time loop.
    b_hn = jnp.broadcast_to(b_hn_ref[...], (Bp, Hp))

    # ---- Serial GRU recurrence (PyTorch gate order [r, z, n]), unrolled ----
    h = jnp.zeros((Bp, Hp), jnp.float32)
    for t in range(L):                                  # static, fully unrolled
        gi = gi_all[t * Bp:(t + 1) * Bp]                # (Bp, 3*Hp), tile-aligned
        gh = jnp.dot(h, w_hh_ref[...],
                     preferred_element_type=jnp.float32)            # (Bp, 3*Hp)
        # Lane-aligned gate slabs: each gate is a full 128-lane block.
        r = jax.nn.sigmoid(gi[:, 0 * Hp:1 * Hp] + gh[:, 0 * Hp:1 * Hp])
        z = jax.nn.sigmoid(gi[:, 1 * Hp:2 * Hp] + gh[:, 1 * Hp:2 * Hp])
        n = jnp.tanh(gi[:, 2 * Hp:3 * Hp] + r * (gh[:, 2 * Hp:3 * Hp] + b_hn))
        h = (1.0 - z) * n + z * h

    # ---- FC head on the last hidden state ----
    y = jnp.dot(h, fc1_w_ref[...],
                preferred_element_type=jnp.float32) + fc1_b_ref[...]       # (Bp, FC)
    y = jnp.maximum(y, 0.0)
    # FC -> 1 projection as VPU multiply + cross-lane (XLU) reduction.
    o = jnp.sum(y * fc2_w_ref[...], axis=-1, keepdims=True) + fc2_b_ref[...]
    out_ref[...] = o.astype(out_ref.dtype)


# -----------------------------------------------------------------------------
# Parameter preparation (padding / transposition done once, outside the kernel)
# -----------------------------------------------------------------------------
def prepare_params(raw_params, hidden_pad):
    """Pad per-gate hidden dim to `hidden_pad` lanes, pre-transpose weights and
    fold the foldable parts of b_hh into the input-side bias."""
    w_ih, w_hh, b_ih, b_hh, fc1_w, fc1_b, fc2_w, fc2_b = raw_params
    hidden = w_hh.shape[1]
    input_size = w_ih.shape[1]
    fc_mid = fc1_w.shape[0]
    ph = hidden_pad - hidden

    w_ih_p = jnp.pad(w_ih.reshape(3, hidden, input_size),
                     ((0, 0), (0, ph), (0, 0))).reshape(3 * hidden_pad, input_size)
    w_hh_p = jnp.pad(w_hh.reshape(3, hidden, hidden),
                     ((0, 0), (0, ph), (0, ph))).reshape(3 * hidden_pad, hidden_pad)

    # Fold b_hh[r] and b_hh[z] into b_ih (pure additive constants); keep b_hh[n].
    b_ih3 = b_ih.reshape(3, hidden)
    b_hh3 = b_hh.reshape(3, hidden)
    b_comb = b_ih3 + jnp.concatenate(
        [b_hh3[0:1], b_hh3[1:2], jnp.zeros((1, hidden), b_hh.dtype)], axis=0)
    b_i_p = jnp.pad(b_comb, ((0, 0), (0, ph))).reshape(1, 3 * hidden_pad)
    b_hn_p = jnp.pad(b_hh3[2:3], ((0, 0), (0, ph)))          # (1, hidden_pad)

    fc1_w_p = jnp.pad(fc1_w, ((0, 0), (0, ph)))              # (fc_mid, hidden_pad)

    return (w_ih_p.T,                    # (D, 3*Hp)
            w_hh_p.T,                    # (Hp, 3*Hp)
            b_i_p,                       # (1, 3*Hp)
            b_hn_p,                      # (1, Hp)
            fc1_w_p.T,                   # (Hp, fc_mid)
            fc1_b.reshape(1, fc_mid),
            fc2_w.reshape(1, fc_mid),
            fc2_b.reshape(1, 1))


# -----------------------------------------------------------------------------
# Wrapper
# -----------------------------------------------------------------------------
def seaice_gru_forward(x, raw_params):
    """x: (B, L, C, H, W) float32 -> (B, 1) float32."""
    B, L, C, H, W = x.shape
    D = C * H * W
    hidden = raw_params[1].shape[1]
    hidden_pad = ((hidden + 127) // 128) * 128           # lane-align the gates
    batch_pad = ((B + 7) // 8) * 8                       # sublane-align the batch

    # Time-major flatten: row t*Bp + b == x[b, t] flattened CHW (matches torch .view).
    x_tm = jnp.transpose(x.reshape(B, L, D), (1, 0, 2))            # (L, B, D)
    x_tm = jnp.pad(x_tm, ((0, 0), (0, batch_pad - B), (0, 0)))     # (L, Bp, D)
    x_tm = x_tm.reshape(L * batch_pad, D)

    params = prepare_params(raw_params, hidden_pad)

    kernel = functools.partial(seaice_gru_kernel, batch_pad=batch_pad, seq_len=L)
    vmem_spec = pl.BlockSpec(memory_space=pltpu.MemorySpace.VMEM)

    out = pl.pallas_call(
        kernel,
        out_shape=jax.ShapeDtypeStruct((batch_pad, 1), jnp.float32),
        in_specs=[vmem_spec] * 9,
        out_specs=vmem_spec,
        compiler_params=pltpu.CompilerParams(
            vmem_limit_bytes=32 * 1024 * 1024),
    )(x_tm, *params)
    return out[:B]


# -----------------------------------------------------------------------------
# Deterministic synthetic parameters (PyTorch layouts, gate order [r, z, n])
# -----------------------------------------------------------------------------
def init_params(key, input_size, hidden, fc_mid=1024):
    ks = jax.random.split(key, 8)
    s = 1.0 / jnp.sqrt(hidden)
    w_ih = jax.random.uniform(ks[0], (3 * hidden, input_size), jnp.float32, -s, s)
    w_hh = jax.random.uniform(ks[1], (3 * hidden, hidden), jnp.float32, -s, s)
    b_ih = jax.random.uniform(ks[2], (3 * hidden,), jnp.float32, -s, s)
    b_hh = jax.random.uniform(ks[3], (3 * hidden,), jnp.float32, -s, s)
    fc1_w = jax.random.uniform(ks[4], (fc_mid, hidden), jnp.float32, -s, s)
    fc1_b = jax.random.uniform(ks[5], (fc_mid,), jnp.float32, -s, s)
    s2 = 1.0 / jnp.sqrt(fc_mid)
    fc2_w = jax.random.uniform(ks[6], (1, fc_mid), jnp.float32, -s2, s2)
    fc2_b = jax.random.uniform(ks[7], (1,), jnp.float32, -s2, s2)
    return (w_ih, w_hh, b_ih, b_hh, fc1_w, fc1_b, fc2_w, fc2_b)


# -----------------------------------------------------------------------------
# Pure-JAX reference (nn.GRU(batch_first=True) + FC head) on UNPADDED params
# -----------------------------------------------------------------------------
def reference_forward(x, raw_params):
    w_ih, w_hh, b_ih, b_hh, fc1_w, fc1_b, fc2_w, fc2_b = raw_params
    B, L = x.shape[0], x.shape[1]
    hidden = w_hh.shape[1]
    xf = x.reshape(B, L, -1)

    def step(h, x_t):
        gi = x_t @ w_ih.T + b_ih
        gh = h @ w_hh.T + b_hh
        i_r, i_z, i_n = jnp.split(gi, 3, axis=-1)
        h_r, h_z, h_n = jnp.split(gh, 3, axis=-1)
        r = jax.nn.sigmoid(i_r + h_r)
        z = jax.nn.sigmoid(i_z + h_z)
        n = jnp.tanh(i_n + r * h_n)
        return (1.0 - z) * n + z * h, None

    h0 = jnp.zeros((B, hidden), jnp.float32)
    h_last, _ = lax.scan(step, h0, jnp.swapaxes(xf, 0, 1))
    y = jnp.maximum(h_last @ fc1_w.T + fc1_b, 0.0)
    return y @ fc2_w.T + fc2_b


if __name__ == "__main__":
    # Small shapes consistent with the module's forward:
    # B=2, L=8, C=4, H=16, W=16 -> input_size = 1024, hidden_size = 32.
    B, L, C, H, W = 2, 8, 4, 16, 16
    hidden = 32

    key = jax.random.PRNGKey(0)
    k_x, k_p = jax.random.split(key)
    x = jax.random.normal(k_x, (B, L, C, H, W), jnp.float32)
    params = init_params(k_p, C * H * W, hidden)

    out = seaice_gru_forward(x, params)
    out = jax.block_until_ready(out)

    ref = reference_forward(x, params)
    assert out.shape == (B, 1)
    assert jnp.allclose(out, ref, atol=1e-4, rtol=1e-4), (out, ref)

    print("KERNEL_OK")
</pallas_src>

<mosaic_0001>
module attributes {stable_mosaic.version = 11 : i64} {
  func.func @seaice_gru_kernel(%arg0: memref<64x1024xf32, #tpu.memory_space<vmem>>, %arg1: memref<1024x384xf32, #tpu.memory_space<vmem>>, %arg2: memref<128x384xf32, #tpu.memory_space<vmem>>, %arg3: memref<1x384xf32, #tpu.memory_space<vmem>>, %arg4: memref<1x128xf32, #tpu.memory_space<vmem>>, %arg5: memref<128x1024xf32, #tpu.memory_space<vmem>>, %arg6: memref<1x1024xf32, #tpu.memory_space<vmem>>, %arg7: memref<1x1024xf32, #tpu.memory_space<vmem>>, %arg8: memref<1x1xf32, #tpu.memory_space<vmem>>, %arg9: memref<8x1xf32, #tpu.memory_space<vmem>>) attributes {dimension_semantics = [], scalar_prefetch = 0 : i64, scratch_operands = 0 : i64, tpu.core_type = #tpu.core_type<tc>} {
    %c0 = arith.constant 0 : index
    %c0_0 = arith.constant 0 : index
    %0 = vector.load %arg0[%c0, %c0_0] : memref<64x1024xf32, #tpu.memory_space<vmem>>, vector<64x1024xf32>
    %c0_1 = arith.constant 0 : index
    %c0_2 = arith.constant 0 : index
    %1 = vector.load %arg1[%c0_1, %c0_2] : memref<1024x384xf32, #tpu.memory_space<vmem>>, vector<1024x384xf32>
    %cst = arith.constant dense<0.000000e+00> : vector<64x384xf32>
    %2 = tpu.matmul %0, %1, %cst {dimension_numbers = #tpu.dot_dimension_numbers<[1], [0], [0], [1], [0, 0, 1, 1], [], []>} : vector<64x1024xf32>, vector<1024x384xf32>, vector<64x384xf32> -> vector<64x384xf32>
    %c0_3 = arith.constant 0 : index
    %c0_4 = arith.constant 0 : index
    %3 = vector.load %arg3[%c0_3, %c0_4] : memref<1x384xf32, #tpu.memory_space<vmem>>, vector<1x384xf32>
    %4 = vector.broadcast %3 : vector<1x384xf32> to vector<64x384xf32>
    %5 = arith.addf %2, %4 : vector<64x384xf32>
    %c0_5 = arith.constant 0 : index
    %c0_6 = arith.constant 0 : index
    %6 = vector.load %arg4[%c0_5, %c0_6] : memref<1x128xf32, #tpu.memory_space<vmem>>, vector<1x128xf32>
    %7 = vector.shape_cast %6 : vector<1x128xf32> to vector<1x128xf32>
    %8 = vector.broadcast %7 : vector<1x128xf32> to vector<8x128xf32>
    %cst_7 = arith.constant 0.000000e+00 : f32
    %9 = vector.broadcast %cst_7 : f32 to vector<8x128xf32>
    %10 = vector.extract_strided_slice %5 {offsets = [0, 0], sizes = [8, 384], strides = [1, 1]} : vector<64x384xf32> to vector<8x384xf32>
    %c0_8 = arith.constant 0 : index
    %c0_9 = arith.constant 0 : index
    %11 = vector.load %arg2[%c0_8, %c0_9] : memref<128x384xf32, #tpu.memory_space<vmem>>, vector<128x384xf32>
    %cst_10 = arith.constant dense<0.000000e+00> : vector<8x384xf32>
    %12 = tpu.matmul %9, %11, %cst_10 {dimension_numbers = #tpu.dot_dimension_numbers<[1], [0], [0], [1], [0, 0, 1, 1], [], []>} : vector<8x128xf32>, vector<128x384xf32>, vector<8x384xf32> -> vector<8x384xf32>
    %13 = vector.extract_strided_slice %10 {offsets = [0, 0], sizes = [8, 128], strides = [1, 1]} : vector<8x384xf32> to vector<8x128xf32>
    %14 = vector.extract_strided_slice %12 {offsets = [0, 0], sizes = [8, 128], strides = [1, 1]} : vector<8x384xf32> to vector<8x128xf32>
    %15 = arith.addf %13, %14 : vector<8x128xf32>
    %16 = arith.negf %15 : vector<8x128xf32>
    %17 = math.exp %16 : vector<8x128xf32>
    %cst_11 = arith.constant 1.000000e+00 : f32
    %18 = vector.broadcast %cst_11 : f32 to vector<8x128xf32>
    %19 = arith.addf %18, %17 : vector<8x128xf32>
    %20 = arith.divf %18, %19 : vector<8x128xf32>
    %21 = vector.extract_strided_slice %10 {offsets = [0, 128], sizes = [8, 128], strides = [1, 1]} : vector<8x384xf32> to vector<8x128xf32>
    %22 = vector.extract_strided_slice %12 {offsets = [0, 128], sizes = [8, 128], strides = [1, 1]} : vector<8x384xf32> to vector<8x128xf32>
    %23 = arith.addf %21, %22 : vector<8x128xf32>
    %24 = arith.negf %23 : vector<8x128xf32>
    %25 = math.exp %24 : vector<8x128xf32>
    %cst_12 = arith.constant 1.000000e+00 : f32
    %26 = vector.broadcast %cst_12 : f32 to vector<8x128xf32>
    %27 = arith.addf %26, %25 : vector<8x128xf32>
    %28 = arith.divf %26, %27 : vector<8x128xf32>
    %29 = vector.extract_strided_slice %10 {offsets = [0, 256], sizes = [8, 128], strides = [1, 1]} : vector<8x384xf32> to vector<8x128xf32>
    %30 = vector.extract_strided_slice %12 {offsets = [0, 256], sizes = [8, 128], strides = [1, 1]} : vector<8x384xf32> to vector<8x128xf32>
    %31 = arith.addf %30, %8 : vector<8x128xf32>
    %32 = arith.mulf %20, %31 : vector<8x128xf32>
    %33 = arith.addf %29, %32 : vector<8x128xf32>
    %34 = math.tanh %33 : vector<8x128xf32>
    %cst_13 = arith.constant 1.000000e+00 : f32
    %35 = vector.broadcast %cst_13 : f32 to vector<8x128xf32>
    %36 = arith.subf %35, %28 : vector<8x128xf32>
    %37 = arith.mulf %36, %34 : vector<8x128xf32>
    %38 = arith.mulf %28, %9 : vector<8x128xf32>
    %39 = arith.addf %37, %38 : vector<8x128xf32>
    %40 = vector.extract_strided_slice %5 {offsets = [8, 0], sizes = [8, 384], strides = [1, 1]} : vector<64x384xf32> to vector<8x384xf32>
    %c0_14 = arith.constant 0 : index
    %c0_15 = arith.constant 0 : index
    %41 = vector.load %arg2[%c0_14, %c0_15] : memref<128x384xf32, #tpu.memory_space<vmem>>, vector<128x384xf32>
    %cst_16 = arith.constant dense<0.000000e+00> : vector<8x384xf32>
    %42 = tpu.matmul %39, %41, %cst_16 {dimension_numbers = #tpu.dot_dimension_numbers<[1], [0], [0], [1], [0, 0, 1, 1], [], []>} : vector<8x128xf32>, vector<128x384xf32>, vector<8x384xf32> -> vector<8x384xf32>
    %43 = vector.extract_strided_slice %40 {offsets = [0, 0], sizes = [8, 128], strides = [1, 1]} : vector<8x384xf32> to vector<8x128xf32>
    %44 = vector.extract_strided_slice %42 {offsets = [0, 0], sizes = [8, 128], strides = [1, 1]} : vector<8x384xf32> to vector<8x128xf32>
    %45 = arith.addf %43, %44 : vector<8x128xf32>
    %46 = arith.negf %45 : vector<8x128xf32>
    %47 = math.exp %46 : vector<8x128xf32>
    %cst_17 = arith.constant 1.000000e+00 : f32
    %48 = vector.broadcast %cst_17 : f32 to vector<8x128xf32>
    %49 = arith.addf %48, %47 : vector<8x128xf32>
    %50 = arith.divf %48, %49 : vector<8x128xf32>
    %51 = vector.extract_strided_slice %40 {offsets = [0, 128], sizes = [8, 128], strides = [1, 1]} : vector<8x384xf32> to vector<8x128xf32>
    %52 = vector.extract_strided_slice %42 {offsets = [0, 128], sizes = [8, 128], strides = [1, 1]} : vector<8x384xf32> to vector<8x128xf32>
    %53 = arith.addf %51, %52 : vector<8x128xf32>
    %54 = arith.negf %53 : vector<8x128xf32>
    %55 = math.exp %54 : vector<8x128xf32>
    %cst_18 = arith.constant 1.000000e+00 : f32
    %56 = vector.broadcast %cst_18 : f32 to vector<8x128xf32>
    %57 = arith.addf %56, %55 : vector<8x128xf32>
    %58 = arith.divf %56, %57 : vector<8x128xf32>
    %59 = vector.extract_strided_slice %40 {offsets = [0, 256], sizes = [8, 128], strides = [1, 1]} : vector<8x384xf32> to vector<8x128xf32>
    %60 = vector.extract_strided_slice %42 {offsets = [0, 256], sizes = [8, 128], strides = [1, 1]} : vector<8x384xf32> to vector<8x128xf32>
    %61 = arith.addf %60, %8 : vector<8x128xf32>
    %62 = arith.mulf %50, %61 : vector<8x128xf32>
    %63 = arith.addf %59, %62 : vector<8x128xf32>
    %64 = math.tanh %63 : vector<8x128xf32>
    %cst_19 = arith.constant 1.000000e+00 : f32
    %65 = vector.broadcast %cst_19 : f32 to vector<8x128xf32>
    %66 = arith.subf %65, %58 : vector<8x128xf32>
    %67 = arith.mulf %66, %64 : vector<8x128xf32>
    %68 = arith.mulf %58, %39 : vector<8x128xf32>
    %69 = arith.addf %67, %68 : vector<8x128xf32>
    %70 = vector.extract_strided_slice %5 {offsets = [16, 0], sizes = [8, 384], strides = [1, 1]} : vector<64x384xf32> to vector<8x384xf32>
    %c0_20 = arith.constant 0 : index
    %c0_21 = arith.constant 0 : index
    %71 = vector.load %arg2[%c0_20, %c0_21] : memref<128x384xf32, #tpu.memory_space<vmem>>, vector<128x384xf32>
    %cst_22 = arith.constant dense<0.000000e+00> : vector<8x384xf32>
    %72 = tpu.matmul %69, %71, %cst_22 {dimension_numbers = #tpu.dot_dimension_numbers<[1], [0], [0], [1], [0, 0, 1, 1], [], []>} : vector<8x128xf32>, vector<128x384xf32>, vector<8x384xf32> -> vector<8x384xf32>
    %73 = vector.extract_strided_slice %70 {offsets = [0, 0], sizes = [8, 128], strides = [1, 1]} : vector<8x384xf32> to vector<8x128xf32>
    %74 = vector.extract_strided_slice %72 {offsets = [0, 0], sizes = [8, 128], strides = [1, 1]} : vector<8x384xf32> to vector<8x128xf32>
    %75 = arith.addf %73, %74 : vector<8x128xf32>
    %76 = arith.negf %75 : vector<8x128xf32>
    %77 = math.exp %76 : vector<8x128xf32>
    %cst_23 = arith.constant 1.000000e+00 : f32
    %78 = vector.broadcast %cst_23 : f32 to vector<8x128xf32>
    %79 = arith.addf %78, %77 : vector<8x128xf32>
    %80 = arith.divf %78, %79 : vector<8x128xf32>
    %81 = vector.extract_strided_slice %70 {offsets = [0, 128], sizes = [8, 128], strides = [1, 1]} : vector<8x384xf32> to vector<8x128xf32>
    %82 = vector.extract_strided_slice %72 {offsets = [0, 128], sizes = [8, 128], strides = [1, 1]} : vector<8x384xf32> to vector<8x128xf32>
    %83 = arith.addf %81, %82 : vector<8x128xf32>
    %84 = arith.negf %83 : vector<8x128xf32>
    %85 = math.exp %84 : vector<8x128xf32>
    %cst_24 = arith.constant 1.000000e+00 : f32
    %86 = vector.broadcast %cst_24 : f32 to vector<8x128xf32>
    %87 = arith.addf %86, %85 : vector<8x128xf32>
    %88 = arith.divf %86, %87 : vector<8x128xf32>
    %89 = vector.extract_strided_slice %70 {offsets = [0, 256], sizes = [8, 128], strides = [1, 1]} : vector<8x384xf32> to vector<8x128xf32>
    %90 = vector.extract_strided_slice %72 {offsets = [0, 256], sizes = [8, 128], strides = [1, 1]} : vector<8x384xf32> to vector<8x128xf32>
    %91 = arith.addf %90, %8 : vector<8x128xf32>
    %92 = arith.mulf %80, %91 : vector<8x128xf32>
    %93 = arith.addf %89, %92 : vector<8x128xf32>
    %94 = math.tanh %93 : vector<8x128xf32>
    %cst_25 = arith.constant 1.000000e+00 : f32
    %95 = vector.broadcast %cst_25 : f32 to vector<8x128xf32>
    %96 = arith.subf %95, %88 : vector<8x128xf32>
    %97 = arith.mulf %96, %94 : vector<8x128xf32>
    %98 = arith.mulf %88, %69 : vector<8x128xf32>
    %99 = arith.addf %97, %98 : vector<8x128xf32>
    %100 = vector.extract_strided_slice %5 {offsets = [24, 0], sizes = [8, 384], strides = [1, 1]} : vector<64x384xf32> to vector<8x384xf32>
    %c0_26 = arith.constant 0 : index
    %c0_27 = arith.constant 0 : index
    %101 = vector.load %arg2[%c0_26, %c0_27] : memref<128x384xf32, #tpu.memory_space<vmem>>, vector<128x384xf32>
    %cst_28 = arith.constant dense<0.000000e+00> : vector<8x384xf32>
    %102 = tpu.matmul %99, %101, %cst_28 {dimension_numbers = #tpu.dot_dimension_numbers<[1], [0], [0], [1], [0, 0, 1, 1], [], []>} : vector<8x128xf32>, vector<128x384xf32>, vector<8x384xf32> -> vector<8x384xf32>
    %103 = vector.extract_strided_slice %100 {offsets = [0, 0], sizes = [8, 128], strides = [1, 1]} : vector<8x384xf32> to vector<8x128xf32>
    %104 = vector.extract_strided_slice %102 {offsets = [0, 0], sizes = [8, 128], strides = [1, 1]} : vector<8x384xf32> to vector<8x128xf32>
    %105 = arith.addf %103, %104 : vector<8x128xf32>
    %106 = arith.negf %105 : vector<8x128xf32>
    %107 = math.exp %106 : vector<8x128xf32>
    %cst_29 = arith.constant 1.000000e+00 : f32
    %108 = vector.broadcast %cst_29 : f32 to vector<8x128xf32>
    %109 = arith.addf %108, %107 : vector<8x128xf32>
    %110 = arith.divf %108, %109 : vector<8x128xf32>
    %111 = vector.extract_strided_slice %100 {offsets = [0, 128], sizes = [8, 128], strides = [1, 1]} : vector<8x384xf32> to vector<8x128xf32>
    %112 = vector.extract_strided_slice %102 {offsets = [0, 128], sizes = [8, 128], strides = [1, 1]} : vector<8x384xf32> to vector<8x128xf32>
    %113 = arith.addf %111, %112 : vector<8x128xf32>
    %114 = arith.negf %113 : vector<8x128xf32>
    %115 = math.exp %114 : vector<8x128xf32>
    %cst_30 = arith.constant 1.000000e+00 : f32
    %116 = vector.broadcast %cst_30 : f32 to vector<8x128xf32>
    %117 = arith.addf %116, %115 : vector<8x128xf32>
    %118 = arith.divf %116, %117 : vector<8x128xf32>
    %119 = vector.extract_strided_slice %100 {offsets = [0, 256], sizes = [8, 128], strides = [1, 1]} : vector<8x384xf32> to vector<8x128xf32>
    %120 = vector.extract_strided_slice %102 {offsets = [0, 256], sizes = [8, 128], strides = [1, 1]} : vector<8x384xf32> to vector<8x128xf32>
    %121 = arith.addf %120, %8 : vector<8x128xf32>
    %122 = arith.mulf %110, %121 : vector<8x128xf32>
    %123 = arith.addf %119, %122 : vector<8x128xf32>
    %124 = math.tanh %123 : vector<8x128xf32>
    %cst_31 = arith.constant 1.000000e+00 : f32
    %125 = vector.broadcast %cst_31 : f32 to vector<8x128xf32>
    %126 = arith.subf %125, %118 : vector<8x128xf32>
    %127 = arith.mulf %126, %124 : vector<8x128xf32>
    %128 = arith.mulf %118, %99 : vector<8x128xf32>
    %129 = arith.addf %127, %128 : vector<8x128xf32>
    %130 = vector.extract_strided_slice %5 {offsets = [32, 0], sizes = [8, 384], strides = [1, 1]} : vector<64x384xf32> to vector<8x384xf32>
    %c0_32 = arith.constant 0 : index
    %c0_33 = arith.constant 0 : index
    %131 = vector.load %arg2[%c0_32, %c0_33] : memref<128x384xf32, #tpu.memory_space<vmem>>, vector<128x384xf32>
    %cst_34 = arith.constant dense<0.000000e+00> : vector<8x384xf32>
    %132 = tpu.matmul %129, %131, %cst_34 {dimension_numbers = #tpu.dot_dimension_numbers<[1], [0], [0], [1], [0, 0, 1, 1], [], []>} : vector<8x128xf32>, vector<128x384xf32>, vector<8x384xf32> -> vector<8x384xf32>
    %133 = vector.extract_strided_slice %130 {offsets = [0, 0], sizes = [8, 128], strides = [1, 1]} : vector<8x384xf32> to vector<8x128xf32>
    %134 = vector.extract_strided_slice %132 {offsets = [0, 0], sizes = [8, 128], strides = [1, 1]} : vector<8x384xf32> to vector<8x128xf32>
    %135 = arith.addf %133, %134 : vector<8x128xf32>
    %136 = arith.negf %135 : vector<8x128xf32>
    %137 = math.exp %136 : vector<8x128xf32>
    %cst_35 = arith.constant 1.000000e+00 : f32
    %138 = vector.broadcast %cst_35 : f32 to vector<8x128xf32>
    %139 = arith.addf %138, %137 : vector<8x128xf32>
    %140 = arith.divf %138, %139 : vector<8x128xf32>
    %141 = vector.extract_strided_slice %130 {offsets = [0, 128], sizes = [8, 128], strides = [1, 1]} : vector<8x384xf32> to vector<8x128xf32>
    %142 = vector.extract_strided_slice %132 {offsets = [0, 128], sizes = [8, 128], strides = [1, 1]} : vector<8x384xf32> to vector<8x128xf32>
    %143 = arith.addf %141, %142 : vector<8x128xf32>
    %144 = arith.negf %143 : vector<8x128xf32>
    %145 = math.exp %144 : vector<8x128xf32>
    %cst_36 = arith.constant 1.000000e+00 : f32
    %146 = vector.broadcast %cst_36 : f32 to vector<8x128xf32>
    %147 = arith.addf %146, %145 : vector<8x128xf32>
    %148 = arith.divf %146, %147 : vector<8x128xf32>
    %149 = vector.extract_strided_slice %130 {offsets = [0, 256], sizes = [8, 128], strides = [1, 1]} : vector<8x384xf32> to vector<8x128xf32>
    %150 = vector.extract_strided_slice %132 {offsets = [0, 256], sizes = [8, 128], strides = [1, 1]} : vector<8x384xf32> to vector<8x128xf32>
    %151 = arith.addf %150, %8 : vector<8x128xf32>
    %152 = arith.mulf %140, %151 : vector<8x128xf32>
    %153 = arith.addf %149, %152 : vector<8x128xf32>
    %154 = math.tanh %153 : vector<8x128xf32>
    %cst_37 = arith.constant 1.000000e+00 : f32
    %155 = vector.broadcast %cst_37 : f32 to vector<8x128xf32>
    %156 = arith.subf %155, %148 : vector<8x128xf32>
    %157 = arith.mulf %156, %154 : vector<8x128xf32>
    %158 = arith.mulf %148, %129 : vector<8x128xf32>
    %159 = arith.addf %157, %158 : vector<8x128xf32>
    %160 = vector.extract_strided_slice %5 {offsets = [40, 0], sizes = [8, 384], strides = [1, 1]} : vector<64x384xf32> to vector<8x384xf32>
    %c0_38 = arith.constant 0 : index
    %c0_39 = arith.constant 0 : index
    %161 = vector.load %arg2[%c0_38, %c0_39] : memref<128x384xf32, #tpu.memory_space<vmem>>, vector<128x384xf32>
    %cst_40 = arith.constant dense<0.000000e+00> : vector<8x384xf32>
    %162 = tpu.matmul %159, %161, %cst_40 {dimension_numbers = #tpu.dot_dimension_numbers<[1], [0], [0], [1], [0, 0, 1, 1], [], []>} : vector<8x128xf32>, vector<128x384xf32>, vector<8x384xf32> -> vector<8x384xf32>
    %163 = vector.extract_strided_slice %160 {offsets = [0, 0], sizes = [8, 128], strides = [1, 1]} : vector<8x384xf32> to vector<8x128xf32>
    %164 = vector.extract_strided_slice %162 {offsets = [0, 0], sizes = [8, 128], strides = [1, 1]} : vector<8x384xf32> to vector<8x128xf32>
    %165 = arith.addf %163, %164 : vector<8x128xf32>
    %166 = arith.negf %165 : vector<8x128xf32>
    %167 = math.exp %166 : vector<8x128xf32>
    %cst_41 = arith.constant 1.000000e+00 : f32
    %168 = vector.broadcast %cst_41 : f32 to vector<8x128xf32>
    %169 = arith.addf %168, %167 : vector<8x128xf32>
    %170 = arith.divf %168, %169 : vector<8x128xf32>
    %171 = vector.extract_strided_slice %160 {offsets = [0, 128], sizes = [8, 128], strides = [1, 1]} : vector<8x384xf32> to vector<8x128xf32>
    %172 = vector.extract_strided_slice %162 {offsets = [0, 128], sizes = [8, 128], strides = [1, 1]} : vector<8x384xf32> to vector<8x128xf32>
    %173 = arith.addf %171, %172 : vector<8x128xf32>
    %174 = arith.negf %173 : vector<8x128xf32>
    %175 = math.exp %174 : vector<8x128xf32>
    %cst_42 = arith.constant 1.000000e+00 : f32
    %176 = vector.broadcast %cst_42 : f32 to vector<8x128xf32>
    %177 = arith.addf %176, %175 : vector<8x128xf32>
    %178 = arith.divf %176, %177 : vector<8x128xf32>
    %179 = vector.extract_strided_slice %160 {offsets = [0, 256], sizes = [8, 128], strides = [1, 1]} : vector<8x384xf32> to vector<8x128xf32>
    %180 = vector.extract_strided_slice %162 {offsets = [0, 256], sizes = [8, 128], strides = [1, 1]} : vector<8x384xf32> to vector<8x128xf32>
    %181 = arith.addf %180, %8 : vector<8x128xf32>
    %182 = arith.mulf %170, %181 : vector<8x128xf32>
    %183 = arith.addf %179, %182 : vector<8x128xf32>
    %184 = math.tanh %183 : vector<8x128xf32>
    %cst_43 = arith.constant 1.000000e+00 : f32
    %185 = vector.broadcast %cst_43 : f32 to vector<8x128xf32>
    %186 = arith.subf %185, %178 : vector<8x128xf32>
    %187 = arith.mulf %186, %184 : vector<8x128xf32>
    %188 = arith.mulf %178, %159 : vector<8x128xf32>
    %189 = arith.addf %187, %188 : vector<8x128xf32>
    %190 = vector.extract_strided_slice %5 {offsets = [48, 0], sizes = [8, 384], strides = [1, 1]} : vector<64x384xf32> to vector<8x384xf32>
    %c0_44 = arith.constant 0 : index
    %c0_45 = arith.constant 0 : index
    %191 = vector.load %arg2[%c0_44, %c0_45] : memref<128x384xf32, #tpu.memory_space<vmem>>, vector<128x384xf32>
    %cst_46 = arith.constant dense<0.000000e+00> : vector<8x384xf32>
    %192 = tpu.matmul %189, %191, %cst_46 {dimension_numbers = #tpu.dot_dimension_numbers<[1], [0], [0], [1], [0, 0, 1, 1], [], []>} : vector<8x128xf32>, vector<128x384xf32>, vector<8x384xf32> -> vector<8x384xf32>
    %193 = vector.extract_strided_slice %190 {offsets = [0, 0], sizes = [8, 128], strides = [1, 1]} : vector<8x384xf32> to vector<8x128xf32>
    %194 = vector.extract_strided_slice %192 {offsets = [0, 0], sizes = [8, 128], strides = [1, 1]} : vector<8x384xf32> to vector<8x128xf32>
    %195 = arith.addf %193, %194 : vector<8x128xf32>
    %196 = arith.negf %195 : vector<8x128xf32>
    %197 = math.exp %196 : vector<8x128xf32>
    %cst_47 = arith.constant 1.000000e+00 : f32
    %198 = vector.broadcast %cst_47 : f32 to vector<8x128xf32>
    %199 = arith.addf %198, %197 : vector<8x128xf32>
    %200 = arith.divf %198, %199 : vector<8x128xf32>
    %201 = vector.extract_strided_slice %190 {offsets = [0, 128], sizes = [8, 128], strides = [1, 1]} : vector<8x384xf32> to vector<8x128xf32>
    %202 = vector.extract_strided_slice %192 {offsets = [0, 128], sizes = [8, 128], strides = [1, 1]} : vector<8x384xf32> to vector<8x128xf32>
    %203 = arith.addf %201, %202 : vector<8x128xf32>
    %204 = arith.negf %203 : vector<8x128xf32>
    %205 = math.exp %204 : vector<8x128xf32>
    %cst_48 = arith.constant 1.000000e+00 : f32
    %206 = vector.broadcast %cst_48 : f32 to vector<8x128xf32>
    %207 = arith.addf %206, %205 : vector<8x128xf32>
    %208 = arith.divf %206, %207 : vector<8x128xf32>
    %209 = vector.extract_strided_slice %190 {offsets = [0, 256], sizes = [8, 128], strides = [1, 1]} : vector<8x384xf32> to vector<8x128xf32>
    %210 = vector.extract_strided_slice %192 {offsets = [0, 256], sizes = [8, 128], strides = [1, 1]} : vector<8x384xf32> to vector<8x128xf32>
    %211 = arith.addf %210, %8 : vector<8x128xf32>
    %212 = arith.mulf %200, %211 : vector<8x128xf32>
    %213 = arith.addf %209, %212 : vector<8x128xf32>
    %214 = math.tanh %213 : vector<8x128xf32>
    %cst_49 = arith.constant 1.000000e+00 : f32
    %215 = vector.broadcast %cst_49 : f32 to vector<8x128xf32>
    %216 = arith.subf %215, %208 : vector<8x128xf32>
    %217 = arith.mulf %216, %214 : vector<8x128xf32>
    %218 = arith.mulf %208, %189 : vector<8x128xf32>
    %219 = arith.addf %217, %218 : vector<8x128xf32>
    %220 = vector.extract_strided_slice %5 {offsets = [56, 0], sizes = [8, 384], strides = [1, 1]} : vector<64x384xf32> to vector<8x384xf32>
    %c0_50 = arith.constant 0 : index
    %c0_51 = arith.constant 0 : index
    %221 = vector.load %arg2[%c0_50, %c0_51] : memref<128x384xf32, #tpu.memory_space<vmem>>, vector<128x384xf32>
    %cst_52 = arith.constant dense<0.000000e+00> : vector<8x384xf32>
    %222 = tpu.matmul %219, %221, %cst_52 {dimension_numbers = #tpu.dot_dimension_numbers<[1], [0], [0], [1], [0, 0, 1, 1], [], []>} : vector<8x128xf32>, vector<128x384xf32>, vector<8x384xf32> -> vector<8x384xf32>
    %223 = vector.extract_strided_slice %220 {offsets = [0, 0], sizes = [8, 128], strides = [1, 1]} : vector<8x384xf32> to vector<8x128xf32>
    %224 = vector.extract_strided_slice %222 {offsets = [0, 0], sizes = [8, 128], strides = [1, 1]} : vector<8x384xf32> to vector<8x128xf32>
    %225 = arith.addf %223, %224 : vector<8x128xf32>
    %226 = arith.negf %225 : vector<8x128xf32>
    %227 = math.exp %226 : vector<8x128xf32>
    %cst_53 = arith.constant 1.000000e+00 : f32
    %228 = vector.broadcast %cst_53 : f32 to vector<8x128xf32>
    %229 = arith.addf %228, %227 : vector<8x128xf32>
    %230 = arith.divf %228, %229 : vector<8x128xf32>
    %231 = vector.extract_strided_slice %220 {offsets = [0, 128], sizes = [8, 128], strides = [1, 1]} : vector<8x384xf32> to vector<8x128xf32>
    %232 = vector.extract_strided_slice %222 {offsets = [0, 128], sizes = [8, 128], strides = [1, 1]} : vector<8x384xf32> to vector<8x128xf32>
    %233 = arith.addf %231, %232 : vector<8x128xf32>
    %234 = arith.negf %233 : vector<8x128xf32>
    %235 = math.exp %234 : vector<8x128xf32>
    %cst_54 = arith.constant 1.000000e+00 : f32
    %236 = vector.broadcast %cst_54 : f32 to vector<8x128xf32>
    %237 = arith.addf %236, %235 : vector<8x128xf32>
    %238 = arith.divf %236, %237 : vector<8x128xf32>
    %239 = vector.extract_strided_slice %220 {offsets = [0, 256], sizes = [8, 128], strides = [1, 1]} : vector<8x384xf32> to vector<8x128xf32>
    %240 = vector.extract_strided_slice %222 {offsets = [0, 256], sizes = [8, 128], strides = [1, 1]} : vector<8x384xf32> to vector<8x128xf32>
    %241 = arith.addf %240, %8 : vector<8x128xf32>
    %242 = arith.mulf %230, %241 : vector<8x128xf32>
    %243 = arith.addf %239, %242 : vector<8x128xf32>
    %244 = math.tanh %243 : vector<8x128xf32>
    %cst_55 = arith.constant 1.000000e+00 : f32
    %245 = vector.broadcast %cst_55 : f32 to vector<8x128xf32>
    %246 = arith.subf %245, %238 : vector<8x128xf32>
    %247 = arith.mulf %246, %244 : vector<8x128xf32>
    %248 = arith.mulf %238, %219 : vector<8x128xf32>
    %249 = arith.addf %247, %248 : vector<8x128xf32>
    %c0_56 = arith.constant 0 : index
    %c0_57 = arith.constant 0 : index
    %250 = vector.load %arg5[%c0_56, %c0_57] : memref<128x1024xf32, #tpu.memory_space<vmem>>, vector<128x1024xf32>
    %cst_58 = arith.constant dense<0.000000e+00> : vector<8x1024xf32>
    %251 = tpu.matmul %249, %250, %cst_58 {dimension_numbers = #tpu.dot_dimension_numbers<[1], [0], [0], [1], [0, 0, 1, 1], [], []>} : vector<8x128xf32>, vector<128x1024xf32>, vector<8x1024xf32> -> vector<8x1024xf32>
    %c0_59 = arith.constant 0 : index
    %c0_60 = arith.constant 0 : index
    %252 = vector.load %arg6[%c0_59, %c0_60] : memref<1x1024xf32, #tpu.memory_space<vmem>>, vector<1x1024xf32>
    %253 = vector.broadcast %252 : vector<1x1024xf32> to vector<8x1024xf32>
    %254 = arith.addf %251, %253 : vector<8x1024xf32>
    %cst_61 = arith.constant 0.000000e+00 : f32
    %255 = vector.broadcast %cst_61 : f32 to vector<8x1024xf32>
    %256 = arith.maximumf %254, %255 : vector<8x1024xf32>
    %c0_62 = arith.constant 0 : index
    %c0_63 = arith.constant 0 : index
    %257 = vector.load %arg7[%c0_62, %c0_63] : memref<1x1024xf32, #tpu.memory_space<vmem>>, vector<1x1024xf32>
    %258 = vector.broadcast %257 : vector<1x1024xf32> to vector<8x1024xf32>
    %259 = arith.mulf %256, %258 : vector<8x1024xf32>
    %cst_64 = arith.constant dense<0.000000e+00> : vector<8xf32>
    %260 = vector.multi_reduction <add>, %259, %cst_64 [1] : vector<8x1024xf32> to vector<8xf32>
    %261 = vector.shape_cast %260 : vector<8xf32> to vector<8x1xf32>
    %c0_65 = arith.constant 0 : index
    %c0_66 = arith.constant 0 : index
    %262 = vector.load %arg8[%c0_65, %c0_66] : memref<1x1xf32, #tpu.memory_space<vmem>>, vector<1x1xf32>
    %263 = vector.broadcast %262 : vector<1x1xf32> to vector<8x1xf32>
    %264 = arith.addf %261, %263 : vector<8x1xf32>
    %c0_67 = arith.constant 0 : index
    %c0_68 = arith.constant 0 : index
    %265 = vector.load %arg9[%c0_67, %c0_68] : memref<8x1xf32, #tpu.memory_space<vmem>>, vector<8x1xf32>
    tpu.vector_store %arg9[%c0_67, %c0_68], %264 {strides = array<i32>} : memref<8x1xf32, #tpu.memory_space<vmem>>, vector<8x1xf32>,
    return
  }
}

</mosaic_0001>

<bundles_post_ra>
// kernel: tpu_custom_call.1
= control target key start
LH: loop header
LB: loop body
LE: loop exit
PB: predicated region body
PF: predicated region fallthrough
CT: control target
= control target key end

     0   :  { %s6170_s0 = inlined_call_operand.hbm [shape: f32[64,1024], index: 0, kind: input, shape index: {}]   ;;  %s6171_s1 = inlined_call_operand.hbm [shape: f32[1024,384], index: 1, kind: input, shape index: {}]   ;;  %s6172_s2 = inlined_call_operand.hbm [shape: f32[128,384], index: 2, kind: input, shape index: {}]   ;;  %s6173_s3 = inlined_call_operand.hbm [shape: f32[1,384], index: 3, kind: input, shape index: {}]   ;;  %s6174_s4 = inlined_call_operand.hbm [shape: f32[1,128], index: 4, kind: input, shape index: {}]   ;;  %s6175_s5 = inlined_call_operand.hbm [shape: f32[128,1024], index: 5, kind: input, shape index: {}]   ;;  %s6176_s6 = inlined_call_operand.hbm [shape: f32[1,1024], index: 6, kind: input, shape index: {}]   ;;  %s6177_s7 = inlined_call_operand.hbm [shape: f32[1,1024], index: 7, kind: input, shape index: {}]   ;;  %s6178_s8 = inlined_call_operand.<no memory space> [shape: f32[1,1], index: 8, kind: input, shape index: {}]   ;;  %s6179_s9 = inlined_call_operand.vmem [shape: f32[8,1], index: 9, kind: output, shape index: {}]  }
   0x1   :  { %v14_v0 = vstv %s6178_s8 }
   0x2   :  { %15 = vst [vmem:[#allocation2] sm:$0x1] %v14_v0 }
   0x3   :  { %16 = vsyncpa [#allocation4], 0 }
   0x4   :  { %17 = vsyncpa [#allocation6], 0 }
   0x5   :  { %18 = vsyncpa [#allocation9], 0 }
   0x6   :  { %19 = vsyncpa [#allocation12], 0 }
   0x7   :  { %20 = vsyncpa [#allocation15], 0  ;;  %s5350_s11 = smov [#allocation5]   ;;  %s5164_s15 = scalar_lea.hbm %s6171_s1, 49152 }
   0x8   :  { %s38_s12 = sshll.u32 %s5350_s11, 4  ;;  %p5165_p0 = scmp.ne.s32.totalorder %s6171_s1, %s5164_s15  ;;  %s39_s12 = int_to_ptr.vmem [resolvable:$true] %s38_s12 }
   0x9   :  { %p5168_p1 = scmp.lt.u32.totalorder %s5164_s15, %s6171_s1 }
   0xb   :  { %p5170_p2 = pnand %p5168_p1, %p5165_p0 }
   0xd   :  { %5173 = shalt.err (!%p5170_p2)
}
   0xe   :  { %s5174_s8 = scalar_lea.vmem %s39_s12, 49152  ;;  %p5179_p4 = scmp.lt.s32.totalorder %s39_s12, %s39_s12 }
   0xf   :  { %p5175_p3 = scmp.ne.s32.totalorder %s39_s12, %s5174_s8  ;;  %p5180_p5 = scmp.lt.s32.totalorder %s5174_s8, %s5174_s8 }
  0x11   :  { %p5181_p6 = por %p5180_p5, %p5179_p4 }
  0x13   :  { %p5182_p7 = pnand %p5181_p6, %p5175_p3 }
  0x15   :  { %5185 = shalt.err (!%p5182_p7)
}
  0x16   :  { %s5351_s20 = smov 384   ;;  %s5352_s21 = smov 24  }
  0x17   :  { %44 = dma.hbm_to_vmem [thread:$0]  %s6171_s1, 49152, %s39_s12, [#allocation6], %s5351_s20, %s5351_s20, %s5352_s21  }
  0x18   :  { %s5353_s24 = smov [#allocation8]   ;;  %s5186_s28 = scalar_lea.hbm %s6173_s3, 48 }
  0x19   :  { %s63_s25 = sshll.u32 %s5353_s24, 4  ;;  %p5187_p8 = scmp.ne.s32.totalorder %s6173_s3, %s5186_s28  ;;  %s64_s25 = int_to_ptr.vmem [resolvable:$true] %s63_s25 }
  0x1a   :  { %p5190_p9 = scmp.lt.u32.totalorder %s5186_s28, %s6173_s3 }
  0x1c   :  { %p5192_p10 = pnand %p5190_p9, %p5187_p8 }
  0x1e   :  { %5195 = shalt.err (!%p5192_p10)
}
  0x1f   :  { %s5196_s13 = scalar_lea.vmem %s64_s25, 48  ;;  %s5200_s1 = scalar_lea.vmem %s64_s25, 64 }
  0x20   :  { %p5197_p11 = scmp.ne.s32.totalorder %s64_s25, %s5196_s13  ;;  %p5201_p12 = scmp.lt.s32.totalorder %s64_s25, %s64_s25 }
  0x21   :  { %p5202_p13 = scmp.lt.s32.totalorder %s5200_s1, %s5196_s13 }
  0x23   :  { %p5203_p0 = por %p5202_p13, %p5201_p12 }
  0x25   :  { %p5204_p1 = pnand %p5203_p0, %p5197_p11 }
  0x27   :  { %5207 = shalt.err (!%p5204_p1)
}
  0x28   :  { %66 = dma.hbm_to_vmem [thread:$0]  %s6173_s3, 48, %s64_s25, [#allocation9]  }
  0x29   :  { %s5354_s15 = smov [#allocation11]   ;;  %s5355_s17 = smov [#allocation3]  }
  0x2a   :  { %s82_s16 = sshll.u32 %s5354_s15, 4  ;;  %s26_s18 = sshll.u32 %s5355_s17, 4  ;;  %s83_s16 = int_to_ptr.vmem [resolvable:$true] %s82_s16  ;;  %s5445_s18 = int_to_ptr.vmem [resolvable:$true] %s26_s18 }
  0x2b   :  { %s5208_s22 = scalar_lea.hbm %s6175_s5, 16384 }
  0x2c   :  { %p5209_p2 = scmp.ne.s32.totalorder %s6175_s5, %s5208_s22  ;;  %p5212_p3 = scmp.lt.u32.totalorder %s5208_s22, %s6175_s5 }
  0x2e   :  { %p5214_p4 = pnand %p5212_p3, %p5209_p2 }
  0x30   :  { %5217 = shalt.err (!%p5214_p4)
}
  0x31   :  { %s5218_s3 = scalar_lea.vmem %s83_s16, 16384  ;;  %p5223_p6 = scmp.lt.s32.totalorder %s83_s16, %s83_s16 }
  0x32   :  { %p5219_p5 = scmp.ne.s32.totalorder %s83_s16, %s5218_s3  ;;  %p5224_p7 = scmp.lt.s32.totalorder %s5218_s3, %s5218_s3 }
  0x34   :  { %p5225_p8 = por %p5224_p7, %p5223_p6 }
  0x36   :  { %p5226_p9 = pnand %p5225_p8, %p5219_p5 }
  0x38   :  { %5229 = shalt.err (!%p5226_p9)
}
  0x39   :  { %s5356_s25 = smov 1024   ;;  %s5357_s28 = smov 64  }
  0x3a   :  { %88 = dma.hbm_to_vmem [thread:$0]  %s6175_s5, 16384, %s83_s16, [#allocation12], %s5356_s25, %s5356_s25, %s5357_s28  }
  0x3b   :  { %s5230_s13 = scalar_lea.hbm %s6170_s0, 8192 }
  0x3c   :  { %p5231_p10 = scmp.ne.s32.totalorder %s6170_s0, %s5230_s13  ;;  %p5234_p11 = scmp.lt.u32.totalorder %s5230_s13, %s6170_s0 }
  0x3e   :  { %p5236_p12 = pnand %p5234_p11, %p5231_p10 }
  0x40   :  { %5239 = shalt.err (!%p5236_p12)
}
  0x41   :  { %s5240_s17 = scalar_lea.vmem %s5445_s18, 8192  ;;  %p5245_p0 = scmp.lt.s32.totalorder %s5445_s18, %s5445_s18 }
  0x42   :  { %p5241_p13 = scmp.ne.s32.totalorder %s5445_s18, %s5240_s17  ;;  %p5246_p1 = scmp.lt.s32.totalorder %s5240_s17, %s5240_s17 }
  0x44   :  { %p5247_p2 = por %p5246_p1, %p5245_p0 }
  0x46   :  { %p5248_p3 = pnand %p5247_p2, %p5241_p13 }
  0x48   :  { %5251 = shalt.err (!%p5248_p3)
}
  0x49   :  { %32 = dma.hbm_to_vmem [thread:$0]  %s6170_s0, 8192, %s5445_s18, [#allocation4], %s5356_s25, %s5356_s25, %s5357_s28  }
  0x4a   :  { %s5358_s19 = smov [#allocation7]   ;;  %s5359_s22 = smov [#allocation10]  }
  0x4b   :  { %s50_s8 = sshll.u32 %s5358_s19, 4  ;;  %s73_s23 = sshll.u32 %s5359_s22, 4  ;;  %s51_s8 = int_to_ptr.vmem [resolvable:$true] %s50_s8  ;;  %s74_s23 = int_to_ptr.vmem [resolvable:$true] %s73_s23 }
  0x4c   :  { %s5252_s27 = scalar_lea.hbm %s6172_s2, 6144 }
  0x4d   :  { %p5253_p4 = scmp.ne.s32.totalorder %s6172_s2, %s5252_s27  ;;  %p5256_p5 = scmp.lt.u32.totalorder %s5252_s27, %s6172_s2 }
  0x4f   :  { %p5258_p6 = pnand %p5256_p5, %p5253_p4 }
  0x51   :  { %5261 = shalt.err (!%p5258_p6)
}
  0x52   :  { %s5262_s0 = scalar_lea.vmem %s51_s8, 6144  ;;  %p5267_p8 = scmp.lt.s32.totalorder %s51_s8, %s51_s8 }
  0x53   :  { %p5263_p7 = scmp.ne.s32.totalorder %s51_s8, %s5262_s0  ;;  %p5268_p9 = scmp.lt.s32.totalorder %s5262_s0, %s5262_s0 }
  0x55   :  { %p5269_p10 = por %p5268_p9, %p5267_p8 }
  0x57   :  { %p5270_p11 = pnand %p5269_p10, %p5263_p7 }
  0x59   :  { %5273 = shalt.err (!%p5270_p11)
}
  0x5a   :  { %56 = dma.hbm_to_vmem [thread:$0]  %s6172_s2, 6144, %s51_s8, [#allocation6], %s5351_s20, %s5351_s20, %s5352_s21  }
  0x5b   :  { %s5274_s13 = scalar_lea.hbm %s6174_s4, 16 }
  0x5c   :  { %p5275_p12 = scmp.ne.s32.totalorder %s6174_s4, %s5274_s13  ;;  %p5278_p13 = scmp.lt.u32.totalorder %s5274_s13, %s6174_s4 }
  0x5e   :  { %p5280_p0 = pnand %p5278_p13, %p5275_p12 }
  0x60   :  { %5283 = shalt.err (!%p5280_p0)
}
  0x61   :  { %s5284_s17 = scalar_lea.vmem %s74_s23, 16  ;;  %s5288_s5 = scalar_lea.vmem %s74_s23, 32 }
  0x62   :  { %p5285_p1 = scmp.ne.s32.totalorder %s74_s23, %s5284_s17  ;;  %p5289_p2 = scmp.lt.s32.totalorder %s74_s23, %s74_s23 }
  0x63   :  { %p5290_p3 = scmp.lt.s32.totalorder %s5288_s5, %s5284_s17 }
  0x65   :  { %p5291_p4 = por %p5290_p3, %p5289_p2 }
  0x67   :  { %p5292_p5 = pnand %p5291_p4, %p5285_p1 }
  0x69   :  { %5295 = shalt.err (!%p5292_p5)
}
  0x6a   :  { %76 = dma.hbm_to_vmem [thread:$0]  %s6174_s4, 16, %s74_s23, [#allocation9]  }
  0x6b   :  { %s5360_s21 = smov [#allocation13]   ;;  %s5361_s19 = smov [#allocation14]  }
  0x6c   :  { %s95_s16 = sshll.u32 %s5360_s21, 4  ;;  %s105_s8 = sshll.u32 %s5361_s19, 4  ;;  %s96_s16 = int_to_ptr.vmem [resolvable:$true] %s95_s16  ;;  %s106_s8 = int_to_ptr.vmem [resolvable:$true] %s105_s8 }
  0x6d   :  { %s5296_s26 = scalar_lea.hbm %s6176_s6, 128 }
  0x6e   :  { %p5297_p6 = scmp.ne.s32.totalorder %s6176_s6, %s5296_s26  ;;  %p5300_p7 = scmp.lt.u32.totalorder %s5296_s26, %s6176_s6 }
  0x70   :  { %p5302_p8 = pnand %p5300_p7, %p5297_p6 }
  0x72   :  { %5305 = shalt.err (!%p5302_p8)
}
  0x73   :  { %s5306_s4 = scalar_lea.vmem %s96_s16, 128  ;;  %p5311_p10 = scmp.lt.s32.totalorder %s96_s16, %s96_s16 }
  0x74   :  { %p5307_p9 = scmp.ne.s32.totalorder %s96_s16, %s5306_s4  ;;  %p5312_p11 = scmp.lt.s32.totalorder %s5306_s4, %s5306_s4 }
  0x76   :  { %p5313_p12 = por %p5312_p11, %p5311_p10 }
  0x78   :  { %p5314_p13 = pnand %p5313_p12, %p5307_p9 }
  0x7a   :  { %5317 = shalt.err (!%p5314_p13)
}
  0x7b   :  { %98 = dma.hbm_to_vmem [thread:$0]  %s6176_s6, 128, %s96_s16, [#allocation12]  }
  0x7c   :  { %s5318_s25 = scalar_lea.hbm %s6177_s7, 128 }
  0x7d   :  { %p5319_p0 = scmp.ne.s32.totalorder %s6177_s7, %s5318_s25  ;;  %p5322_p1 = scmp.lt.u32.totalorder %s5318_s25, %s6177_s7 }
  0x7f   :  { %p5324_p2 = pnand %p5322_p1, %p5319_p0 }
  0x81   :  { %5327 = shalt.err (!%p5324_p2)
}
  0x82   :  { %s5328_s12 = scalar_lea.vmem %s106_s8, 128  ;;  %p5333_p4 = scmp.lt.s32.totalorder %s106_s8, %s106_s8 }
  0x83   :  { %p5329_p3 = scmp.ne.s32.totalorder %s106_s8, %s5328_s12  ;;  %p5334_p5 = scmp.lt.s32.totalorder %s5328_s12, %s5328_s12 }
  0x85   :  { %p5335_p6 = por %p5334_p5, %p5333_p4 }
  0x87   :  { %p5336_p7 = pnand %p5335_p6, %p5329_p3 }
  0x89   :  { %5339 = shalt.err (!%p5336_p7)
}
  0x8a   :  { %108 = dma.hbm_to_vmem [thread:$0]  %s6177_s7, 128, %s106_s8, [#allocation15]  }
  0x8b   :  { %5340 = dma.done.wait [#allocation4], 8192  }
  0x8c   :  { %5341 = vsyncadd [#allocation4], 4294959104 }
  0x8d   :  { %5342 = dma.done.wait [#allocation6], 55296  }
  0x8e   :  { %5343 = vsyncadd [#allocation6], 4294912000 }
  0x8f   :  { %5344 = dma.done.wait [#allocation9], 64  }
  0x90   :  { %5345 = vsyncadd [#allocation9], 4294967232 }
  0x91   :  { %5346 = dma.done.wait [#allocation12], 16512  }
  0x92   :  { %5347 = vsyncadd [#allocation12], 4294950784 }
  0x93   :  { %5348 = dma.done.wait [#allocation15], 128  }
  0x94   :  { %5349 = vsyncadd [#allocation15], 4294967168  ;;  %v200_v1 = vld [vmem:[#allocation5 + $0x8] sm:$0xff]  ;;  %v203_v2 = vld [vmem:[#allocation5 + $0x20] sm:$0xff]  ;;  %vm5363_vm0 = vmmov 0   ;;  %vm3360_vm1 = vcmask 7168  }
  0x95   :  { %v199_v3 = vld [vmem:[#allocation5] sm:$0xff]  ;;  %v4029_v4 = vpack.c.bf16 %v203_v2, %v200_v1  ;;  %v202_v5 = vld [vmem:[#allocation5 + $0x18] sm:$0xff]  ;;  %v209_v7 = vld [vmem:[#allocation5 + $0x50] sm:$0xff] }
  0x96   :  { %v206_v6 = vld [vmem:[#allocation5 + $0x38] sm:$0xff]  ;;  %v4031_v8 = vpack.c.bf16 %v202_v5, %v199_v3  ;;  %v205_v10 = vld [vmem:[#allocation5 + $0x30] sm:$0xff]  ;;  %v208_v11 = vld [vmem:[#allocation5 + $0x48] sm:$0xff] }
  0x97   :  { %v4033_v9 = vpack.c.bf16 %v209_v7, %v206_v6  ;;  %v212_v12 = vld [vmem:[#allocation5 + $0x68] sm:$0xff]  ;;  %4030 = vmatprep.subr.bf16.mxu0 %v4029_v4  ;;  %v215_v13 = vld [vmem:[#allocation5 + $0x80] sm:$0xff]  ;;  %v4035_v14 = vpack.c.bf16 %v208_v11, %v205_v10  ;;  %v214_v17 = vld [vmem:[#allocation5 + $0x78] sm:$0xff] }
  0x98   :  { %4032 = vmatpush1.bf16.msra.mxu0 %v4031_v8  ;;  %v4037_v15 = vpack.c.bf16 %v215_v13, %v212_v12  ;;  %v211_v16 = vld [vmem:[#allocation5 + $0x60] sm:$0xff]  ;;  %v218_v18 = vld [vmem:[#allocation5 + $0x98] sm:$0xff]  ;;  %v221_v19 = vld [vmem:[#allocation5 + $0xb0] sm:$0xff] }
  0x99   :  { %4034 = vmatprep.subr.bf16.mxu0 %v4033_v9  ;;  %v4039_v20 = vpack.c.bf16 %v214_v17, %v211_v16  ;;  %v4041_v21 = vpack.c.bf16 %v221_v19, %v218_v18  ;;  %v217_v22 = vld [vmem:[#allocation5 + $0x90] sm:$0xff]  ;;  %v220_v23 = vld [vmem:[#allocation5 + $0xa8] sm:$0xff]  ;;  %v227_v25 = vld [vmem:[#allocation5 + $0xe0] sm:$0xff] }
  0x9a   :  { %v224_v24 = vld [vmem:[#allocation5 + $0xc8] sm:$0xff]  ;;  %v4043_v26 = vpack.c.bf16 %v220_v23, %v217_v22  ;;  %v223_v28 = vld [vmem:[#allocation5 + $0xc0] sm:$0xff]  ;;  %v226_v29 = vld [vmem:[#allocation5 + $0xd8] sm:$0xff] }
  0x9b   :  { %v4045_v27 = vpack.c.bf16 %v227_v25, %v224_v24  ;;  %v230_v30 = vld [vmem:[#allocation5 + $0xf8] sm:$0xff]  ;;  %v233_v31 = vld [vmem:[#allocation5 + $0x110] sm:$0xff]  ;;  %v4047_v32 = vpack.c.bf16 %v226_v29, %v223_v28  ;;  %v232_v35 = vld [vmem:[#allocation5 + $0x108] sm:$0xff] }
  0x9c   :  { %4036 = vmatpush1.bf16.msra.mxu0 %v4035_v14  ;;  %v4049_v33 = vpack.c.bf16 %v233_v31, %v230_v30  ;;  %v229_v34 = vld [vmem:[#allocation5 + $0xf0] sm:$0xff]  ;;  %v236_v36 = vld [vmem:[#allocation5 + $0x128] sm:$0xff]  ;;  %v239_v37 = vld [vmem:[#allocation5 + $0x140] sm:$0xff] }
  0x9d   :  { %4038 = vmatprep.subr.bf16.mxu0 %v4037_v15  ;;  %v4051_v38 = vpack.c.bf16 %v232_v35, %v229_v34  ;;  %v235_v39 = vld [vmem:[#allocation5 + $0x120] sm:$0xff]  ;;  %v4053_v40 = vpack.c.bf16 %v239_v37, %v236_v36  ;;  %v238_v41 = vld [vmem:[#allocation5 + $0x138] sm:$0xff]  ;;  %v136_v43 = vld [vmem:[#allocation3 + $0x8] sm:$0xff] }
  0x9e   :  { %v242_v42 = vld [vmem:[#allocation5 + $0x158] sm:$0xff]  ;;  %v245_v44 = vld [vmem:[#allocation5 + $0x170] sm:$0xff]  ;;  %664 = vmatprep.mubr.f32.mxu0 %v136_v43  ;;  %v252_v46 = vld [vmem:[#allocation5 + $0x1a8] sm:$0xff]  ;;  %1116 = vmatprep.mubr.f32.mxu1 %v136_v43  ;;  %v4055_v48 = vpack.c.bf16 %v238_v41, %v235_v39 }
  0x9f   :  { %v249_v45 = vld [vmem:[#allocation5 + $0x190] sm:$0xff]  ;;  %v204_v51 = vld [vmem:[#allocation5 + $0x28] sm:$0xff]  ;;  %v4057_v52 = vpack.c.bf16 %v245_v44, %v242_v42  ;;  %v255_v55 = vld [vmem:[#allocation5 + $0x1c0] sm:$0xff] }
  0xa0   :  { %4040 = vmatpush1.bf16.msra.mxu0 %v4039_v20  ;;  %v4285_v47 = vpack.c.bf16 %v252_v46, %v249_v45  ;;  %v241_v49 = vld [vmem:[#allocation5 + $0x150] sm:$0xff]  ;;  %v244_v53 = vld [vmem:[#allocation5 + $0x168] sm:$0xff]  ;;  %v258_v56 = vld [vmem:[#allocation5 + $0x1d8] sm:$0xff] }
  0xa1   :  { %4042 = vmatprep.subr.bf16.mxu0 %v4041_v21  ;;  %v201_v50 = vld [vmem:[#allocation5 + $0x10] sm:$0xff]  ;;  %v248_v57 = vld [vmem:[#allocation5 + $0x188] sm:$0xff]  ;;  %v251_v58 = vld [vmem:[#allocation5 + $0x1a0] sm:$0xff]  ;;  %v4289_v59 = vpack.c.bf16 %v258_v56, %v255_v55  ;;  %v4059_v62 = vpack.c.bf16 %v244_v53, %v241_v49 }
  0xa2   :  { %4286 = vmatprep.subr.bf16.mxu1 %v4285_v47  ;;  %v4287_v54 = vpack.c.bf16 %v204_v51, %v201_v50  ;;  %v207_v60 = vld [vmem:[#allocation5 + $0x40] sm:$0xff]  ;;  %v210_v61 = vld [vmem:[#allocation5 + $0x58] sm:$0xff]  ;;  %v261_v1 = vld [vmem:[#allocation5 + $0x1f0] sm:$0xff]  ;;  %v4061_v3 = vpack.c.bf16 %v251_v58, %v248_v57 }
  0xa3   :  { %v247_v63 = vld [vmem:[#allocation5 + $0x180] sm:$0xff]  ;;  %v4291_v0 = vpack.c.bf16 %v210_v61, %v207_v60  ;;  %v264_v2 = vld [vmem:[#allocation5 + $0x208] sm:$0xff]  ;;  %v250_v4 = vld [vmem:[#allocation5 + $0x198] sm:$0xff] }
  0xa4   :  { %4044 = vmatpush1.bf16.msra.mxu0 %v4043_v26  ;;  %4288 = vmatpush3.bf16.msra.mxu1 %v4287_v54  ;;  %v4293_v5 = vpack.c.bf16 %v264_v2, %v261_v1  ;;  %v213_v6 = vld [vmem:[#allocation5 + $0x70] sm:$0xff]  ;;  %v216_v7 = vld [vmem:[#allocation5 + $0x88] sm:$0xff]  ;;  %v254_v8 = vld [vmem:[#allocation5 + $0x1b8] sm:$0xff]  ;;  %v4063_v13 = vpack.c.bf16 %v250_v4, %v247_v63 }
  0xa5   :  { %4046 = vmatprep.subr.bf16.mxu0 %v4045_v27  ;;  %4290 = vmatprep.subr.bf16.mxu1 %v4289_v59  ;;  %v257_v9 = vld [vmem:[#allocation5 + $0x1d0] sm:$0xff]  ;;  %v267_v10 = vld [vmem:[#allocation5 + $0x220] sm:$0xff]  ;;  %v4295_v11 = vpack.c.bf16 %v216_v7, %v213_v6  ;;  %v270_v12 = vld [vmem:[#allocation5 + $0x238] sm:$0xff] }
  0xa6   :  { %v253_v14 = vld [vmem:[#allocation5 + $0x1b0] sm:$0xff]  ;;  %v4297_v15 = vpack.c.bf16 %v270_v12, %v267_v10  ;;  %v219_v16 = vld [vmem:[#allocation5 + $0xa0] sm:$0xff]  ;;  %v222_v17 = vld [vmem:[#allocation5 + $0xb8] sm:$0xff]  ;;  %v4065_v18 = vpack.c.bf16 %v257_v9, %v254_v8 }
  0xa7   :  { %v256_v19 = vld [vmem:[#allocation5 + $0x1c8] sm:$0xff]  ;;  %v273_v20 = vld [vmem:[#allocation5 + $0x250] sm:$0xff]  ;;  %v263_v23 = vld [vmem:[#allocation5 + $0x200] sm:$0xff]  ;;  %v4299_v24 = vpack.c.bf16 %v222_v17, %v219_v16 }
  0xa8   :  { %4048 = vmatpush1.bf16.msra.mxu0 %v4047_v32  ;;  %4292 = vmatpush3.bf16.msra.mxu1 %v4291_v0  ;;  %v276_v21 = vld [vmem:[#allocation5 + $0x268] sm:$0xff]  ;;  %v4067_v25 = vpack.c.bf16 %v256_v19, %v253_v14  ;;  %v259_v26 = vld [vmem:[#allocation5 + $0x1e0] sm:$0xff]  ;;  %v225_v28 = vld [vmem:[#allocation5 + $0xd0] sm:$0xff] }
  0xa9   :  { %4050 = vmatprep.subr.bf16.mxu0 %v4049_v33  ;;  %4294 = vmatprep.subr.bf16.mxu1 %v4293_v5  ;;  %v260_v22 = vld [vmem:[#allocation5 + $0x1e8] sm:$0xff]  ;;  %v4301_v27 = vpack.c.bf16 %v276_v21, %v273_v20  ;;  %v262_v31 = vld [vmem:[#allocation5 + $0x1f8] sm:$0xff]  ;;  %v279_v32 = vld [vmem:[#allocation5 + $0x280] sm:$0xff] }
  0xaa   :  { %v228_v29 = vld [vmem:[#allocation5 + $0xe8] sm:$0xff]  ;;  %v4069_v30 = vpack.c.bf16 %v263_v23, %v260_v22  ;;  %v282_v33 = vld [vmem:[#allocation5 + $0x298] sm:$0xff]  ;;  %v269_v35 = vld [vmem:[#allocation5 + $0x230] sm:$0xff]  ;;  %v4071_v37 = vpack.c.bf16 %v262_v31, %v259_v26 }
  0xab   :  { %v266_v34 = vld [vmem:[#allocation5 + $0x218] sm:$0xff]  ;;  %v4303_v36 = vpack.c.bf16 %v228_v29, %v225_v28  ;;  %v4305_v39 = vpack.c.bf16 %v282_v33, %v279_v32  ;;  %v268_v43 = vld [vmem:[#allocation5 + $0x228] sm:$0xff]  ;;  %v285_v44 = vld [vmem:[#allocation5 + $0x2b0] sm:$0xff] }
  0xac   :  { %4052 = vmatpush1.bf16.msra.mxu0 %v4051_v38  ;;  %4296 = vmatpush3.bf16.msra.mxu1 %v4295_v11  ;;  %v265_v38 = vld [vmem:[#allocation5 + $0x210] sm:$0xff]  ;;  %v234_v41 = vld [vmem:[#allocation5 + $0x118] sm:$0xff]  ;;  %v4073_v42 = vpack.c.bf16 %v269_v35, %v266_v34  ;;  %v288_v45 = vld [vmem:[#allocation5 + $0x2c8] sm:$0xff] }
  0xad   :  { %4054 = vmatprep.subr.bf16.mxu0 %v4053_v40  ;;  %4298 = vmatprep.subr.bf16.mxu1 %v4297_v15  ;;  %v231_v40 = vld [vmem:[#allocation5 + $0x100] sm:$0xff]  ;;  %v272_v46 = vld [vmem:[#allocation5 + $0x248] sm:$0xff]  ;;  %v4075_v49 = vpack.c.bf16 %v268_v43, %v265_v38  ;;  %v4309_v51 = vpack.c.bf16 %v288_v45, %v285_v44  ;;  %v274_v55 = vld [vmem:[#allocation5 + $0x258] sm:$0xff] }
  0xae   :  { %v275_v47 = vld [vmem:[#allocation5 + $0x260] sm:$0xff]  ;;  %v240_v53 = vld [vmem:[#allocation5 + $0x148] sm:$0xff]  ;;  %v294_v57 = vld [vmem:[#allocation5 + $0x2f8] sm:$0xff] }
  0xaf   :  { %v271_v50 = vld [vmem:[#allocation5 + $0x240] sm:$0xff]  ;;  %v4077_v54 = vpack.c.bf16 %v275_v47, %v272_v46  ;;  %v278_v58 = vld [vmem:[#allocation5 + $0x278] sm:$0xff]  ;;  %v281_v59 = vld [vmem:[#allocation5 + $0x290] sm:$0xff] }
  0xb0   :  { %4056 = vmatpush1.bf16.msra.mxu0 %v4055_v48  ;;  %4300 = vmatpush3.bf16.msra.mxu1 %v4299_v24  ;;  %v4307_v48 = vpack.c.bf16 %v234_v41, %v231_v40  ;;  %v291_v56 = vld [vmem:[#allocation5 + $0x2e0] sm:$0xff]  ;;  %v4079_v61 = vpack.c.bf16 %v274_v55, %v271_v50  ;;  %v246_v1 = vld [vmem:[#allocation5 + $0x178] sm:$0xff]  ;;  %v4081_v2 = vpack.c.bf16 %v281_v59, %v278_v58  ;;  %v345_v4 = vld [vmem:[#allocation5 + $0x490] sm:$0xff] }
  0xb1   :  { %4058 = vmatprep.subr.bf16.mxu0 %v4057_v52  ;;  %4302 = vmatprep.subr.bf16.mxu1 %v4301_v27  ;;  %v237_v52 = vld [vmem:[#allocation5 + $0x130] sm:$0xff]  ;;  %v4313_v63 = vpack.c.bf16 %v294_v57, %v291_v56  ;;  %v243_v0 = vld [vmem:[#allocation5 + $0x160] sm:$0xff]  ;;  %v348_v5 = vld [vmem:[#allocation5 + $0x4a8] sm:$0xff] }
  0xb2   :  { %v4311_v60 = vpack.c.bf16 %v240_v53, %v237_v52  ;;  %v284_v6 = vld [vmem:[#allocation5 + $0x2a8] sm:$0xff]  ;;  %v287_v7 = vld [vmem:[#allocation5 + $0x2c0] sm:$0xff]  ;;  %v4315_v8 = vpack.c.bf16 %v246_v1, %v243_v0  ;;  %v4317_v11 = vpack.c.bf16 %v348_v5, %v345_v4  ;;  %v297_v12 = vld [vmem:[#allocation5 + $0x310] sm:$0xff] }
  0xb3   :  { %v283_v10 = vld [vmem:[#allocation5 + $0x2a0] sm:$0xff]  ;;  %v4085_v14 = vpack.c.bf16 %v287_v7, %v284_v6  ;;  %v286_v15 = vld [vmem:[#allocation5 + $0x2b8] sm:$0xff]  ;;  %v293_v19 = vld [vmem:[#allocation5 + $0x2f0] sm:$0xff] }
  0xb4   :  { %4060 = vmatpush1.bf16.msra.mxu0 %v4059_v62  ;;  %4304 = vmatpush3.bf16.msra.mxu1 %v4303_v36  ;;  %v277_v62 = vld [vmem:[#allocation5 + $0x270] sm:$0xff]  ;;  %v351_v16 = vld [vmem:[#allocation5 + $0x4c0] sm:$0xff]  ;;  %v354_v17 = vld [vmem:[#allocation5 + $0x4d8] sm:$0xff]  ;;  %v4087_v23 = vpack.c.bf16 %v286_v15, %v283_v10 }
  0xb5   :  { %4062 = vmatprep.subr.bf16.mxu0 %v4061_v3  ;;  %4306 = vmatprep.subr.bf16.mxu1 %v4305_v39  ;;  %v280_v3 = vld [vmem:[#allocation5 + $0x288] sm:$0xff]  ;;  %v289_v20 = vld [vmem:[#allocation5 + $0x2d0] sm:$0xff]  ;;  %v303_v26 = vld [vmem:[#allocation5 + $0x340] sm:$0xff] }
  0xb6   :  { %v4083_v9 = vpack.c.bf16 %v280_v3, %v277_v62  ;;  %v292_v21 = vld [vmem:[#allocation5 + $0x2e8] sm:$0xff]  ;;  %v306_v27 = vld [vmem:[#allocation5 + $0x358] sm:$0xff]  ;;  %v135_v29 = vld [vmem:[#allocation3] sm:$0xff] }
  0xb7   :  { %v144_v24 = vld [vmem:[#allocation3 + $0x48] sm:$0xff]  ;;  %v299_v33 = vld [vmem:[#allocation5 + $0x320] sm:$0xff]  ;;  %v4323_v35 = vpack.c.bf16 %v306_v27, %v303_v26  ;;  %v4091_v36 = vpack.c.bf16 %v292_v21, %v289_v20  ;;  %v309_v39 = vld [vmem:[#allocation5 + $0x370] sm:$0xff] }
  0xb8   :  { %4064 = vmatpush1.bf16.msra.mxu0 %v4063_v13  ;;  %4308 = vmatpush3.bf16.msra.mxu1 %v4307_v48  ;;  %v300_v13 = vld [vmem:[#allocation5 + $0x328] sm:$0xff]  ;;  %v143_v34 = vld [vmem:[#allocation3 + $0x40] sm:$0xff]  ;;  %v298_v43 = vld [vmem:[#allocation5 + $0x318] sm:$0xff] }
  0xb9   :  { %4066 = vmatprep.subr.bf16.mxu0 %v4065_v18  ;;  %4310 = vmatprep.subr.bf16.mxu1 %v4309_v51  ;;  %v290_v18 = vld [vmem:[#allocation5 + $0x2d8] sm:$0xff]  ;;  %v4319_v22 = vpack.c.bf16 %v300_v13, %v297_v12  ;;  %v360_v31 = vld [vmem:[#allocation5 + $0x508] sm:$0xff]  ;;  %v305_v45 = vld [vmem:[#allocation5 + $0x350] sm:$0xff] }
  0xba   :  { %v4089_v28 = vpack.c.bf16 %v293_v19, %v290_v18  ;;  %v296_v32 = vld [vmem:[#allocation5 + $0x308] sm:$0xff]  ;;  %v302_v44 = vld [vmem:[#allocation5 + $0x338] sm:$0xff]  ;;  %v151_v46 = vld [vmem:[#allocation3 + $0x80] sm:$0xff] }
  0xbb   :  { %v312_v40 = vld [vmem:[#allocation5 + $0x388] sm:$0xff]  ;;  %v4093_v41 = vpack.c.bf16 %v299_v33, %v296_v32  ;;  %v363_v48 = vld [vmem:[#allocation5 + $0x520] sm:$0xff]  ;;  %v318_v52 = vld [vmem:[#allocation5 + $0x3b8] sm:$0xff]  ;;  %v4097_v53 = vpack.c.bf16 %v305_v45, %v302_v44 }
  0xbc   :  { %4068 = vmatpush1.bf16.msra.mxu0 %v4067_v25  ;;  %4312 = vmatpush3.bf16.msra.mxu1 %v4311_v60  ;;  %v4321_v25 = vpack.c.bf16 %v354_v17, %v351_v16  ;;  %v4327_v47 = vpack.c.bf16 %v312_v40, %v309_v39  ;;  %v315_v51 = vld [vmem:[#allocation5 + $0x3a0] sm:$0xff]  ;;  %v304_v55 = vld [vmem:[#allocation5 + $0x348] sm:$0xff]  ;;  %v369_v62 = vld [vmem:[#allocation5 + $0x550] sm:$0xff] }
  0xbd   :  { %4070 = vmatprep.subr.bf16.mxu0 %v4069_v30  ;;  %4314 = vmatprep.subr.bf16.mxu1 %v4313_v63  ;;  %v357_v30 = vld [vmem:[#allocation5 + $0x4f0] sm:$0xff]  ;;  %v308_v56 = vld [vmem:[#allocation5 + $0x368] sm:$0xff]  ;;  %v311_v57 = vld [vmem:[#allocation5 + $0x380] sm:$0xff] }
  0xbe   :  { %v4325_v38 = vpack.c.bf16 %v360_v31, %v357_v30  ;;  %v160_v58 = vld [vmem:[#allocation3 + $0xc8] sm:$0xff]  ;;  %v5527_v60 = vld [vmem:[#allocation3 + $0xc0] sm:$0xff]  ;;  %v321_v1 = vld [vmem:[#allocation5 + $0x3d0] sm:$0xff]  ;;  %v4101_v3 = vpack.c.bf16 %v311_v57, %v308_v56 }
  0xbf   :  { %v372_v63 = vld [vmem:[#allocation5 + $0x568] sm:$0xff]  ;;  %v307_v4 = vld [vmem:[#allocation5 + $0x360] sm:$0xff]  ;;  %v310_v5 = vld [vmem:[#allocation5 + $0x378] sm:$0xff] }
  0xc0   :  { %4072 = vmatpush1.bf16.msra.mxu0 %v4071_v37  ;;  %4316 = vmatpush3.bf16.msra.mxu1 %v4315_v8  ;;  %v152_v37 = vld [vmem:[#allocation3 + $0x88] sm:$0xff]  ;;  %v314_v6 = vld [vmem:[#allocation5 + $0x398] sm:$0xff]  ;;  %v317_v7 = vld [vmem:[#allocation5 + $0x3b0] sm:$0xff] }
  0xc1   :  { %4074 = vmatprep.subr.bf16.mxu0 %v4073_v42  ;;  %4318 = vmatprep.subr.bf16.mxu1 %v4317_v11  ;;  %v295_v42 = vld [vmem:[#allocation5 + $0x300] sm:$0xff]  ;;  %v168_v8 = vld [vmem:[#allocation3 + $0x108] sm:$0xff]  ;;  %v378_v13 = vld [vmem:[#allocation5 + $0x598] sm:$0xff]  ;;  %v4105_v17 = vpack.c.bf16 %v317_v7, %v314_v6 }
  0xc2   :  { %v4095_v50 = vpack.c.bf16 %v298_v43, %v295_v42  ;;  %v5530_v10 = vld [vmem:[#allocation3 + $0x100] sm:$0xff]  ;;  %v330_v16 = vld [vmem:[#allocation5 + $0x418] sm:$0xff]  ;;  %v313_v18 = vld [vmem:[#allocation5 + $0x390] sm:$0xff] }
  0xc3   :  { %1117 = vmatmul.mubr.f32.vlgmr.msra.gmra.mrb[0].mxu1 %v135_v29  ;;  %v375_v12 = vld [vmem:[#allocation5 + $0x580] sm:$0xff]  ;;  %v316_v19 = vld [vmem:[#allocation5 + $0x3a8] sm:$0xff]  ;;  %v381_v26 = vld [vmem:[#allocation5 + $0x5b0] sm:$0xff] }
  0xc4   :  { %4076 = vmatpush1.bf16.msra.mxu0 %v4075_v49  ;;  %4320 = vmatpush3.bf16.msra.mxu1 %v4319_v22  ;;  %v366_v49 = vld [vmem:[#allocation5 + $0x538] sm:$0xff]  ;;  %v327_v15 = vld [vmem:[#allocation5 + $0x400] sm:$0xff]  ;;  %v320_v20 = vld [vmem:[#allocation5 + $0x3c8] sm:$0xff] }
  0xc5   :  { %4078 = vmatprep.subr.bf16.mxu0 %v4077_v54  ;;  %1121 = vmatprep.mubr.f32.mxu1 %v144_v24  ;;  %v301_v54 = vld [vmem:[#allocation5 + $0x330] sm:$0xff]  ;;  %v4329_v59 = vpack.c.bf16 %v366_v49, %v363_v48  ;;  %v323_v21 = vld [vmem:[#allocation5 + $0x3e0] sm:$0xff]  ;;  %v176_v22 = vld [vmem:[#allocation3 + $0x148] sm:$0xff] }
  0xc6   :  { %4322 = vmatprep.subr.bf16.mxu1 %v4321_v25  ;;  %v4099_v0 = vpack.c.bf16 %v304_v55, %v301_v54  ;;  %v4339_v25 = vpack.c.bf16 %v330_v16, %v327_v15  ;;  %v384_v27 = vld [vmem:[#allocation5 + $0x5c8] sm:$0xff]  ;;  %v4109_v31 = vpack.c.bf16 %v323_v21, %v320_v20  ;;  %v319_v32 = vld [vmem:[#allocation5 + $0x3c0] sm:$0xff]  ;;  %v322_v33 = vld [vmem:[#allocation5 + $0x3d8] sm:$0xff] }
  0xc7   :  { %1122 = vmatmul.mubr.f32.gmra.mrb[2].mxu1 %v143_v34  ;;  %v336_v30 = vld [vmem:[#allocation5 + $0x448] sm:$0xff]  ;;  %v387_v40 = vld [vmem:[#allocation5 + $0x5e0] sm:$0xff]  ;;  %v4111_v42 = vpack.c.bf16 %v322_v33, %v319_v32  ;;  %v342_v44 = vld [vmem:[#allocation5 + $0x478] sm:$0xff] }
  0xc8   :  { %4080 = vmatpush1.bf16.msra.mxu0 %v4079_v61  ;;  %4324 = vmatpush3.bf16.msra.mxu1 %v4323_v35  ;;  %v4331_v61 = vpack.c.bf16 %v318_v52, %v315_v51  ;;  %v329_v35 = vld [vmem:[#allocation5 + $0x410] sm:$0xff]  ;;  %v339_v43 = vld [vmem:[#allocation5 + $0x460] sm:$0xff]  ;;  %v332_v48 = vld [vmem:[#allocation5 + $0x428] sm:$0xff] }
  0xc9   :  { %4082 = vmatprep.subr.bf16.mxu0 %v4081_v2  ;;  %1126 = vmatprep.mubr.f32.mxu1 %v152_v37  ;;  %v324_v2 = vld [vmem:[#allocation5 + $0x3e8] sm:$0xff]  ;;  %v335_v49 = vld [vmem:[#allocation5 + $0x440] sm:$0xff]  ;;  %v441_v54 = vld [vmem:[#allocation5 + $0x790] sm:$0xff] }
  0xca   :  { %4326 = vmatprep.subr.bf16.mxu1 %v4325_v38  ;;  %v4335_v11 = vpack.c.bf16 %v324_v2, %v321_v1  ;;  %v5537_v38 = vld [vmem:[#allocation3 + $0x180] sm:$0xff]  ;;  %v444_v55 = vld [vmem:[#allocation5 + $0x7a8] sm:$0xff]  ;;  %v393_v57 = vld [vmem:[#allocation5 + $0x610] sm:$0xff] }
  0xcb   :  { %1127 = vmatmul.mubr.f32.gmra.mrb[4].mxu1 %v151_v46  ;;  %v5541_v52 = vld [vmem:[#allocation3 + $0x1c0] sm:$0xff]  ;;  %v4349_v1 = vpack.c.bf16 %v444_v55, %v441_v54  ;;  %v5545_v2 = vld [vmem:[#allocation3 + $0x10] sm:$0xff]  ;;  %v358_v55 = vld [vmem:[#allocation5 + $0x4f8] sm:$0xff] }
  0xcc   :  { %4084 = vmatpush1.bf16.msra.mxu0 %v4083_v9  ;;  %4328 = vmatpush3.bf16.msra.mxu1 %v4327_v47  ;;  %v4333_v9 = vpack.c.bf16 %v372_v63, %v369_v62  ;;  %v328_v47 = vld [vmem:[#allocation5 + $0x408] sm:$0xff]  ;;  %v338_v62 = vld [vmem:[#allocation5 + $0x458] sm:$0xff]  ;;  %v341_v63 = vld [vmem:[#allocation5 + $0x470] sm:$0xff] }
  0xcd   :  { %4086 = vmatprep.subr.bf16.mxu0 %v4085_v14  ;;  %1131 = vmatprep.mubr.f32.mxu1 %v160_v58  ;;  %v4103_v14 = vpack.c.bf16 %v310_v5, %v307_v4  ;;  %v447_v4 = vld [vmem:[#allocation5 + $0x7c0] sm:$0xff]  ;;  %v450_v5 = vld [vmem:[#allocation5 + $0x7d8] sm:$0xff]  ;;  %v5551_v16 = vld [vmem:[#allocation3 + $0x50] sm:$0xff] }
  0xce   :  { %4330 = vmatprep.subr.bf16.mxu1 %v4329_v59  ;;  %v4117_v59 = vpack.c.bf16 %v335_v49, %v332_v48  ;;  %v399_v7 = vld [vmem:[#allocation5 + $0x640] sm:$0xff]  ;;  %v4353_v15 = vpack.c.bf16 %v450_v5, %v447_v4  ;;  %v349_v32 = vld [vmem:[#allocation5 + $0x4b0] sm:$0xff]  ;;  %v426_v4 = vld [vmem:[#allocation5 + $0x718] sm:$0xff] }
  0xcf   :  { %1132 = vmatmul.mubr.f32.gmra.mrb[6].mxu1 %v5527_v60  ;;  %v343_v21 = vld [vmem:[#allocation5 + $0x480] sm:$0xff]  ;;  %v5558_v33 = vld [vmem:[#allocation3 + $0x90] sm:$0xff] }
  0xd0   :  { %4088 = vmatpush1.bf16.msra.mxu0 %v4087_v23  ;;  %4332 = vmatpush3.bf16.msra.mxu1 %v4331_v61  ;;  %v4337_v23 = vpack.c.bf16 %v378_v13, %v375_v12  ;;  %v334_v61 = vld [vmem:[#allocation5 + $0x438] sm:$0xff]  ;;  %v344_v12 = vld [vmem:[#allocation5 + $0x488] sm:$0xff]  ;;  %v347_v13 = vld [vmem:[#allocation5 + $0x4a0] sm:$0xff] }
  0xd1   :  { %4090 = vmatprep.subr.bf16.mxu0 %v4089_v28  ;;  %1136 = vmatprep.mubr.f32.mxu1 %v168_v8  ;;  %v4107_v28 = vpack.c.bf16 %v316_v19, %v313_v18  ;;  %v453_v18 = vld [vmem:[#allocation5 + $0x7f0] sm:$0xff]  ;;  %v456_v19 = vld [vmem:[#allocation5 + $0x808] sm:$0xff] }
  0xd2   :  { %4334 = vmatprep.subr.bf16.mxu1 %v4333_v9  ;;  %v4121_v9 = vpack.c.bf16 %v341_v63, %v338_v62 }
  0xd3   :  { %1137 = vmatmul.mubr.f32.gmra.mrb[8].mxu1 %v5530_v10 }
  0xd4   :  { %4092 = vmatpush1.bf16.msra.mxu0 %v4091_v36  ;;  %4336 = vmatpush3.bf16.msra.mxu1 %v4335_v11  ;;  %v184_v36 = vld [vmem:[#allocation3 + $0x188] sm:$0xff] }
  0xd5   :  { %4094 = vmatprep.subr.bf16.mxu0 %v4093_v41  ;;  %1141 = vmatprep.mubr.f32.mxu1 %v176_v22  ;;  %v390_v41 = vld [vmem:[#allocation5 + $0x5f8] sm:$0xff]  ;;  %v340_v11 = vld [vmem:[#allocation5 + $0x468] sm:$0xff] }
  0xd6   :  { %4338 = vmatprep.subr.bf16.mxu1 %v4337_v23  ;;  %v4345_v51 = vpack.c.bf16 %v390_v41, %v387_v40  ;;  %v408_v23 = vld [vmem:[#allocation5 + $0x688] sm:$0xff] }
  0xd7   :  { %665 = vmatmul.mubr.f32.vlgmr.msra.gmra.mrb[0].mxu0 %v135_v29  ;;  %v333_v29 = vld [vmem:[#allocation5 + $0x430] sm:$0xff]  ;;  %v352_v41 = vld [vmem:[#allocation5 + $0x4c8] sm:$0xff] }
  0xd8   :  { %4096 = vmatpush1.bf16.msra.mxu0 %v4095_v50  ;;  %670 = vmatprep.mubr.f32.mxu0 %v144_v24  ;;  %v5533_v24 = vld [vmem:[#allocation3 + $0x140] sm:$0xff]  ;;  %v4343_v39 = vpack.c.bf16 %v336_v30, %v333_v29  ;;  %v192_v50 = vld [vmem:[#allocation3 + $0x1c8] sm:$0xff]  ;;  %v353_v29 = vld [vmem:[#allocation5 + $0x4d0] sm:$0xff]  ;;  %v4131_v49 = vpack.c.bf16 %v352_v41, %v349_v32 }
  0xd9   :  { %4098 = vmatprep.subr.bf16.mxu0 %v4097_v53  ;;  %1142 = vmatmul.mubr.f32.gmra.mrb[10].mxu1 %v5533_v24  ;;  %v4347_v53 = vpack.c.bf16 %v342_v44, %v339_v43  ;;  %v5555_v30 = vld [vmem:[#allocation3 + $0x98] sm:$0xff]  ;;  %v468_v43 = vld [vmem:[#allocation5 + $0x868] sm:$0xff] }
  0xda   :  { %4340 = vmatpush3.bf16.msra.mxu1 %v4339_v25  ;;  %1146 = vmatprep.mubr.f32.mxu1 %v184_v36  ;;  %v346_v25 = vld [vmem:[#allocation5 + $0x498] sm:$0xff]  ;;  %v356_v44 = vld [vmem:[#allocation5 + $0x4e8] sm:$0xff] }
  0xdb   :  { %671 = vmatmul.mubr.f32.gmra.mrb[2].mxu0 %v143_v34  ;;  %v326_v34 = vld [vmem:[#allocation5 + $0x3f8] sm:$0xff]  ;;  %v540_v41 = vld [vmem:[#allocation5 + $0xaa8] sm:$0xff] }
  0xdc   :  { %4100 = vmatpush1.bf16.msra.mxu0 %v4099_v0  ;;  %676 = vmatprep.mubr.f32.mxu0 %v152_v37  ;;  %v4341_v37 = vpack.c.bf16 %v384_v27, %v381_v26  ;;  %v4113_v45 = vpack.c.bf16 %v329_v35, %v326_v34  ;;  %v138_v0 = vld [vmem:[#allocation3 + $0x18] sm:$0xff]  ;;  %v459_v26 = vld [vmem:[#allocation5 + $0x820] sm:$0xff]  ;;  %v4127_v35 = vpack.c.bf16 %v346_v25, %v343_v21 }
  0xdd   :  { %4102 = vmatprep.subr.bf16.mxu0 %v4101_v3  ;;  %1147 = vmatmul.mubr.f32.gmra.mrb[12].mxu1 %v5537_v38  ;;  %v462_v27 = vld [vmem:[#allocation5 + $0x838] sm:$0xff] }
  0xde   :  { %4342 = vmatprep.subr.bf16.mxu1 %v4341_v37  ;;  %1151 = vmatprep.mubr.f32.mxu1 %v192_v50  ;;  %v4361_v37 = vpack.c.bf16 %v462_v27, %v459_v26  ;;  %v374_v25 = vld [vmem:[#allocation5 + $0x578] sm:$0xff]  ;;  %v377_v26 = vld [vmem:[#allocation5 + $0x590] sm:$0xff] }
  0xdf   :  { %677 = vmatmul.mubr.f32.gmra.mrb[4].mxu0 %v151_v46  ;;  %v325_v46 = vld [vmem:[#allocation5 + $0x3f0] sm:$0xff]  ;;  %4344 = vmatpush3.bf16.msra.mxu1 %v4343_v39  ;;  %v414_v39 = vld [vmem:[#allocation5 + $0x6b8] sm:$0xff] }
  0xe0   :  { %4104 = vmatpush1.bf16.msra.mxu0 %v4103_v14  ;;  %682 = vmatprep.mubr.f32.mxu0 %v160_v58  ;;  %v4115_v56 = vpack.c.bf16 %v328_v47, %v325_v46  ;;  %v396_v58 = vld [vmem:[#allocation5 + $0x628] sm:$0xff]  ;;  %v5548_v14 = vld [vmem:[#allocation3 + $0x58] sm:$0xff]  ;;  %v355_v46 = vld [vmem:[#allocation5 + $0x4e0] sm:$0xff] }
  0xe1   :  { %4106 = vmatprep.subr.bf16.mxu0 %v4105_v17  ;;  %1152 = vmatmul.mubr.f32.gmra.mrb[14].mxu1 %v5541_v52  ;;  %v4351_v3 = vpack.c.bf16 %v396_v58, %v393_v57  ;;  %v5565_v47 = vld [vmem:[#allocation3 + $0xd0] sm:$0xff]  ;;  %v474_v57 = vld [vmem:[#allocation5 + $0x898] sm:$0xff]  ;;  %v4135_v63 = vpack.c.bf16 %v358_v55, %v355_v46 }
  0xe2   :  { %4346 = vmatprep.subr.bf16.mxu1 %v4345_v51  ;;  %1221 = vmatprep.mubr.f32.mxu1 %v138_v0  ;;  %v362_v58 = vld [vmem:[#allocation5 + $0x518] sm:$0xff]  ;;  %v373_v27 = vld [vmem:[#allocation5 + $0x570] sm:$0xff] }
  0xe3   :  { %683 = vmatmul.mubr.f32.gmra.mrb[6].mxu0 %v5527_v60  ;;  %v331_v60 = vld [vmem:[#allocation5 + $0x420] sm:$0xff]  ;;  %4348 = vmatpush3.bf16.msra.mxu1 %v4347_v53  ;;  %v420_v53 = vld [vmem:[#allocation5 + $0x6e8] sm:$0xff]  ;;  %v5585_v32 = vld [vmem:[#allocation3 + $0x1d8] sm:$0xff] }
  0xe4   :  { %4108 = vmatpush1.bf16.msra.mxu0 %v4107_v28  ;;  %688 = vmatprep.mubr.f32.mxu0 %v168_v8  ;;  %v4119_v6 = vpack.c.bf16 %v334_v61, %v331_v60  ;;  %v402_v8 = vld [vmem:[#allocation5 + $0x658] sm:$0xff]  ;;  %v361_v60 = vld [vmem:[#allocation5 + $0x510] sm:$0xff] }
  0xe5   :  { %4110 = vmatprep.subr.bf16.mxu0 %v4109_v31  ;;  %4350 = vmatprep.subr.bf16.mxu1 %v4349_v1  ;;  %v4355_v17 = vpack.c.bf16 %v402_v8, %v399_v7  ;;  %v350_v28 = vld [vmem:[#allocation5 + $0x4b8] sm:$0xff]  ;;  %v4357_v31 = vpack.c.bf16 %v456_v19, %v453_v18  ;;  %v5571_v61 = vld [vmem:[#allocation3 + $0x110] sm:$0xff]  ;;  %v480_v8 = vld [vmem:[#allocation5 + $0x8c8] sm:$0xff] }
  0xe6   :  { %1222 = vmatmul.mubr.f32.vlgmr.msra.gmra.mrb[16].mxu1 %v5545_v2  ;;  %v4129_v40 = vpack.c.bf16 %v353_v29, %v350_v28  ;;  %v477_v7 = vld [vmem:[#allocation5 + $0x8b0] sm:$0xff]  ;;  %v382_v55 = vld [vmem:[#allocation5 + $0x5b8] sm:$0xff] }
  0xe7   :  { %689 = vmatmul.mubr.f32.gmra.mrb[8].mxu0 %v5530_v10  ;;  %v337_v10 = vld [vmem:[#allocation5 + $0x450] sm:$0xff]  ;;  %4352 = vmatpush3.bf16.msra.mxu1 %v4351_v3  ;;  %v423_v3 = vld [vmem:[#allocation5 + $0x700] sm:$0xff]  ;;  %v4373_v18 = vpack.c.bf16 %v480_v8, %v477_v7  ;;  %v388_v8 = vld [vmem:[#allocation5 + $0x5e8] sm:$0xff] }
  0xe8   :  { %4112 = vmatpush1.bf16.msra.mxu0 %v4111_v42  ;;  %694 = vmatprep.mubr.f32.mxu0 %v176_v22  ;;  %v4123_v20 = vpack.c.bf16 %v340_v11, %v337_v10  ;;  %v405_v22 = vld [vmem:[#allocation5 + $0x670] sm:$0xff]  ;;  %v371_v10 = vld [vmem:[#allocation5 + $0x560] sm:$0xff] }
  0xe9   :  { %4114 = vmatprep.subr.bf16.mxu0 %v4113_v45  ;;  %1226 = vmatprep.mubr.f32.mxu1 %v5548_v14  ;;  %v4359_v34 = vpack.c.bf16 %v408_v23, %v405_v22  ;;  %v465_v42 = vld [vmem:[#allocation5 + $0x850] sm:$0xff]  ;;  %v359_v45 = vld [vmem:[#allocation5 + $0x500] sm:$0xff]  ;;  %v370_v22 = vld [vmem:[#allocation5 + $0x558] sm:$0xff] }
  0xea   :  { %1227 = vmatmul.mubr.f32.gmra.mrb[18].mxu1 %v5551_v16  ;;  %4354 = vmatprep.subr.bf16.mxu1 %v4353_v15  ;;  %v4365_v51 = vpack.c.bf16 %v468_v43, %v465_v42  ;;  %v4133_v54 = vpack.c.bf16 %v359_v45, %v356_v44  ;;  %v367_v11 = vld [vmem:[#allocation5 + $0x540] sm:$0xff]  ;;  %v429_v19 = vld [vmem:[#allocation5 + $0x730] sm:$0xff]  ;;  %v380_v42 = vld [vmem:[#allocation5 + $0x5a8] sm:$0xff] }
  0xeb   :  { %695 = vmatmul.mubr.f32.gmra.mrb[10].mxu0 %v5533_v24  ;;  %v4125_v24 = vpack.c.bf16 %v347_v13, %v344_v12  ;;  %4356 = vmatpush3.bf16.msra.mxu1 %v4355_v17  ;;  %v5577_v12 = vld [vmem:[#allocation3 + $0x150] sm:$0xff]  ;;  %v4371_v13 = vpack.c.bf16 %v426_v4, %v423_v3  ;;  %v5579_v17 = vld [vmem:[#allocation3 + $0x198] sm:$0xff]  ;;  %v483_v23 = vld [vmem:[#allocation5 + $0x8e0] sm:$0xff] }
  0xec   :  { %4116 = vmatpush1.bf16.msra.mxu0 %v4115_v56  ;;  %700 = vmatprep.mubr.f32.mxu0 %v184_v36  ;;  %v5560_v36 = vld [vmem:[#allocation3 + $0xd8] sm:$0xff]  ;;  %v471_v56 = vld [vmem:[#allocation5 + $0x880] sm:$0xff]  ;;  %v5583_v28 = vld [vmem:[#allocation3 + $0x190] sm:$0xff] }
  0xed   :  { %4118 = vmatprep.subr.bf16.mxu0 %v4117_v59  ;;  %1231 = vmatprep.mubr.f32.mxu1 %v5555_v30  ;;  %v365_v59 = vld [vmem:[#allocation5 + $0x530] sm:$0xff]  ;;  %v4369_v1 = vpack.c.bf16 %v474_v57, %v471_v56  ;;  %v383_v43 = vld [vmem:[#allocation5 + $0x5c0] sm:$0xff]  ;;  %v546_v57 = vld [vmem:[#allocation5 + $0xad8] sm:$0xff] }
  0xee   :  { %1232 = vmatmul.mubr.f32.gmra.mrb[20].mxu1 %v5558_v33  ;;  %4358 = vmatprep.subr.bf16.mxu1 %v4357_v31  ;;  %v4137_v5 = vpack.c.bf16 %v365_v59, %v362_v58  ;;  %v4143_v31 = vpack.c.bf16 %v370_v22, %v367_v11  ;;  %v379_v44 = vld [vmem:[#allocation5 + $0x5a0] sm:$0xff]  ;;  %v5589_v45 = vld [vmem:[#allocation3 + $0x1d0] sm:$0xff]  ;;  %v386_v58 = vld [vmem:[#allocation5 + $0x5d8] sm:$0xff] }
  0xef   :  { %701 = vmatmul.mubr.f32.gmra.mrb[12].mxu0 %v5537_v38  ;;  %v411_v38 = vld [vmem:[#allocation5 + $0x6a0] sm:$0xff]  ;;  %4360 = vmatpush3.bf16.msra.mxu1 %v4359_v34  ;;  %v389_v59 = vld [vmem:[#allocation5 + $0x5f0] sm:$0xff]  ;;  %v5597_v3 = vld [vmem:[#allocation3 + $0x68] sm:$0xff] }
  0xf0   :  { %4120 = vmatpush1.bf16.msra.mxu0 %v4119_v6  ;;  %706 = vmatprep.mubr.f32.mxu0 %v192_v50  ;;  %v4363_v48 = vpack.c.bf16 %v414_v39, %v411_v38  ;;  %v5567_v50 = vld [vmem:[#allocation3 + $0x118] sm:$0xff]  ;;  %v364_v6 = vld [vmem:[#allocation5 + $0x528] sm:$0xff]  ;;  %v4145_v38 = vpack.c.bf16 %v377_v26, %v374_v25  ;;  %v543_v56 = vld [vmem:[#allocation5 + $0xac0] sm:$0xff]  ;;  %v4153_v7 = vpack.c.bf16 %v389_v59, %v386_v58 }
  0xf1   :  { %4122 = vmatprep.subr.bf16.mxu0 %v4121_v9  ;;  %1236 = vmatprep.mubr.f32.mxu1 %v5560_v36  ;;  %v368_v9 = vld [vmem:[#allocation5 + $0x548] sm:$0xff]  ;;  %v4139_v15 = vpack.c.bf16 %v364_v6, %v361_v60  ;;  %v385_v60 = vld [vmem:[#allocation5 + $0x5d0] sm:$0xff]  ;;  %v4385_v4 = vpack.c.bf16 %v546_v57, %v543_v56  ;;  %v498_v6 = vld [vmem:[#allocation5 + $0x958] sm:$0xff] }
  0xf2   :  { %4362 = vmatprep.subr.bf16.mxu1 %v4361_v37  ;;  %1237 = vmatmul.mubr.f32.gmra.mrb[22].mxu1 %v5565_v47  ;;  %v4141_v21 = vpack.c.bf16 %v371_v10, %v368_v9  ;;  %v438_v37 = vld [vmem:[#allocation5 + $0x778] sm:$0xff]  ;;  %v376_v39 = vld [vmem:[#allocation5 + $0x588] sm:$0xff]  ;;  %v549_v9 = vld [vmem:[#allocation5 + $0xaf0] sm:$0xff] }
  0xf3   :  { %707 = vmatmul.mubr.f32.gmra.mrb[14].mxu0 %v5541_v52  ;;  %v417_v52 = vld [vmem:[#allocation5 + $0x6d0] sm:$0xff]  ;;  %4364 = vmatpush3.bf16.msra.mxu1 %v4363_v48  ;;  %v4147_v48 = vpack.c.bf16 %v376_v39, %v373_v27  ;;  %v552_v10 = vld [vmem:[#allocation5 + $0xb08] sm:$0xff]  ;;  %v391_v25 = vld [vmem:[#allocation5 + $0x600] sm:$0xff] }
  0xf4   :  { %4124 = vmatpush1.bf16.msra.mxu0 %v4123_v20  ;;  %777 = vmatprep.mubr.f32.mxu0 %v138_v0  ;;  %v4367_v62 = vpack.c.bf16 %v420_v53, %v417_v52  ;;  %v5573_v0 = vld [vmem:[#allocation3 + $0x158] sm:$0xff]  ;;  %v432_v20 = vld [vmem:[#allocation5 + $0x748] sm:$0xff]  ;;  %v489_v52 = vld [vmem:[#allocation5 + $0x910] sm:$0xff] }
  0xf5   :  { %4126 = vmatprep.subr.bf16.mxu0 %v4125_v24  ;;  %1241 = vmatprep.mubr.f32.mxu1 %v5567_v50  ;;  %v486_v24 = vld [vmem:[#allocation5 + $0x8f8] sm:$0xff]  ;;  %v4375_v29 = vpack.c.bf16 %v432_v20, %v429_v19  ;;  %v492_v53 = vld [vmem:[#allocation5 + $0x928] sm:$0xff]  ;;  %v4155_v19 = vpack.c.bf16 %v388_v8, %v385_v60  ;;  %v501_v22 = vld [vmem:[#allocation5 + $0x970] sm:$0xff] }
  0xf6   :  { %4366 = vmatprep.subr.bf16.mxu1 %v4365_v51  ;;  %1242 = vmatmul.mubr.f32.gmra.mrb[24].mxu1 %v5571_v61  ;;  %v4377_v34 = vpack.c.bf16 %v486_v24, %v483_v23  ;;  %v392_v11 = vld [vmem:[#allocation5 + $0x608] sm:$0xff]  ;;  %v394_v26 = vld [vmem:[#allocation5 + $0x618] sm:$0xff]  ;;  %v507_v39 = vld [vmem:[#allocation5 + $0x9a0] sm:$0xff] }
  0xf7   :  { %4368 = vmatpush3.bf16.msra.mxu1 %v4367_v62  ;;  %1246 = vmatprep.mubr.f32.mxu1 %v5573_v0  ;;  %v5595_v62 = vld [vmem:[#allocation3 + $0x20] sm:$0xff]  ;;  %v5603_v20 = vld [vmem:[#allocation3 + $0xa8] sm:$0xff]  ;;  %v398_v27 = vld [vmem:[#allocation5 + $0x638] sm:$0xff] }
  0xf8   :  { %4128 = vmatpush1.bf16.msra.mxu0 %v4127_v35  ;;  %4370 = vmatprep.subr.bf16.mxu1 %v4369_v1  ;;  %v435_v35 = vld [vmem:[#allocation5 + $0x760] sm:$0xff]  ;;  %v4151_v1 = vpack.c.bf16 %v382_v55, %v379_v44  ;;  %v504_v23 = vld [vmem:[#allocation5 + $0x988] sm:$0xff]  ;;  %v513_v57 = vld [vmem:[#allocation5 + $0x9d0] sm:$0xff] }
  0xf9   :  { %4130 = vmatprep.subr.bf16.mxu0 %v4129_v40  ;;  %v537_v40 = vld [vmem:[#allocation5 + $0xa90] sm:$0xff]  ;;  %v4379_v46 = vpack.c.bf16 %v438_v37, %v435_v35  ;;  %v555_v35 = vld [vmem:[#allocation5 + $0xb20] sm:$0xff]  ;;  %v558_v37 = vld [vmem:[#allocation5 + $0xb38] sm:$0xff] }
  0xfa   :  { %1247 = vmatmul.mubr.f32.gmra.mrb[26].mxu1 %v5577_v12  ;;  %v4381_v51 = vpack.c.bf16 %v540_v41, %v537_v40  ;;  %v510_v40 = vld [vmem:[#allocation5 + $0x9b8] sm:$0xff]  ;;  %v404_v44 = vld [vmem:[#allocation5 + $0x668] sm:$0xff]  ;;  %v403_v60 = vld [vmem:[#allocation5 + $0x660] sm:$0xff] }
  0xfb   :  { %4372 = vmatpush3.bf16.msra.mxu1 %v4371_v13  ;;  %1251 = vmatprep.mubr.f32.mxu1 %v5579_v17  ;;  %v395_v13 = vld [vmem:[#allocation5 + $0x620] sm:$0xff]  ;;  %v564_v55 = vld [vmem:[#allocation5 + $0xb68] sm:$0xff]  ;;  %v570_v8 = vld [vmem:[#allocation5 + $0xb98] sm:$0xff] }
  0xfc   :  { %4132 = vmatpush1.bf16.msra.mxu0 %v4131_v49  ;;  %4374 = vmatprep.subr.bf16.mxu1 %v4373_v18  ;;  %v5591_v49 = vld [vmem:[#allocation3 + $0x28] sm:$0xff]  ;;  %v4157_v24 = vpack.c.bf16 %v395_v13, %v392_v11  ;;  %v522_v11 = vld [vmem:[#allocation5 + $0xa18] sm:$0xff] }
  0xfd   :  { %4134 = vmatprep.subr.bf16.mxu0 %v4133_v54  ;;  %v4149_v54 = vpack.c.bf16 %v383_v43, %v380_v42  ;;  %v397_v42 = vld [vmem:[#allocation5 + $0x630] sm:$0xff]  ;;  %v400_v43 = vld [vmem:[#allocation5 + $0x648] sm:$0xff] }
  0xfe   :  { %1252 = vmatmul.mubr.f32.gmra.mrb[28].mxu1 %v5583_v28  ;;  %v4163_v56 = vpack.c.bf16 %v400_v43, %v397_v42  ;;  %v516_v58 = vld [vmem:[#allocation5 + $0x9e8] sm:$0xff]  ;;  %v579_v43 = vld [vmem:[#allocation5 + $0xbe0] sm:$0xff] }
  0xff   :  { %4376 = vmatpush3.bf16.msra.mxu1 %v4375_v29  ;;  %1256 = vmatprep.mubr.f32.mxu1 %v5585_v32  ;;  %v401_v29 = vld [vmem:[#allocation5 + $0x650] sm:$0xff] }
 0x100   :  { %4136 = vmatpush1.bf16.msra.mxu0 %v4135_v63  ;;  %4378 = vmatprep.subr.bf16.mxu1 %v4377_v34  ;;  %v4383_v63 = vpack.c.bf16 %v492_v53, %v489_v52  ;;  %v4391_v34 = vpack.c.bf16 %v504_v23, %v501_v22  ;;  %v4161_v41 = vpack.c.bf16 %v401_v29, %v398_v27  ;;  %v5613_v52 = vld [vmem:[#allocation3 + $0xe0] sm:$0xff]  ;;  %v5626_v22 = vld [vmem:[#allocation3 + $0x168] sm:$0xff]  ;;  %v525_v29 = vld [vmem:[#allocation5 + $0xa30] sm:$0xff] }
 0x101   :  { %4138 = vmatprep.subr.bf16.mxu0 %v4137_v5  ;;  %v495_v5 = vld [vmem:[#allocation5 + $0x940] sm:$0xff]  ;;  %v4395_v53 = vpack.c.bf16 %v510_v40, %v507_v39  ;;  %v422_v39 = vld [vmem:[#allocation5 + $0x6f8] sm:$0xff]  ;;  %v5634_v40 = vld [vmem:[#allocation3 + $0x1a8] sm:$0xff] }
 0x102   :  { %1257 = vmatmul.mubr.f32.gmra.mrb[30].mxu1 %v5589_v45  ;;  %v4387_v18 = vpack.c.bf16 %v498_v6, %v495_v5  ;;  %v4399_v6 = vpack.c.bf16 %v516_v58, %v513_v57  ;;  %v428_v57 = vld [vmem:[#allocation5 + $0x728] sm:$0xff] }
 0x103   :  { %4380 = vmatpush3.bf16.msra.mxu1 %v4379_v46  ;;  %1326 = vmatprep.mubr.f32.mxu1 %v5591_v49  ;;  %v407_v46 = vld [vmem:[#allocation5 + $0x680] sm:$0xff]  ;;  %v5642_v58 = vld [vmem:[#allocation3 + $0x1e8] sm:$0xff] }
 0x104   :  { %4140 = vmatpush1.bf16.msra.mxu0 %v4139_v15  ;;  %4382 = vmatprep.subr.bf16.mxu1 %v4381_v51  ;;  %v5601_v15 = vld [vmem:[#allocation3 + $0x60] sm:$0xff]  ;;  %v4393_v51 = vpack.c.bf16 %v558_v37, %v555_v35  ;;  %v4165_v59 = vpack.c.bf16 %v407_v46, %v404_v44  ;;  %v582_v44 = vld [vmem:[#allocation5 + $0xbf8] sm:$0xff] }
 0x105   :  { %4142 = vmatprep.subr.bf16.mxu0 %v4141_v21  ;;  %v4389_v21 = vpack.c.bf16 %v552_v10, %v549_v9  ;;  %v519_v10 = vld [vmem:[#allocation5 + $0xa00] sm:$0xff] }
 0x106   :  { %1327 = vmatmul.mubr.f32.vlgmr.msra.gmra.mrb[32].mxu1 %v5595_v62  ;;  %v415_v37 = vld [vmem:[#allocation5 + $0x6c0] sm:$0xff] }
 0x107   :  { %4384 = vmatpush3.bf16.msra.mxu1 %v4383_v63  ;;  %1331 = vmatprep.mubr.f32.mxu1 %v5597_v3  ;;  %v406_v63 = vld [vmem:[#allocation5 + $0x678] sm:$0xff] }
 0x108   :  { %4144 = vmatpush1.bf16.msra.mxu0 %v4143_v31  ;;  %4386 = vmatprep.subr.bf16.mxu1 %v4385_v4  ;;  %v5607_v31 = vld [vmem:[#allocation3 + $0xa0] sm:$0xff]  ;;  %v5618_v4 = vld [vmem:[#allocation3 + $0x128] sm:$0xff]  ;;  %v4167_v9 = vpack.c.bf16 %v406_v63, %v403_v60 }
 0x109   :  { %4146 = vmatprep.subr.bf16.mxu0 %v4145_v38  ;;  %v4159_v38 = vpack.c.bf16 %v394_v26, %v391_v25  ;;  %v573_v25 = vld [vmem:[#allocation5 + $0xbb0] sm:$0xff]  ;;  %v576_v26 = vld [vmem:[#allocation5 + $0xbc8] sm:$0xff] }
 0x10a   :  { %1332 = vmatmul.mubr.f32.gmra.mrb[34].mxu1 %v5601_v15 }
 0x10b   :  { %4388 = vmatpush3.bf16.msra.mxu1 %v4387_v18  ;;  %1336 = vmatprep.mubr.f32.mxu1 %v5603_v20  ;;  %v409_v18 = vld [vmem:[#allocation5 + $0x690] sm:$0xff] }
 0x10c   :  { %4148 = vmatpush1.bf16.msra.mxu0 %v4147_v48  ;;  %4390 = vmatprep.subr.bf16.mxu1 %v4389_v21  ;;  %v5610_v48 = vld [vmem:[#allocation3 + $0xe8] sm:$0xff] }
 0x10d   :  { %4150 = vmatprep.subr.bf16.mxu0 %v4149_v54  ;;  %v561_v54 = vld [vmem:[#allocation5 + $0xb50] sm:$0xff]  ;;  %v416_v21 = vld [vmem:[#allocation5 + $0x6c8] sm:$0xff] }
 0x10e   :  { %1337 = vmatmul.mubr.f32.gmra.mrb[36].mxu1 %v5607_v31  ;;  %v4397_v5 = vpack.c.bf16 %v564_v55, %v561_v54  ;;  %v421_v55 = vld [vmem:[#allocation5 + $0x6f0] sm:$0xff] }
 0x10f   :  { %4392 = vmatpush3.bf16.msra.mxu1 %v4391_v34  ;;  %1341 = vmatprep.mubr.f32.mxu1 %v5610_v48  ;;  %v528_v34 = vld [vmem:[#allocation5 + $0xa48] sm:$0xff] }
 0x110   :  { %4152 = vmatpush1.bf16.msra.mxu0 %v4151_v1  ;;  %v410_v1 = vld [vmem:[#allocation5 + $0x698] sm:$0xff]  ;;  %4394 = vmatprep.subr.bf16.mxu1 %v4393_v51  ;;  %v4407_v42 = vpack.c.bf16 %v528_v34, %v525_v29  ;;  %v531_v51 = vld [vmem:[#allocation5 + $0xa60] sm:$0xff]  ;;  %v5671_v29 = vld [vmem:[#allocation3 + $0xb0] sm:$0xff] }
 0x111   :  { %4154 = vmatprep.subr.bf16.mxu0 %v4153_v7  ;;  %v567_v7 = vld [vmem:[#allocation5 + $0xb80] sm:$0xff] }
 0x112   :  { %1342 = vmatmul.mubr.f32.gmra.mrb[38].mxu1 %v5613_v52  ;;  %v4401_v23 = vpack.c.bf16 %v570_v8, %v567_v7  ;;  %v437_v7 = vld [vmem:[#allocation5 + $0x770] sm:$0xff] }
 0x113   :  { %4396 = vmatpush3.bf16.msra.mxu1 %v4395_v53  ;;  %1346 = vmatprep.mubr.f32.mxu1 %v5618_v4  ;;  %v534_v53 = vld [vmem:[#allocation5 + $0xa78] sm:$0xff]  ;;  %v5653_v8 = vld [vmem:[#allocation3 + $0x30] sm:$0xff] }
 0x114   :  { %4156 = vmatpush1.bf16.msra.mxu0 %v4155_v19  ;;  %v412_v19 = vld [vmem:[#allocation5 + $0x6a8] sm:$0xff]  ;;  %4398 = vmatprep.subr.bf16.mxu1 %v4397_v5  ;;  %v4411_v60 = vpack.c.bf16 %v534_v53, %v531_v51  ;;  %v430_v5 = vld [vmem:[#allocation5 + $0x738] sm:$0xff]  ;;  %v1493_v53 = vld [vmem:[#allocation7 + $0x70] sm:$0xff] }
 0x115   :  { %4158 = vmatprep.subr.bf16.mxu0 %v4157_v24  ;;  %v4403_v24 = vpack.c.bf16 %v522_v11, %v519_v10  ;;  %v4171_v27 = vpack.c.bf16 %v412_v19, %v409_v18  ;;  %v433_v11 = vld [vmem:[#allocation5 + $0x750] sm:$0xff]  ;;  %v440_v18 = vld [vmem:[#allocation5 + $0x788] sm:$0xff]  ;;  %v443_v19 = vld [vmem:[#allocation5 + $0x7a0] sm:$0xff] }
 0x116   :  { %v5685_v51 = vld [vmem:[#allocation3 + $0x138] sm:$0xff] }
 0x117   :  { %778 = vmatmul.mubr.f32.vlgmr.msra.gmra.mrb[0].mxu0 %v5545_v2  ;;  %v413_v2 = vld [vmem:[#allocation5 + $0x6b0] sm:$0xff]  ;;  %4400 = vmatpush3.bf16.msra.mxu1 %v4399_v6  ;;  %v434_v6 = vld [vmem:[#allocation5 + $0x758] sm:$0xff] }
 0x118   :  { %4160 = vmatpush1.bf16.msra.mxu0 %v4159_v38  ;;  %783 = vmatprep.mubr.f32.mxu0 %v5548_v14  ;;  %v5621_v14 = vld [vmem:[#allocation3 + $0x120] sm:$0xff]  ;;  %v4169_v13 = vpack.c.bf16 %v413_v2, %v410_v1  ;;  %v418_v38 = vld [vmem:[#allocation5 + $0x6d8] sm:$0xff]  ;;  %v4185_v10 = vpack.c.bf16 %v437_v7, %v434_v6 }
 0x119   :  { %4162 = vmatprep.subr.bf16.mxu0 %v4161_v41  ;;  %1347 = vmatmul.mubr.f32.gmra.mrb[40].mxu1 %v5621_v14  ;;  %v4405_v41 = vpack.c.bf16 %v576_v26, %v573_v25  ;;  %v4175_v46 = vpack.c.bf16 %v418_v38, %v415_v37  ;;  %v427_v2 = vld [vmem:[#allocation5 + $0x720] sm:$0xff]  ;;  %v5362_v25 = vmov 0.0|0.0   ;;  %v446_v26 = vld [vmem:[#allocation5 + $0x7b8] sm:$0xff] }
 0x11a   :  { %1351 = vmatprep.mubr.f32.mxu1 %v5626_v22  ;;  %4402 = vmatprep.subr.bf16.mxu1 %v4401_v23  ;;  %v439_v23 = vld [vmem:[#allocation5 + $0x780] sm:$0xff]  ;;  %v1502_v6 = vld [vmem:[#allocation7 + $0xb8] sm:$0xff] }
 0x11b   :  { %784 = vmatmul.mubr.f32.gmra.mrb[2].mxu0 %v5551_v16  ;;  %v419_v16 = vld [vmem:[#allocation5 + $0x6e0] sm:$0xff]  ;;  %4404 = vmatpush3.bf16.msra.mxu1 %v4403_v24  ;;  %v442_v24 = vld [vmem:[#allocation5 + $0x798] sm:$0xff] }
 0x11c   :  { %4164 = vmatpush1.bf16.msra.mxu0 %v4163_v56  ;;  %789 = vmatprep.mubr.f32.mxu0 %v5555_v30  ;;  %v5629_v30 = vld [vmem:[#allocation3 + $0x160] sm:$0xff]  ;;  %v4173_v35 = vpack.c.bf16 %v419_v16, %v416_v21  ;;  %v424_v56 = vld [vmem:[#allocation5 + $0x708] sm:$0xff]  ;;  %v5665_v21 = vld [vmem:[#allocation3 + $0xb8] sm:$0xff]  ;;  %v4189_v16 = vpack.c.bf16 %v443_v19, %v440_v18  ;;  %v4191_v34 = vpack.c.bf16 %v442_v24, %v439_v23 }
 0x11d   :  { %4166 = vmatprep.subr.bf16.mxu0 %v4165_v59  ;;  %1352 = vmatmul.mubr.f32.gmra.mrb[42].mxu1 %v5629_v30  ;;  %v4409_v59 = vpack.c.bf16 %v582_v44, %v579_v43  ;;  %v4179_v63 = vpack.c.bf16 %v424_v56, %v421_v55  ;;  %v1487_v38 = vld [vmem:[#allocation7 + $0x40] sm:$0xff]  ;;  %v5680_v44 = vld [vmem:[#allocation3 + $0xf0] sm:$0xff]  ;;  %v1508_v24 = vld [vmem:[#allocation7 + $0xe8] sm:$0xff] }
 0x11e   :  { %1356 = vmatprep.mubr.f32.mxu1 %v5634_v40  ;;  %4406 = vmatprep.subr.bf16.mxu1 %v4405_v41  ;;  %v448_v41 = vld [vmem:[#allocation5 + $0x7c8] sm:$0xff]  ;;  %v455_v43 = vld [vmem:[#allocation5 + $0x800] sm:$0xff]  ;;  %v5700_v18 = vld [vmem:[#allocation3 + $0x170] sm:$0xff] }
 0x11f   :  { %790 = vmatmul.mubr.f32.gmra.mrb[4].mxu0 %v5558_v33  ;;  %v425_v33 = vld [vmem:[#allocation5 + $0x710] sm:$0xff]  ;;  %4408 = vmatpush3.bf16.msra.mxu1 %v4407_v42  ;;  %v1490_v42 = vld [vmem:[#allocation7 + $0x58] sm:$0xff]  ;;  %v451_v56 = vld [vmem:[#allocation5 + $0x7e0] sm:$0xff] }
 0x120   :  { %4168 = vmatpush1.bf16.msra.mxu0 %v4167_v9  ;;  %795 = vmatprep.mubr.f32.mxu0 %v5560_v36  ;;  %v5637_v36 = vld [vmem:[#allocation3 + $0x1a0] sm:$0xff]  ;;  %v4177_v54 = vpack.c.bf16 %v425_v33, %v422_v39  ;;  %v5656_v9 = vld [vmem:[#allocation3 + $0x78] sm:$0xff]  ;;  %v445_v33 = vld [vmem:[#allocation5 + $0x7b0] sm:$0xff] }
 0x121   :  { %4170 = vmatprep.subr.bf16.mxu0 %v4169_v13  ;;  %1357 = vmatmul.mubr.f32.gmra.mrb[44].mxu1 %v5637_v36  ;;  %v436_v13 = vld [vmem:[#allocation5 + $0x768] sm:$0xff]  ;;  %v1505_v23 = vld [vmem:[#allocation7 + $0xd0] sm:$0xff] }
 0x122   :  { %1361 = vmatprep.mubr.f32.mxu1 %v5642_v58  ;;  %4410 = vmatprep.subr.bf16.mxu1 %v4409_v59  ;;  %v461_v59 = vld [vmem:[#allocation5 + $0x830] sm:$0xff] }
 0x123   :  { %796 = vmatmul.mubr.f32.gmra.mrb[6].mxu0 %v5565_v47  ;;  %v431_v47 = vld [vmem:[#allocation5 + $0x740] sm:$0xff]  ;;  %4412 = vmatpush3.bf16.msra.mxu1 %v4411_v60  ;;  %v5690_v60 = vld [vmem:[#allocation3 + $0x130] sm:$0xff] }
 0x124   :  { %4172 = vmatpush1.bf16.msra.mxu0 %v4171_v27  ;;  %801 = vmatprep.mubr.f32.mxu0 %v5567_v50  ;;  %v5645_v50 = vld [vmem:[#allocation3 + $0x1e0] sm:$0xff]  ;;  %v4181_v1 = vpack.c.bf16 %v431_v47, %v428_v57  ;;  %v449_v27 = vld [vmem:[#allocation5 + $0x7d0] sm:$0xff]  ;;  %v454_v57 = vld [vmem:[#allocation5 + $0x7f8] sm:$0xff] }
 0x125   :  { %4174 = vmatprep.subr.bf16.mxu0 %v4173_v35  ;;  %1362 = vmatmul.mubr.f32.gmra.mrb[46].mxu1 %v5645_v50  ;;  %v5674_v35 = vld [vmem:[#allocation3 + $0xf8] sm:$0xff]  ;;  %v4193_v39 = vpack.c.bf16 %v449_v27, %v446_v26  ;;  %v463_v27 = vld [vmem:[#allocation5 + $0x840] sm:$0xff] }
 0x126   :  { %4445 = vmatprep.subr.bf16.mxu1 %v5362_v25  ;;  %v458_v47 = vld [vmem:[#allocation5 + $0x818] sm:$0xff] }
 0x127   :  { %802 = vmatmul.mubr.f32.gmra.mrb[8].mxu0 %v5571_v61  ;;  %v5650_v61 = vld [vmem:[#allocation3 + $0x38] sm:$0xff]  ;;  %v4201_v7 = vpack.c.bf16 %v461_v59, %v458_v47  ;;  %v1517_v59 = vld [vmem:[#allocation7 + $0x130] sm:$0xff] }
 0x128   :  { %4176 = vmatpush1.bf16.msra.mxu0 %v4175_v46  ;;  %807 = vmatprep.mubr.f32.mxu0 %v5573_v0  ;;  %v4183_v0 = vpack.c.bf16 %v430_v5, %v427_v2  ;;  %v4195_v46 = vpack.c.bf16 %v448_v41, %v445_v33  ;;  %v5695_v2 = vld [vmem:[#allocation3 + $0x178] sm:$0xff]  ;;  %v1499_v5 = vld [vmem:[#allocation7 + $0xa0] sm:$0xff] }
 0x129   :  { %4178 = vmatprep.subr.bf16.mxu0 %v4177_v54  ;;  %1431 = vmatprep.mubr.f32.mxu1 %v5650_v61  ;;  %v1496_v54 = vld [vmem:[#allocation7 + $0x88] sm:$0xff]  ;;  %v5703_v19 = vpack.c.bf16 %v1502_v6, %v1499_v5  ;;  %v5715_v41 = vld [vmem:[#allocation3 + $0x1f8] sm:$0xff]  ;;  %v475_v6 = vld [vmem:[#allocation5 + $0x8a0] sm:$0xff] }
 0x12a   :  { %1432 = vmatmul.mubr.f32.vlgmr.msra.gmra.mrb[48].mxu1 %v5653_v8 }
 0x12b   :  { %808 = vmatmul.mubr.f32.gmra.mrb[10].mxu0 %v5577_v12  ;;  %1436 = vmatprep.mubr.f32.mxu1 %v5656_v9  ;;  %v5662_v12 = vld [vmem:[#allocation3 + $0x70] sm:$0xff] }
 0x12c   :  { %4180 = vmatpush1.bf16.msra.mxu0 %v4179_v63  ;;  %813 = vmatprep.mubr.f32.mxu0 %v5579_v17  ;;  %v4187_v17 = vpack.c.bf16 %v436_v13, %v433_v11  ;;  %v5693_v63 = vpack.c.bf16 %v1496_v54, %v1493_v53  ;;  %v464_v11 = vld [vmem:[#allocation5 + $0x848] sm:$0xff]  ;;  %v467_v13 = vld [vmem:[#allocation5 + $0x860] sm:$0xff] }
 0x12d   :  { %4182 = vmatprep.subr.bf16.mxu0 %v4181_v1  ;;  %v4199_v1 = vpack.c.bf16 %v454_v57, %v451_v56  ;;  %v4205_v26 = vpack.c.bf16 %v467_v13, %v464_v11  ;;  %v472_v53 = vld [vmem:[#allocation5 + $0x888] sm:$0xff]  ;;  %v5720_v56 = vld [vmem:[#allocation3 + $0x1f0] sm:$0xff]  ;;  %v5364_v13 = vmov 0.0  }
 0x12e   :  { %1437 = vmatmul.mubr.f32.gmra.mrb[50].mxu1 %v5662_v12  ;;  %v476_v54 = vld [vmem:[#allocation5 + $0x8a8] sm:$0xff] }
 0x12f   :  { %814 = vmatmul.mubr.f32.gmra.mrb[12].mxu0 %v5583_v28  ;;  %v1481_v28 = vld [vmem:[#allocation7 + $0x10] sm:$0xff]  ;;  %1441 = vmatprep.mubr.f32.mxu1 %v5665_v21 }
 0x130   :  { %4184 = vmatpush1.bf16.msra.mxu0 %v4183_v0  ;;  %819 = vmatprep.mubr.f32.mxu0 %v5585_v32  ;;  %v1484_v32 = vld [vmem:[#allocation7 + $0x28] sm:$0xff]  ;;  %v457_v0 = vld [vmem:[#allocation5 + $0x810] sm:$0xff] }
 0x131   :  { %4186 = vmatprep.subr.bf16.mxu0 %v4185_v10  ;;  %v5676_v37 = vpack.c.bf16 %v1484_v32, %v1481_v28  ;;  %v460_v10 = vld [vmem:[#allocation5 + $0x828] sm:$0xff]  ;;  %v466_v28 = vld [vmem:[#allocation5 + $0x858] sm:$0xff] }
 0x132   :  { %1442 = vmatmul.mubr.f32.gmra.mrb[52].mxu1 %v5671_v29  ;;  %v470_v32 = vld [vmem:[#allocation5 + $0x878] sm:$0xff]  ;;  %v4207_v33 = vpack.c.bf16 %v466_v28, %v463_v27  ;;  %v481_v27 = vld [vmem:[#allocation5 + $0x8d0] sm:$0xff]  ;;  %v484_v28 = vld [vmem:[#allocation5 + $0x8e8] sm:$0xff] }
 0x133   :  { %820 = vmatmul.mubr.f32.gmra.mrb[14].mxu0 %v5589_v45  ;;  %v452_v45 = vld [vmem:[#allocation5 + $0x7e8] sm:$0xff]  ;;  %1446 = vmatprep.mubr.f32.mxu1 %v5674_v35 }
 0x134   :  { %4188 = vmatpush1.bf16.msra.mxu0 %v4187_v17  ;;  %890 = vmatprep.mubr.f32.mxu0 %v5591_v49  ;;  %v5683_v49 = vpack.c.bf16 %v1490_v42, %v1487_v38  ;;  %v4197_v55 = vpack.c.bf16 %v455_v43, %v452_v45  ;;  %v4203_v17 = vpack.c.bf16 %v460_v10, %v457_v0  ;;  %v5710_v38 = vld [vmem:[#allocation3 + $0x1b0] sm:$0xff]  ;;  %v1511_v42 = vld [vmem:[#allocation7 + $0x100] sm:$0xff]  ;;  %v1514_v45 = vld [vmem:[#allocation7 + $0x118] sm:$0xff] }
 0x135   :  { %4190 = vmatprep.subr.bf16.mxu0 %v4189_v16  ;;  %4447 = vmatpush3.bf16.msra.mxu1 %v5676_v37  ;;  %v5705_v16 = vld [vmem:[#allocation3 + $0x1b8] sm:$0xff]  ;;  %v5723_v57 = vpack.c.bf16 %v1514_v45, %v1511_v42  ;;  %v485_v10 = vld [vmem:[#allocation5 + $0x8f0] sm:$0xff]  ;;  %v4219_v42 = vpack.c.bf16 %v484_v28, %v481_v27  ;;  %v508_v27 = vld [vmem:[#allocation5 + $0x9a8] sm:$0xff] }
 0x136   :  { %4448 = vmatprep.subr.bf16.mxu1 %v5362_v25  ;;  %1447 = vmatmul.mubr.f32.gmra.mrb[54].mxu1 %v5680_v44  ;;  %v482_v0 = vld [vmem:[#allocation5 + $0x8d8] sm:$0xff]  ;;  %v512_v28 = vld [vmem:[#allocation5 + $0x9c8] sm:$0xff] }
 0x137   :  { %1451 = vmatprep.mubr.f32.mxu1 %v5685_v51 }
 0x138   :  { %4192 = vmatpush1.bf16.msra.mxu0 %v4191_v34  ;;  %v473_v34 = vld [vmem:[#allocation5 + $0x890] sm:$0xff] }
 0x139   :  { %4194 = vmatprep.subr.bf16.mxu0 %v4193_v39  ;;  %4450 = vmatpush3.bf16.msra.mxu1 %v5683_v49  ;;  %v5713_v39 = vpack.c.bf16 %v1508_v24, %v1505_v23  ;;  %v4209_v43 = vpack.c.bf16 %v473_v34, %v470_v32  ;;  %v1523_v23 = vld [vmem:[#allocation7 + $0x160] sm:$0xff]  ;;  %v1526_v24 = vld [vmem:[#allocation7 + $0x178] sm:$0xff]  ;;  %v488_v32 = vld [vmem:[#allocation5 + $0x908] sm:$0xff] }
 0x13a   :  { %4451 = vmatprep.subr.bf16.mxu1 %v5362_v25  ;;  %1452 = vmatmul.mubr.f32.gmra.mrb[56].mxu1 %v5690_v60  ;;  %v491_v34 = vld [vmem:[#allocation5 + $0x920] sm:$0xff] }
 0x13b   :  { %1456 = vmatprep.mubr.f32.mxu1 %v5695_v2  ;;  %v4221_v45 = vpack.c.bf16 %v491_v34, %v488_v32  ;;  %v515_v32 = vld [vmem:[#allocation5 + $0x9e0] sm:$0xff] }
 0x13c   :  { %4196 = vmatpush1.bf16.msra.mxu0 %v4195_v46  ;;  %v469_v46 = vld [vmem:[#allocation5 + $0x870] sm:$0xff]  ;;  %v4237_v34 = vpack.c.bf16 %v515_v32, %v512_v28  ;;  %v551_v28 = vld [vmem:[#allocation5 + $0xb00] sm:$0xff] }
 0x13d   :  { %4198 = vmatprep.subr.bf16.mxu0 %v4197_v55  ;;  %4453 = vmatpush3.bf16.msra.mxu1 %v5693_v63  ;;  %v479_v55 = vld [vmem:[#allocation5 + $0x8c0] sm:$0xff]  ;;  %v4211_v47 = vpack.c.bf16 %v472_v53, %v469_v46  ;;  %v490_v46 = vld [vmem:[#allocation5 + $0x918] sm:$0xff] }
 0x13e   :  { %4454 = vmatprep.subr.bf16.mxu1 %v5362_v25  ;;  %1457 = vmatmul.mubr.f32.gmra.mrb[58].mxu1 %v5700_v18  ;;  %v4213_v5 = vpack.c.bf16 %v479_v55, %v476_v54  ;;  %v494_v53 = vld [vmem:[#allocation5 + $0x938] sm:$0xff]  ;;  %v497_v54 = vld [vmem:[#allocation5 + $0x950] sm:$0xff] }
 0x13f   :  { %1461 = vmatprep.mubr.f32.mxu1 %v5705_v16 }
 0x140   :  { %4200 = vmatpush1.bf16.msra.mxu0 %v4199_v1  ;;  %v1520_v1 = vld [vmem:[#allocation7 + $0x148] sm:$0xff] }
 0x141   :  { %4202 = vmatprep.subr.bf16.mxu0 %v4201_v7  ;;  %4456 = vmatpush3.bf16.msra.mxu1 %v5703_v19  ;;  %v478_v7 = vld [vmem:[#allocation5 + $0x8b8] sm:$0xff]  ;;  %v5728_v11 = vpack.c.bf16 %v1520_v1, %v1517_v59  ;;  %v493_v59 = vld [vmem:[#allocation5 + $0x930] sm:$0xff]  ;;  %v496_v1 = vld [vmem:[#allocation5 + $0x948] sm:$0xff] }
 0x142   :  { %4457 = vmatprep.subr.bf16.mxu1 %v5362_v25  ;;  %1462 = vmatmul.mubr.f32.gmra.mrb[60].mxu1 %v5710_v38 }
 0x143   :  { %1466 = vmatprep.mubr.f32.mxu1 %v5715_v41 }
 0x144   :  { %4204 = vmatpush1.bf16.msra.mxu0 %v4203_v17  ;;  %v4215_v17 = vpack.c.bf16 %v478_v7, %v475_v6  ;;  %v503_v6 = vld [vmem:[#allocation5 + $0x980] sm:$0xff]  ;;  %v4227_v7 = vpack.c.bf16 %v496_v1, %v493_v59  ;;  %v530_v1 = vld [vmem:[#allocation5 + $0xa58] sm:$0xff] }
 0x145   :  { %4206 = vmatprep.subr.bf16.mxu0 %v4205_v26  ;;  %4459 = vmatpush3.bf16.msra.mxu1 %v5713_v39  ;;  %v4217_v26 = vpack.c.bf16 %v485_v10, %v482_v0  ;;  %v499_v10 = vld [vmem:[#allocation5 + $0x960] sm:$0xff] }
 0x146   :  { %4460 = vmatprep.subr.bf16.mxu1 %v5362_v25  ;;  %1467 = vmatmul.mubr.f32.gmra.mrb[62].mxu1 %v5720_v56  ;;  %v523_v59 = vld [vmem:[#allocation5 + $0xa20] sm:$0xff] }
 0x147   :  { %3781 = vmatprep.mubr.msk.f32.mxu1 %vm5363_vm0, %v5364_v13 }
 0x148   :  { %4208 = vmatpush1.bf16.msra.mxu0 %v4207_v33  ;;  %v5734_v33 = vpack.c.bf16 %v1526_v24, %v1523_v23  ;;  %v506_v23 = vld [vmem:[#allocation5 + $0x998] sm:$0xff]  ;;  %v509_v24 = vld [vmem:[#allocation5 + $0x9b0] sm:$0xff] }
 0x149   :  { %4210 = vmatprep.subr.bf16.mxu0 %v4209_v43  ;;  %4462 = vmatpush3.bf16.msra.mxu1 %v5723_v57  ;;  %v487_v43 = vld [vmem:[#allocation5 + $0x900] sm:$0xff] }
 0x14a   :  { %4463 = vmatprep.subr.bf16.mxu1 %v5362_v25  ;;  %v4223_v55 = vpack.c.bf16 %v490_v46, %v487_v43  ;;  %v521_v43 = vld [vmem:[#allocation5 + $0xa10] sm:$0xff] }
 0x14c   :  { %4212 = vmatpush1.bf16.msra.mxu0 %v4211_v47  ;;  %v4225_v47 = vpack.c.bf16 %v497_v54, %v494_v53  ;;  %v517_v53 = vld [vmem:[#allocation5 + $0x9f0] sm:$0xff]  ;;  %v524_v54 = vld [vmem:[#allocation5 + $0xa28] sm:$0xff] }
 0x14d   :  { %4214 = vmatprep.subr.bf16.mxu0 %v4213_v5  ;;  %4465 = vmatpush3.bf16.msra.mxu1 %v5728_v11  ;;  %v500_v5 = vld [vmem:[#allocation5 + $0x968] sm:$0xff] }
 0x14e   :  { %4466 = vmatprep.subr.bf16.mxu1 %v5362_v25  ;;  %v4229_v0 = vpack.c.bf16 %v503_v6, %v500_v5  ;;  %v533_v5 = vld [vmem:[#allocation5 + $0xa70] sm:$0xff] }
 0x14f   :  { %v4249_v6 = vpack.c.bf16 %v533_v5, %v530_v1  ;;  %v565_v5 = vld [vmem:[#allocation5 + $0xb70] sm:$0xff] }
 0x150   :  { %4216 = vmatpush1.bf16.msra.mxu0 %v4215_v17  ;;  %v502_v17 = vld [vmem:[#allocation5 + $0x978] sm:$0xff] }
 0x151   :  { %4218 = vmatprep.subr.bf16.mxu0 %v4217_v26  ;;  %4468 = vmatpush3.bf16.msra.mxu1 %v5734_v33  ;;  %v505_v26 = vld [vmem:[#allocation5 + $0x990] sm:$0xff] }
 0x152   :  { %4501 = vmatprep.subr.bf16.mxu1 %v5362_v25 }
 0x154   :  { %4220 = vmatpush1.bf16.msra.mxu0 %v4219_v42  ;;  %3782 = vmatmul.mubr.f32.vlgmr.msra.gmra.mrb[64].mxu1 %v5364_v13  ;;  %v511_v42 = vld [vmem:[#allocation5 + $0x9c0] sm:$0xff] }
 0x155   :  { %4222 = vmatprep.subr.bf16.mxu0 %v4221_v45  ;;  %4503 = vmatpush3.bf16.msra.mxu1 %v5676_v37  ;;  %v518_v45 = vld [vmem:[#allocation5 + $0x9f8] sm:$0xff] }
 0x156   :  { %4504 = vmatprep.subr.bf16.mxu1 %v5362_v25  ;;  %3816 = vmatprep.mubr.msk.f32.mxu1 %vm5363_vm0, %v5364_v13  ;;  %v4241_v46 = vpack.c.bf16 %v521_v43, %v518_v45  ;;  %v553_v43 = vld [vmem:[#allocation5 + $0xb10] sm:$0xff] }
 0x157   :  { %891 = vmatmul.mubr.f32.vlgmr.msra.gmra.mrb[0].mxu0 %v5595_v62  ;;  %v4231_v62 = vpack.c.bf16 %v502_v17, %v499_v10  ;;  %v539_v10 = vld [vmem:[#allocation5 + $0xaa0] sm:$0xff] }
 0x158   :  { %4224 = vmatpush1.bf16.msra.mxu0 %v4223_v55  ;;  %896 = vmatprep.mubr.f32.mxu0 %v5597_v3  ;;  %v4233_v3 = vpack.c.bf16 %v509_v24, %v506_v23  ;;  %v527_v55 = vld [vmem:[#allocation5 + $0xa40] sm:$0xff]  ;;  %v542_v24 = vld [vmem:[#allocation5 + $0xab8] sm:$0xff] }
 0x159   :  { %4226 = vmatprep.subr.bf16.mxu0 %v4225_v47  ;;  %4506 = vmatpush3.bf16.msra.mxu1 %v5683_v49  ;;  %v4245_v47 = vpack.c.bf16 %v527_v55, %v524_v54  ;;  %v535_v23 = vld [vmem:[#allocation5 + $0xa80] sm:$0xff] }
 0x15a   :  { %4507 = vmatprep.subr.bf16.mxu1 %v5362_v25  ;;  %v559_v55 = vld [vmem:[#allocation5 + $0xb40] sm:$0xff] }
 0x15b   :  { %897 = vmatmul.mubr.f32.gmra.mrb[2].mxu0 %v5601_v15  ;;  %v4235_v15 = vpack.c.bf16 %v508_v27, %v505_v26  ;;  %v541_v26 = vld [vmem:[#allocation5 + $0xab0] sm:$0xff]  ;;  %v548_v27 = vld [vmem:[#allocation5 + $0xae8] sm:$0xff] }
 0x15c   :  { %4228 = vmatpush1.bf16.msra.mxu0 %v4227_v7  ;;  %902 = vmatprep.mubr.f32.mxu0 %v5603_v20  ;;  %v514_v20 = vld [vmem:[#allocation5 + $0x9d8] sm:$0xff]  ;;  %v529_v7 = vld [vmem:[#allocation5 + $0xa50] sm:$0xff] }
 0x15d   :  { %4230 = vmatprep.subr.bf16.mxu0 %v4229_v0  ;;  %4509 = vmatpush3.bf16.msra.mxu1 %v5693_v63  ;;  %v536_v0 = vld [vmem:[#allocation5 + $0xa88] sm:$0xff] }
 0x15e   :  { %4510 = vmatprep.subr.bf16.mxu1 %v5362_v25  ;;  %v4253_v17 = vpack.c.bf16 %v539_v10, %v536_v0  ;;  %v571_v10 = vld [vmem:[#allocation5 + $0xba0] sm:$0xff] }
 0x15f   :  { %903 = vmatmul.mubr.f32.gmra.mrb[4].mxu0 %v5607_v31  ;;  %v4239_v31 = vpack.c.bf16 %v514_v20, %v511_v42  ;;  %v554_v42 = vld [vmem:[#allocation5 + $0xb18] sm:$0xff]  ;;  %v557_v20 = vld [vmem:[#allocation5 + $0xb30] sm:$0xff] }
 0x160   :  { %4232 = vmatpush1.bf16.msra.mxu0 %v4231_v62  ;;  %908 = vmatprep.mubr.f32.mxu0 %v5610_v48  ;;  %v520_v48 = vld [vmem:[#allocation5 + $0xa08] sm:$0xff]  ;;  %v545_v62 = vld [vmem:[#allocation5 + $0xad0] sm:$0xff] }
 0x161   :  { %4234 = vmatprep.subr.bf16.mxu0 %v4233_v3  ;;  %4512 = vmatpush3.bf16.msra.mxu1 %v5703_v19  ;;  %v4257_v3 = vpack.c.bf16 %v545_v62, %v542_v24  ;;  %v577_v62 = vld [vmem:[#allocation5 + $0xbd0] sm:$0xff] }
 0x162   :  { %4513 = vmatprep.subr.bf16.mxu1 %v5362_v25 }
 0x163   :  { %909 = vmatmul.mubr.f32.gmra.mrb[6].mxu0 %v5613_v52  ;;  %v4243_v52 = vpack.c.bf16 %v520_v48, %v517_v53  ;;  %v563_v53 = vld [vmem:[#allocation5 + $0xb60] sm:$0xff] }
 0x164   :  { %4236 = vmatpush1.bf16.msra.mxu0 %v4235_v15  ;;  %914 = vmatprep.mubr.f32.mxu0 %v5618_v4  ;;  %v526_v4 = vld [vmem:[#allocation5 + $0xa38] sm:$0xff]  ;;  %v4261_v15 = vpack.c.bf16 %v551_v28, %v548_v27  ;;  %v1479_v28 = vld [vmem:[#allocation7] sm:$0xff] }
 0x165   :  { %4238 = vmatprep.subr.bf16.mxu0 %v4237_v34  ;;  %4515 = vmatpush3.bf16.msra.mxu1 %v5713_v39  ;;  %v547_v34 = vld [vmem:[#allocation5 + $0xae0] sm:$0xff] }
 0x166   :  { %4516 = vmatprep.subr.bf16.mxu1 %v5362_v25 }
 0x167   :  { %915 = vmatmul.mubr.f32.gmra.mrb[8].mxu0 %v5621_v14  ;;  %v4247_v14 = vpack.c.bf16 %v526_v4, %v523_v59  ;;  %v569_v59 = vld [vmem:[#allocation5 + $0xb90] sm:$0xff] }
 0x168   :  { %4240 = vmatpush1.bf16.msra.mxu0 %v4239_v31  ;;  %920 = vmatprep.mubr.f32.mxu0 %v5626_v22  ;;  %v532_v22 = vld [vmem:[#allocation5 + $0xa68] sm:$0xff] }
 0x169   :  { %4242 = vmatprep.subr.bf16.mxu0 %v4241_v46  ;;  %4518 = vmatpush3.bf16.msra.mxu1 %v5723_v57  ;;  %v556_v31 = vld [vmem:[#allocation5 + $0xb28] sm:$0xff] }
 0x16a   :  { %4519 = vmatprep.subr.bf16.mxu1 %v5362_v25  ;;  %v560_v46 = vld [vmem:[#allocation5 + $0xb48] sm:$0xff]  ;;  %v4267_v48 = vpack.c.bf16 %v556_v31, %v553_v43  ;;  %v1495_v43 = vld [vmem:[#allocation7 + $0x80] sm:$0xff] }
 0x16b   :  { %921 = vmatmul.mubr.f32.gmra.mrb[10].mxu0 %v5629_v30  ;;  %v4251_v30 = vpack.c.bf16 %v532_v22, %v529_v7  ;;  %v4269_v54 = vpack.c.bf16 %v563_v53, %v560_v46  ;;  %v575_v7 = vld [vmem:[#allocation5 + $0xbc0] sm:$0xff] }
 0x16c   :  { %4244 = vmatpush1.bf16.msra.mxu0 %v4243_v52  ;;  %926 = vmatprep.mubr.f32.mxu0 %v5634_v40  ;;  %v538_v40 = vld [vmem:[#allocation5 + $0xa98] sm:$0xff]  ;;  %v1491_v53 = vld [vmem:[#allocation7 + $0x60] sm:$0xff] }
 0x16d   :  { %4246 = vmatprep.subr.bf16.mxu0 %v4245_v47  ;;  %4521 = vmatpush3.bf16.msra.mxu1 %v5728_v11  ;;  %v562_v52 = vld [vmem:[#allocation5 + $0xb58] sm:$0xff] }
 0x16e   :  { %4522 = vmatprep.subr.bf16.mxu1 %v5362_v25  ;;  %v566_v47 = vld [vmem:[#allocation5 + $0xb78] sm:$0xff]  ;;  %v4271_v4 = vpack.c.bf16 %v562_v52, %v559_v55  ;;  %v1501_v55 = vld [vmem:[#allocation7 + $0xb0] sm:$0xff]  ;;  %v585_v52 = vlaneseq }
 0x16f   :  { %927 = vmatmul.mubr.f32.gmra.mrb[12].mxu0 %v5637_v36  ;;  %v4255_v36 = vpack.c.bf16 %v538_v40, %v535_v23  ;;  %v4273_v1 = vpack.c.bf16 %v569_v59, %v566_v47  ;;  %v581_v23 = vld [vmem:[#allocation5 + $0xbf0] sm:$0xff]  ;;  %v1500_v59 = vld [vmem:[#allocation7 + $0xa8] sm:$0xff] }
 0x170   :  { %4248 = vmatpush1.bf16.msra.mxu0 %v4247_v14  ;;  %932 = vmatprep.mubr.f32.mxu0 %v5642_v58  ;;  %v544_v58 = vld [vmem:[#allocation5 + $0xac8] sm:$0xff]  ;;  %v1497_v47 = vld [vmem:[#allocation7 + $0x90] sm:$0xff] }
 0x171   :  { %4250 = vmatprep.subr.bf16.mxu0 %v4249_v6  ;;  %4524 = vmatpush3.bf16.msra.mxu1 %v5734_v33  ;;  %v4259_v32 = vpack.c.bf16 %v544_v58, %v541_v26  ;;  %v568_v14 = vld [vmem:[#allocation5 + $0xb88] sm:$0xff]  ;;  %v1483_v26 = vld [vmem:[#allocation7 + $0x20] sm:$0xff] }
 0x172   :  { %4557 = vmatprep.subr.bf16.mxu1 %v5362_v25  ;;  %v572_v6 = vld [vmem:[#allocation5 + $0xba8] sm:$0xff]  ;;  %v4275_v22 = vpack.c.bf16 %v568_v14, %v565_v5  ;;  %v5798_v5 = vshrl.u32 %v585_v52, 7  ;;  %v1503_v14 = vld [vmem:[#allocation7 + $0xc0] sm:$0xff] }
 0x173   :  { %933 = vmatmul.mubr.f32.gmra.mrb[14].mxu0 %v5645_v50  ;;  %v550_v50 = vld [vmem:[#allocation5 + $0xaf8] sm:$0xff]  ;;  %v4277_v0 = vpack.c.bf16 %v575_v7, %v572_v6 }
 0x174   :  { %4252 = vmatpush1.bf16.msra.mxu0 %v4251_v30  ;;  %1003 = vmatprep.mubr.f32.mxu0 %v5650_v61  ;;  %v4263_v45 = vpack.c.bf16 %v550_v50, %v547_v34  ;;  %v4265_v61 = vpack.c.bf16 %v557_v20, %v554_v42  ;;  %v574_v30 = vld [vmem:[#allocation5 + $0xbb8] sm:$0xff]  ;;  %v1489_v34 = vld [vmem:[#allocation7 + $0x50] sm:$0xff] }
 0x175   :  { %4254 = vmatprep.subr.bf16.mxu0 %v4253_v17  ;;  %v578_v17 = vld [vmem:[#allocation5 + $0xbd8] sm:$0xff]  ;;  %v4279_v40 = vpack.c.bf16 %v574_v30, %v571_v10  ;;  %v1485_v20 = vld [vmem:[#allocation7 + $0x30] sm:$0xff] }
 0x176   :  { %v4281_v24 = vpack.c.bf16 %v581_v23, %v578_v17  ;;  %v1506_v6 = vld [vmem:[#allocation7 + $0xd8] sm:$0xff]  ;;  %v5817_v17 = vld [vmem:[#allocation8] sm:$0x7] }
 0x178   :  { %4256 = vmatpush1.bf16.msra.mxu0 %v4255_v36  ;;  %v580_v36 = vld [vmem:[#allocation5 + $0xbe8] sm:$0xff] }
 0x179   :  { %4258 = vmatprep.subr.bf16.mxu0 %v4257_v3  ;;  %v1480_v3 = vld [vmem:[#allocation7 + $0x8] sm:$0xff]  ;;  %v4283_v58 = vpack.c.bf16 %v580_v36, %v577_v62  ;;  %v1519_v36 = vld [vmem:[#allocation7 + $0x140] sm:$0xff] }
 0x17a   :  { %v5774_v27 = vpack.c.bf16 %v1483_v26, %v1480_v3  ;;  %v1516_v62 = vld [vmem:[#allocation7 + $0x128] sm:$0xff] }
 0x17c   :  { %4260 = vmatpush1.bf16.msra.mxu0 %v4259_v32  ;;  %v1482_v32 = vld [vmem:[#allocation7 + $0x18] sm:$0xff] }
 0x17d   :  { %4262 = vmatprep.subr.bf16.mxu0 %v4261_v15  ;;  %v1486_v15 = vld [vmem:[#allocation7 + $0x38] sm:$0xff]  ;;  %v5776_v50 = vpack.c.bf16 %v1482_v32, %v1479_v28  ;;  %v5830_v28 = vpack.c.bf16 %v1519_v36, %v1516_v62  ;;  %v1515_v32 = vld [vmem:[#allocation7 + $0x120] sm:$0xff] }
 0x17e   :  { %v5779_v42 = vpack.c.bf16 %v1489_v34, %v1486_v15  ;;  %v1518_v15 = vld [vmem:[#allocation7 + $0x138] sm:$0xff] }
 0x180   :  { %4264 = vmatpush1.bf16.msra.mxu0 %v4263_v45  ;;  %v1488_v45 = vld [vmem:[#allocation7 + $0x48] sm:$0xff] }
 0x181   :  { %4266 = vmatprep.subr.bf16.mxu0 %v4265_v61  ;;  %v1492_v61 = vld [vmem:[#allocation7 + $0x68] sm:$0xff]  ;;  %v5784_v31 = vpack.c.bf16 %v1488_v45, %v1485_v20  ;;  %v1525_v45 = vld [vmem:[#allocation7 + $0x170] sm:$0xff] }
 0x182   :  { %v5787_v46 = vpack.c.bf16 %v1495_v43, %v1492_v61 }
 0x184   :  { %4268 = vmatpush1.bf16.msra.mxu0 %v4267_v48  ;;  %v1494_v48 = vld [vmem:[#allocation7 + $0x78] sm:$0xff] }
 0x185   :  { %4270 = vmatprep.subr.bf16.mxu0 %v4269_v54  ;;  %v1498_v54 = vld [vmem:[#allocation7 + $0x98] sm:$0xff] }
 0x188   :  { %4272 = vmatpush1.bf16.msra.mxu0 %v4271_v4  ;;  %v1504_v4 = vld [vmem:[#allocation7 + $0xc8] sm:$0xff] }
 0x189   :  { %4274 = vmatprep.subr.bf16.mxu0 %v4273_v1  ;;  %v1507_v1 = vld [vmem:[#allocation7 + $0xe0] sm:$0xff] }
 0x18c   :  { %4276 = vmatpush1.bf16.msra.mxu0 %v4275_v22  ;;  %v1510_v22 = vld [vmem:[#allocation7 + $0xf8] sm:$0xff] }
 0x18d   :  { %4278 = vmatprep.subr.bf16.mxu0 %v4277_v0  ;;  %v1513_v0 = vld [vmem:[#allocation7 + $0x110] sm:$0xff] }
 0x18e   :  { %v5820_v23 = vpack.c.bf16 %v1513_v0, %v1510_v22 }
 0x190   :  { %4280 = vmatpush1.bf16.msra.mxu0 %v4279_v40  ;;  %v1509_v40 = vld [vmem:[#allocation7 + $0xf0] sm:$0xff] }
 0x191   :  { %4282 = vmatprep.subr.bf16.mxu0 %v4281_v24  ;;  %v1512_v24 = vld [vmem:[#allocation7 + $0x108] sm:$0xff] }
 0x194   :  { %4284 = vmatpush1.bf16.msra.mxu0 %v4283_v58  ;;  %v5827_v58 = vpack.c.bf16 %v1512_v24, %v1509_v40 }
 0x195   :  { %4414 = vmatprep.subr.bf16.mxu0 %v5774_v27 }
 0x196   :  { %v3421_v7 = vpop.f32.mrb[0].mxu1 }
 0x197   :  { %1004 = vmatmul.mubr.f32.vlgmr.msra.gmra.mrb[0].mxu0 %v5653_v8  ;;  %v5792_v8 = vpack.c.bf16 %v1494_v48, %v1491_v53  ;;  %v3422_v10 = vpop.f32.mrb[1].mxu1  ;;  %v1521_v48 = vld [vmem:[#allocation7 + $0x150] sm:$0xff] }
 0x198   :  { %4416 = vmatpush1.bf16.msra.mxu0 %v5776_v50  ;;  %1009 = vmatprep.mubr.f32.mxu0 %v5656_v9  ;;  %v5795_v9 = vpack.c.bf16 %v1501_v55, %v1498_v54  ;;  %v5811_v30 = vadd.f32 %v3422_v10, %v3421_v7  ;;  %v1524_v54 = vld [vmem:[#allocation7 + $0x168] sm:$0xff] }
 0x199   :  { %4418 = vmatprep.subr.bf16.mxu0 %v5779_v42 }
 0x19b   :  { %1010 = vmatmul.mubr.f32.gmra.mrb[2].mxu0 %v5662_v12  ;;  %v5802_v12 = vpack.c.bf16 %v1500_v59, %v1497_v47 }
 0x19c   :  { %4420 = vmatpush1.bf16.msra.mxu0 %v5784_v31  ;;  %1015 = vmatprep.mubr.f32.mxu0 %v5665_v21  ;;  %v5805_v21 = vpack.c.bf16 %v1507_v1, %v1504_v4 }
 0x19d   :  { %4422 = vmatprep.subr.bf16.mxu0 %v5787_v46 }
 0x19f   :  { %1016 = vmatmul.mubr.f32.gmra.mrb[4].mxu0 %v5671_v29  ;;  %v5809_v29 = vsub.s32 2, %v5798_v5 }
 0x1a0   :  { %4424 = vmatpush1.bf16.msra.mxu0 %v5792_v8  ;;  %1021 = vmatprep.mubr.f32.mxu0 %v5674_v35  ;;  %v5815_v35 = vpack.c.bf16 %v1506_v6, %v1503_v14 }
 0x1a1   :  { %4426 = vmatprep.subr.bf16.mxu0 %v5795_v9  ;;  %v596_v26 = vrot.slane %v5817_v17, %v5809_v29 }
 0x1a3   :  { %1022 = vmatmul.mubr.f32.gmra.mrb[6].mxu0 %v5680_v44  ;;  %v3424_v44 = vpop.f32.mrb[2].mxu1  ;;  %v1119_v36 = vadd.f32 %v5811_v30, %v596_v26 }
 0x1a4   :  { %4428 = vmatpush1.bf16.msra.mxu0 %v5802_v12  ;;  %1027 = vmatprep.mubr.f32.mxu0 %v5685_v51  ;;  %v3425_v3 = vpop.f32.mrb[3].mxu1 }
 0x1a5   :  { %4430 = vmatprep.subr.bf16.mxu0 %v5805_v21  ;;  %v3426_v51 = vadd.f32 %v3425_v3, %v3424_v44  ;;  %v3427_v20 = vpop.f32.mrb[4].mxu1 }
 0x1a6   :  { %v3428_v61 = vpop.f32.mrb[5].mxu1 }
 0x1a7   :  { %1028 = vmatmul.mubr.f32.gmra.mrb[8].mxu0 %v5690_v60  ;;  %v5832_v34 = vadd.f32 %v3426_v51, %v596_v26  ;;  %v1522_v60 = vld [vmem:[#allocation7 + $0x158] sm:$0xff]  ;;  %v3429_v43 = vadd.f32 %v3428_v61, %v3427_v20  ;;  %v3430_v52 = vpop.f32.mrb[6].mxu1 }
 0x1a8   :  { %4432 = vmatpush1.bf16.msra.mxu0 %v5815_v35  ;;  %1033 = vmatprep.mubr.f32.mxu0 %v5695_v2  ;;  %v5837_v2 = vpack.c.bf16 %v1518_v15, %v1515_v32  ;;  %v5840_v53 = vpack.c.bf16 %v1525_v45, %v1522_v60  ;;  %v3431_v47 = vpop.f32.mrb[7].mxu1 }
 0x1a9   :  { %4434 = vmatprep.subr.bf16.mxu0 %v5820_v23  ;;  %v1129_v55 = vadd.f32 %v3429_v43, %v596_v26  ;;  %v3432_v59 = vadd.f32 %v3431_v47, %v3430_v52  ;;  %v3433_v4 = vpop.f32.mrb[8].mxu1 }
 0x1aa   :  { %v3434_v1 = vpop.f32.mrb[9].mxu1 }
 0x1ab   :  { %1034 = vmatmul.mubr.f32.gmra.mrb[10].mxu0 %v5700_v18  ;;  %v5845_v18 = vpack.c.bf16 %v1524_v54, %v1521_v48  ;;  %v3435_v14 = vadd.f32 %v3434_v1, %v3433_v4 }
 0x1ac   :  { %4436 = vmatpush1.bf16.msra.mxu0 %v5827_v58  ;;  %1039 = vmatprep.mubr.f32.mxu0 %v5705_v16  ;;  %v1134_v16 = vadd.f32 %v3432_v59, %v596_v26  ;;  %v3436_v6 = vpop.f32.mrb[10].mxu1 }
 0x1ad   :  { %4438 = vmatprep.subr.bf16.mxu0 %v5830_v28  ;;  %v3437_v7 = vpop.f32.mrb[11].mxu1 }
 0x1af   :  { %1040 = vmatmul.mubr.f32.gmra.mrb[12].mxu0 %v5710_v38  ;;  %v1139_v38 = vadd.f32 %v3435_v14, %v596_v26 }
 0x1b0   :  { %4440 = vmatpush1.bf16.msra.mxu0 %v5837_v2  ;;  %1045 = vmatprep.mubr.f32.mxu0 %v5715_v41  ;;  %v3438_v41 = vadd.f32 %v3437_v7, %v3436_v6  ;;  %v3439_v0 = vpop.f32.mrb[12].mxu1 }
 0x1b1   :  { %4442 = vmatprep.subr.bf16.mxu0 %v5840_v53 }
 0x1b2   :  { %v1144_v22 = vadd.f32 %v3438_v41, %v596_v26 }
 0x1b3   :  { %1046 = vmatmul.mubr.f32.gmra.mrb[14].mxu0 %v5720_v56  ;;  %v3440_v56 = vpop.f32.mrb[13].mxu1 }
 0x1b4   :  { %4444 = vmatpush1.bf16.msra.mxu0 %v5845_v18  ;;  %1591 = vmatprep.mubr.f32.mxu0 %v5364_v13  ;;  %v3441_v10 = vadd.f32 %v3440_v56, %v3439_v0  ;;  %v3442_v24 = vpop.f32.mrb[14].mxu1 }
 0x1b5   :  { %4470 = vmatprep.subr.bf16.mxu0 %v5774_v27  ;;  %v3443_v44 = vpop.f32.mrb[15].mxu1 }
 0x1b6   :  { %v1149_v40 = vadd.f32 %v3441_v10, %v596_v26  ;;  %v3444_v62 = vadd.f32 %v3443_v44, %v3442_v24 }
 0x1b7   :  { %1592 = vmatmul.mubr.f32.vlgmr.msra.gmra.mrb[0].mxu0 %v5364_v13 }
 0x1b8   :  { %4472 = vmatpush1.bf16.msra.mxu0 %v5776_v50  ;;  %1754 = vmatprep.mubr.f32.mxu0 %v5364_v13  ;;  %v1154_v3 = vadd.f32 %v3444_v62, %v596_v26 }
 0x1b9   :  { %4474 = vmatprep.subr.bf16.mxu0 %v5779_v42  ;;  %v3477_v51 = vpop.f32.mrb[16].mxu1 }
 0x1ba   :  { %v3478_v32 = vpop.f32.mrb[17].mxu1 }
 0x1bb   :  { %v3479_v15 = vadd.f32 %v3478_v32, %v3477_v51 }
 0x1bc   :  { %4476 = vmatpush1.bf16.msra.mxu0 %v5784_v31 }
 0x1bd   :  { %4478 = vmatprep.subr.bf16.mxu0 %v5787_v46  ;;  %v1224_v20 = vadd.f32 %v3479_v15, %v1119_v36  ;;  %v3480_v60 = vpop.f32.mrb[18].mxu1 }
 0x1be   :  { %v3481_v45 = vpop.f32.mrb[19].mxu1 }
 0x1bf   :  { %v3482_v61 = vadd.f32 %v3481_v45, %v3480_v60 }
 0x1c0   :  { %4480 = vmatpush1.bf16.msra.mxu0 %v5792_v8 }
 0x1c1   :  { %4482 = vmatprep.subr.bf16.mxu0 %v5795_v9  ;;  %v1229_v43 = vadd.f32 %v3482_v61, %v5832_v34  ;;  %v3483_v48 = vpop.f32.mrb[20].mxu1 }
 0x1c2   :  { %v3484_v30 = vpop.f32.mrb[21].mxu1 }
 0x1c3   :  { %v3485_v26 = vadd.f32 %v3484_v30, %v3483_v48 }
 0x1c4   :  { %4484 = vmatpush1.bf16.msra.mxu0 %v5802_v12 }
 0x1c5   :  { %4486 = vmatprep.subr.bf16.mxu0 %v5805_v21  ;;  %v1234_v54 = vadd.f32 %v3485_v26, %v1129_v55  ;;  %v3486_v52 = vpop.f32.mrb[22].mxu1 }
 0x1c6   :  { %v3487_v47 = vpop.f32.mrb[23].mxu1 }
 0x1c7   :  { %v3488_v59 = vadd.f32 %v3487_v47, %v3486_v52 }
 0x1c8   :  { %4488 = vmatpush1.bf16.msra.mxu0 %v5815_v35 }
 0x1c9   :  { %4490 = vmatprep.subr.bf16.mxu0 %v5820_v23  ;;  %v1239_v4 = vadd.f32 %v3488_v59, %v1134_v16  ;;  %v3489_v1 = vpop.f32.mrb[24].mxu1 }
 0x1ca   :  { %v3490_v34 = vpop.f32.mrb[25].mxu1 }
 0x1cb   :  { %v3491_v14 = vadd.f32 %v3490_v34, %v3489_v1 }
 0x1cc   :  { %4492 = vmatpush1.bf16.msra.mxu0 %v5827_v58 }
 0x1cd   :  { %4494 = vmatprep.subr.bf16.mxu0 %v5830_v28  ;;  %v1244_v6 = vadd.f32 %v3491_v14, %v1139_v38  ;;  %v3492_v7 = vpop.f32.mrb[26].mxu1 }
 0x1ce   :  { %v3493_v55 = vpop.f32.mrb[27].mxu1 }
 0x1cf   :  { %v3494_v41 = vadd.f32 %v3493_v55, %v3492_v7 }
 0x1d0   :  { %4496 = vmatpush1.bf16.msra.mxu0 %v5837_v2 }
 0x1d1   :  { %4498 = vmatprep.subr.bf16.mxu0 %v5840_v53  ;;  %v1249_v0 = vadd.f32 %v3494_v41, %v1144_v22  ;;  %v3495_v56 = vpop.f32.mrb[28].mxu1 }
 0x1d2   :  { %v3496_v10 = vpop.f32.mrb[29].mxu1 }
 0x1d3   :  { %v3497_v24 = vadd.f32 %v3496_v10, %v3495_v56 }
 0x1d4   :  { %4500 = vmatpush1.bf16.msra.mxu0 %v5845_v18 }
 0x1d5   :  { %4526 = vmatprep.subr.bf16.mxu0 %v5774_v27  ;;  %v1254_v44 = vadd.f32 %v3497_v24, %v1149_v40  ;;  %v3498_v62 = vpop.f32.mrb[30].mxu1 }
 0x1d6   :  { %v3499_v16 = vpop.f32.mrb[31].mxu1 }
 0x1d7   :  { %v3500_v36 = vadd.f32 %v3499_v16, %v3498_v62 }
 0x1d9   :  { %v1259_v51 = vadd.f32 %v3500_v36, %v1154_v3  ;;  %v3533_v32 = vpop.f32.mrb[32].mxu1 }
 0x1da   :  { %v3534_v15 = vpop.f32.mrb[33].mxu1 }
 0x1db   :  { %v3535_v60 = vadd.f32 %v3534_v15, %v3533_v32 }
 0x1dd   :  { %v1329_v45 = vadd.f32 %v3535_v60, %v1224_v20  ;;  %v3536_v61 = vpop.f32.mrb[34].mxu1 }
 0x1de   :  { %v3537_v38 = vpop.f32.mrb[35].mxu1 }
 0x1df   :  { %v3538_v48 = vadd.f32 %v3537_v38, %v3536_v61 }
 0x1e1   :  { %v1334_v30 = vadd.f32 %v3538_v48, %v1229_v43  ;;  %v3539_v26 = vpop.f32.mrb[36].mxu1 }
 0x1e2   :  { %v3540_v52 = vpop.f32.mrb[37].mxu1 }
 0x1e3   :  { %v3541_v47 = vadd.f32 %v3540_v52, %v3539_v26 }
 0x1e5   :  { %v1339_v22 = vadd.f32 %v3541_v47, %v1234_v54  ;;  %v3542_v59 = vpop.f32.mrb[38].mxu1 }
 0x1e6   :  { %v3543_v1 = vpop.f32.mrb[39].mxu1 }
 0x1e7   :  { %v3544_v34 = vadd.f32 %v3543_v1, %v3542_v59 }
 0x1e9   :  { %v1344_v40 = vadd.f32 %v3544_v34, %v1239_v4 }
 0x1ec   :  { %v3545_v14 = vpop.f32.mrb[40].mxu1 }
 0x1ed   :  { %v3546_v7 = vpop.f32.mrb[41].mxu1 }
 0x1ee   :  { %v3547_v55 = vadd.f32 %v3546_v7, %v3545_v14 }
 0x1f0   :  { %v1349_v3 = vadd.f32 %v3547_v55, %v1244_v6  ;;  %v3548_v41 = vpop.f32.mrb[42].mxu1 }
 0x1f1   :  { %v3549_v56 = vpop.f32.mrb[43].mxu1 }
 0x1f2   :  { %v3550_v10 = vadd.f32 %v3549_v56, %v3548_v41 }
 0x1f4   :  { %v1354_v20 = vadd.f32 %v3550_v10, %v1249_v0  ;;  %v3551_v24 = vpop.f32.mrb[44].mxu1 }
 0x1f5   :  { %v3552_v62 = vpop.f32.mrb[45].mxu1 }
 0x1f6   :  { %v3553_v16 = vadd.f32 %v3552_v62, %v3551_v24 }
 0x1f8   :  { %v1359_v43 = vadd.f32 %v3553_v16, %v1254_v44  ;;  %v3554_v36 = vpop.f32.mrb[46].mxu1 }
 0x1f9   :  { %v3555_v32 = vpop.f32.mrb[47].mxu1 }
 0x1fa   :  { %v3556_v15 = vadd.f32 %v3555_v32, %v3554_v36 }
 0x1fc   :  { %v1364_v54 = vadd.f32 %v3556_v15, %v1259_v51 }
 0x1fd   :  { %v3589_v60 = vpop.f32.mrb[48].mxu1 }
 0x1fe   :  { %v3590_v61 = vpop.f32.mrb[49].mxu1 }
 0x1ff   :  { %v3591_v38 = vadd.f32 %v3590_v61, %v3589_v60 }
 0x201   :  { %v1434_v4 = vadd.f32 %v3591_v38, %v1329_v45  ;;  %v3592_v48 = vpop.f32.mrb[50].mxu1 }
 0x202   :  { %v3593_v26 = vpop.f32.mrb[51].mxu1 }
 0x203   :  { %v3594_v52 = vadd.f32 %v3593_v26, %v3592_v48  ;;  %v5890_v48 = vsub.s32 1, %v5798_v5 }
 0x205   :  { %v5872_v6 = vadd.f32 %v3594_v52, %v1334_v30  ;;  %v3595_v47 = vpop.f32.mrb[52].mxu1 }
 0x206   :  { %v3596_v59 = vpop.f32.mrb[53].mxu1 }
 0x207   :  { %v3597_v0 = vadd.f32 %v3596_v59, %v3595_v47 }
 0x209   :  { %v5874_v1 = vadd.f32 %v3597_v0, %v1339_v22  ;;  %v3598_v34 = vpop.f32.mrb[54].mxu1 }
 0x20a   :  { %v3599_v44 = vpop.f32.mrb[55].mxu1 }
 0x20b   :  { %v3600_v14 = vadd.f32 %v3599_v44, %v3598_v34 }
 0x20d   :  { %v5876_v7 = vadd.f32 %v3600_v14, %v1344_v40  ;;  %v3601_v51 = vpop.f32.mrb[56].mxu1 }
 0x20e   :  { %v3602_v55 = vpop.f32.mrb[57].mxu1 }
 0x20f   :  { %v3603_v41 = vadd.f32 %v3602_v55, %v3601_v51  ;;  %v5902_v51 = vld [vmem:[#allocation10] ss:$0 sm:$0xff] }
 0x211   :  { %v5878_v56 = vadd.f32 %v3603_v41, %v1349_v3  ;;  %v3604_v45 = vpop.f32.mrb[58].mxu1  ;;  %v5887_v3 = vsub.s32 0, %v5798_v5 }
 0x212   :  { %v3605_v10 = vpop.f32.mrb[59].mxu1 }
 0x213   :  { %v3606_v24 = vadd.f32 %v3605_v10, %v3604_v45 }
 0x215   :  { %v5880_v30 = vadd.f32 %v3606_v24, %v1354_v20  ;;  %v3607_v62 = vpop.f32.mrb[60].mxu1  ;;  %v5894_v20 = vrot.slane %v5817_v17, %v5887_v3 }
 0x216   :  { %v3608_v16 = vpop.f32.mrb[61].mxu1 }
 0x217   :  { %v3609_v36 = vadd.f32 %v3608_v16, %v3607_v62 }
 0x219   :  { %v5882_v22 = vadd.f32 %v3609_v36, %v1359_v43  ;;  %v3610_v32 = vpop.f32.mrb[62].mxu1  ;;  %v5898_v43 = vrot.slane %v5817_v17, %v5890_v48 }
 0x21a   :  { %v3611_v15 = vpop.f32.mrb[63].mxu1 }
 0x21b   :  { %v3612_v60 = vadd.f32 %v3611_v15, %v3610_v32 }
 0x21d   :  { %v5884_v40 = vadd.f32 %v3612_v60, %v1364_v54 }
 0x227   :  { %v1664_v61 = vpop.f32.mrb[64].mxu1 }
 0x228   :  { %v3783_v38 = vpop.f32.mrb[65].mxu1  ;;  %v1682_v41 = vadd.f32 %v5902_v51, %v1664_v61 }
 0x28a   :  { %v1593_v26 = vpop.f32.mrb[0].mxu0 }
 0x28b   :  { %v4989_v54 = vadd.f32 %v1593_v26, %v5894_v20  ;;  %v1595_v52 = vpop.f32.mrb[1].mxu0 }
 0x28c   :  { %v4990_v59 = vadd.f32 %v1595_v52, %v5898_v43 }
 0x28d   :  { %v3372_v47 = vmul.f32 -1.442695, %v4989_v54 }
 0x28e   :  { %v3373_v0 = vmul.f32 -1.442695, %v4990_v59 }
 0x28f   :  { %5084 = vpow2.f32 %v3372_v47 }
 0x290   :  { %5086 = vpow2.f32 %v3373_v0 }
 0x299   :  { %v5085_v34 = vpop.eup %5084 }
 0x29a   :  { %v1672_v44 = vadd.f32 1.0, %v5085_v34  ;;  %v5087_v14 = vpop.eup %5086 }
 0x29b   :  { %v1679_v55 = vadd.f32 1.0, %v5087_v14 }
 0x29c   :  { %5088 = vrcp.f32 %v1672_v44 }
 0x29d   :  { %5090 = vrcp.f32 %v1679_v55 }
 0x2a6   :  { %v5089_v17 = vpop.eup %5088 }
 0x2a7   :  { %v1683_v45 = vmul.f32 %v5089_v17, %v1682_v41  ;;  %v5091_v24 = vpop.eup %5090 }
 0x2a8   :  { %v1686_v62 = vsub.f32 1.0, %v5091_v24  ;;  %v1688_v32 = vmul.f32 0.0, %v5091_v24 }
 0x2a9   :  { %v1684_v10 = vadd.f32 %v1683_v45, %v1434_v4 }
 0x2ab   :  { %5092 = vtanh.f32 %v1684_v10 }
 0x2b5   :  { %v5093_v16 = vpop.eup %5092 }
 0x2b6   :  { %v1687_v36 = vmul.f32 %v5093_v16, %v1686_v62 }
 0x2b8   :  { %v1689_v15 = vadd.f32 %v1688_v32, %v1687_v36 }
 0x2ba   :  { %1755 = vmatmul.mubr.f32.vlgmr.msra.gmra.mrb[2].mxu0 %v1689_v15  ;;  %3817 = vmatmul.mubr.f32.vlgmr.msra.gmra.mrb[66].mxu1 %v1689_v15 }
 0x2bb   :  { %4528 = vmatpush1.bf16.msra.mxu0 %v5776_v50  ;;  %4559 = vmatpush3.bf16.msra.mxu1 %v5676_v37 }
 0x2bc   :  { %4530 = vmatprep.subr.bf16.mxu0 %v5779_v42  ;;  %4560 = vmatprep.subr.bf16.mxu1 %v5362_v25 }
 0x2bd   :  { %1917 = vmatprep.mubr.f32.mxu0 %v5364_v13  ;;  %3851 = vmatprep.mubr.msk.f32.mxu1 %vm5363_vm0, %v5364_v13 }
 0x2bf   :  { %4532 = vmatpush1.bf16.msra.mxu0 %v5784_v31  ;;  %4562 = vmatpush3.bf16.msra.mxu1 %v5683_v49 }
 0x2c0   :  { %4534 = vmatprep.subr.bf16.mxu0 %v5787_v46  ;;  %4563 = vmatprep.subr.bf16.mxu1 %v5362_v25 }
 0x2c3   :  { %4536 = vmatpush1.bf16.msra.mxu0 %v5792_v8  ;;  %4565 = vmatpush3.bf16.msra.mxu1 %v5693_v63 }
 0x2c4   :  { %4538 = vmatprep.subr.bf16.mxu0 %v5795_v9  ;;  %4566 = vmatprep.subr.bf16.mxu1 %v5362_v25 }
 0x2c7   :  { %4540 = vmatpush1.bf16.msra.mxu0 %v5802_v12  ;;  %4568 = vmatpush3.bf16.msra.mxu1 %v5703_v19 }
 0x2c8   :  { %4542 = vmatprep.subr.bf16.mxu0 %v5805_v21  ;;  %4569 = vmatprep.subr.bf16.mxu1 %v5362_v25 }
 0x2cb   :  { %4544 = vmatpush1.bf16.msra.mxu0 %v5815_v35  ;;  %4571 = vmatpush3.bf16.msra.mxu1 %v5713_v39 }
 0x2cc   :  { %4546 = vmatprep.subr.bf16.mxu0 %v5820_v23  ;;  %4572 = vmatprep.subr.bf16.mxu1 %v5362_v25 }
 0x2cf   :  { %4548 = vmatpush1.bf16.msra.mxu0 %v5827_v58  ;;  %4574 = vmatpush3.bf16.msra.mxu1 %v5723_v57 }
 0x2d0   :  { %4550 = vmatprep.subr.bf16.mxu0 %v5830_v28  ;;  %4575 = vmatprep.subr.bf16.mxu1 %v5362_v25 }
 0x2d3   :  { %4552 = vmatpush1.bf16.msra.mxu0 %v5837_v2  ;;  %4577 = vmatpush3.bf16.msra.mxu1 %v5728_v11 }
 0x2d4   :  { %4554 = vmatprep.subr.bf16.mxu0 %v5840_v53  ;;  %4578 = vmatprep.subr.bf16.mxu1 %v5362_v25 }
 0x2d7   :  { %4556 = vmatpush1.bf16.msra.mxu0 %v5845_v18  ;;  %4580 = vmatpush3.bf16.msra.mxu1 %v5734_v33 }
 0x2d8   :  { %4582 = vmatprep.subr.bf16.mxu0 %v5774_v27  ;;  %4613 = vmatprep.subr.bf16.mxu1 %v5362_v25 }
 0x38d   :  { %v1756_v4 = vpop.f32.mrb[2].mxu0  ;;  %v1827_v60 = vpop.f32.mrb[66].mxu1 }
 0x38e   :  { %v4991_v61 = vadd.f32 %v1756_v4, %v5894_v20  ;;  %v1758_v38 = vpop.f32.mrb[3].mxu0  ;;  %v3818_v26 = vpop.f32.mrb[67].mxu1  ;;  %v1845_v14 = vadd.f32 %v5902_v51, %v1827_v60 }
 0x38f   :  { %v4992_v52 = vadd.f32 %v1758_v38, %v5898_v43 }
 0x390   :  { %v3374_v54 = vmul.f32 -1.442695, %v4991_v61 }
 0x391   :  { %v3375_v47 = vmul.f32 -1.442695, %v4992_v52 }
 0x392   :  { %5094 = vpow2.f32 %v3374_v54 }
 0x393   :  { %5096 = vpow2.f32 %v3375_v47 }
 0x39c   :  { %v5095_v59 = vpop.eup %5094 }
 0x39d   :  { %v1835_v0 = vadd.f32 1.0, %v5095_v59  ;;  %v5097_v34 = vpop.eup %5096 }
 0x39e   :  { %v1842_v44 = vadd.f32 1.0, %v5097_v34 }
 0x39f   :  { %5098 = vrcp.f32 %v1835_v0 }
 0x3a0   :  { %5100 = vrcp.f32 %v1842_v44 }
 0x3a9   :  { %v5099_v55 = vpop.eup %5098 }
 0x3aa   :  { %v1846_v41 = vmul.f32 %v5099_v55, %v1845_v14  ;;  %v5101_v45 = vpop.eup %5100 }
 0x3ab   :  { %v1849_v10 = vsub.f32 1.0, %v5101_v45  ;;  %v1851_v16 = vmul.f32 %v5101_v45, %v1689_v15 }
 0x3ac   :  { %v1847_v17 = vadd.f32 %v1846_v41, %v5872_v6 }
 0x3ae   :  { %5102 = vtanh.f32 %v1847_v17 }
 0x3b8   :  { %v5103_v24 = vpop.eup %5102 }
 0x3b9   :  { %v1850_v62 = vmul.f32 %v5103_v24, %v1849_v10 }
 0x3bb   :  { %v1852_v36 = vadd.f32 %v1851_v16, %v1850_v62 }
 0x3bd   :  { %1918 = vmatmul.mubr.f32.vlgmr.msra.gmra.mrb[4].mxu0 %v1852_v36  ;;  %3852 = vmatmul.mubr.f32.vlgmr.msra.gmra.mrb[68].mxu1 %v1852_v36 }
 0x3be   :  { %4584 = vmatpush1.bf16.msra.mxu0 %v5776_v50  ;;  %4615 = vmatpush3.bf16.msra.mxu1 %v5676_v37 }
 0x3bf   :  { %4586 = vmatprep.subr.bf16.mxu0 %v5779_v42  ;;  %4616 = vmatprep.subr.bf16.mxu1 %v5362_v25 }
 0x3c0   :  { %2080 = vmatprep.mubr.f32.mxu0 %v5364_v13  ;;  %3886 = vmatprep.mubr.msk.f32.mxu1 %vm5363_vm0, %v5364_v13 }
 0x3c2   :  { %4588 = vmatpush1.bf16.msra.mxu0 %v5784_v31  ;;  %4618 = vmatpush3.bf16.msra.mxu1 %v5683_v49 }
 0x3c3   :  { %4590 = vmatprep.subr.bf16.mxu0 %v5787_v46  ;;  %4619 = vmatprep.subr.bf16.mxu1 %v5362_v25 }
 0x3c6   :  { %4592 = vmatpush1.bf16.msra.mxu0 %v5792_v8  ;;  %4621 = vmatpush3.bf16.msra.mxu1 %v5693_v63 }
 0x3c7   :  { %4594 = vmatprep.subr.bf16.mxu0 %v5795_v9  ;;  %4622 = vmatprep.subr.bf16.mxu1 %v5362_v25 }
 0x3ca   :  { %4596 = vmatpush1.bf16.msra.mxu0 %v5802_v12  ;;  %4624 = vmatpush3.bf16.msra.mxu1 %v5703_v19 }
 0x3cb   :  { %4598 = vmatprep.subr.bf16.mxu0 %v5805_v21  ;;  %4625 = vmatprep.subr.bf16.mxu1 %v5362_v25 }
 0x3ce   :  { %4600 = vmatpush1.bf16.msra.mxu0 %v5815_v35  ;;  %4627 = vmatpush3.bf16.msra.mxu1 %v5713_v39 }
 0x3cf   :  { %4602 = vmatprep.subr.bf16.mxu0 %v5820_v23  ;;  %4628 = vmatprep.subr.bf16.mxu1 %v5362_v25 }
 0x3d2   :  { %4604 = vmatpush1.bf16.msra.mxu0 %v5827_v58  ;;  %4630 = vmatpush3.bf16.msra.mxu1 %v5723_v57 }
 0x3d3   :  { %4606 = vmatprep.subr.bf16.mxu0 %v5830_v28  ;;  %4631 = vmatprep.subr.bf16.mxu1 %v5362_v25 }
 0x3d6   :  { %4608 = vmatpush1.bf16.msra.mxu0 %v5837_v2  ;;  %4633 = vmatpush3.bf16.msra.mxu1 %v5728_v11 }
 0x3d7   :  { %4610 = vmatprep.subr.bf16.mxu0 %v5840_v53  ;;  %4634 = vmatprep.subr.bf16.mxu1 %v5362_v25 }
 0x3da   :  { %4612 = vmatpush1.bf16.msra.mxu0 %v5845_v18  ;;  %4636 = vmatpush3.bf16.msra.mxu1 %v5734_v33 }
 0x3db   :  { %4638 = vmatprep.subr.bf16.mxu0 %v5774_v27  ;;  %4669 = vmatprep.subr.bf16.mxu1 %v5362_v25 }
 0x490   :  { %v1919_v6 = vpop.f32.mrb[4].mxu0  ;;  %v1990_v32 = vpop.f32.mrb[68].mxu1 }
 0x491   :  { %v4993_v15 = vadd.f32 %v1919_v6, %v5894_v20  ;;  %v1921_v4 = vpop.f32.mrb[5].mxu0  ;;  %v3853_v60 = vpop.f32.mrb[69].mxu1  ;;  %v2008_v0 = vadd.f32 %v5902_v51, %v1990_v32 }
 0x492   :  { %v4994_v38 = vadd.f32 %v1921_v4, %v5898_v43 }
 0x493   :  { %v3376_v61 = vmul.f32 -1.442695, %v4993_v15 }
 0x494   :  { %v3377_v26 = vmul.f32 -1.442695, %v4994_v38 }
 0x495   :  { %5104 = vpow2.f32 %v3376_v61 }
 0x496   :  { %5106 = vpow2.f32 %v3377_v26 }
 0x49f   :  { %v5105_v54 = vpop.eup %5104 }
 0x4a0   :  { %v1998_v52 = vadd.f32 1.0, %v5105_v54  ;;  %v5107_v47 = vpop.eup %5106 }
 0x4a1   :  { %v2005_v59 = vadd.f32 1.0, %v5107_v47 }
 0x4a2   :  { %5108 = vrcp.f32 %v1998_v52 }
 0x4a3   :  { %5110 = vrcp.f32 %v2005_v59 }
 0x4ac   :  { %v5109_v34 = vpop.eup %5108 }
 0x4ad   :  { %v2009_v44 = vmul.f32 %v5109_v34, %v2008_v0  ;;  %v5111_v55 = vpop.eup %5110 }
 0x4ae   :  { %v2012_v41 = vsub.f32 1.0, %v5111_v55  ;;  %v2014_v10 = vmul.f32 %v5111_v55, %v1852_v36 }
 0x4af   :  { %v2010_v14 = vadd.f32 %v2009_v44, %v5874_v1 }
 0x4b1   :  { %5112 = vtanh.f32 %v2010_v14 }
 0x4bb   :  { %v5113_v17 = vpop.eup %5112 }
 0x4bc   :  { %v2013_v45 = vmul.f32 %v5113_v17, %v2012_v41 }
 0x4be   :  { %v2015_v24 = vadd.f32 %v2014_v10, %v2013_v45 }
 0x4c0   :  { %2081 = vmatmul.mubr.f32.vlgmr.msra.gmra.mrb[6].mxu0 %v2015_v24  ;;  %3887 = vmatmul.mubr.f32.vlgmr.msra.gmra.mrb[70].mxu1 %v2015_v24 }
 0x4c1   :  { %4640 = vmatpush1.bf16.msra.mxu0 %v5776_v50  ;;  %4671 = vmatpush3.bf16.msra.mxu1 %v5676_v37 }
 0x4c2   :  { %4642 = vmatprep.subr.bf16.mxu0 %v5779_v42  ;;  %4672 = vmatprep.subr.bf16.mxu1 %v5362_v25 }
 0x4c3   :  { %2243 = vmatprep.mubr.f32.mxu0 %v5364_v13  ;;  %3921 = vmatprep.mubr.msk.f32.mxu1 %vm5363_vm0, %v5364_v13 }
 0x4c5   :  { %4644 = vmatpush1.bf16.msra.mxu0 %v5784_v31  ;;  %4674 = vmatpush3.bf16.msra.mxu1 %v5683_v49 }
 0x4c6   :  { %4646 = vmatprep.subr.bf16.mxu0 %v5787_v46  ;;  %4675 = vmatprep.subr.bf16.mxu1 %v5362_v25 }
 0x4c9   :  { %4648 = vmatpush1.bf16.msra.mxu0 %v5792_v8  ;;  %4677 = vmatpush3.bf16.msra.mxu1 %v5693_v63 }
 0x4ca   :  { %4650 = vmatprep.subr.bf16.mxu0 %v5795_v9  ;;  %4678 = vmatprep.subr.bf16.mxu1 %v5362_v25 }
 0x4cd   :  { %4652 = vmatpush1.bf16.msra.mxu0 %v5802_v12  ;;  %4680 = vmatpush3.bf16.msra.mxu1 %v5703_v19 }
 0x4ce   :  { %4654 = vmatprep.subr.bf16.mxu0 %v5805_v21  ;;  %4681 = vmatprep.subr.bf16.mxu1 %v5362_v25 }
 0x4d1   :  { %4656 = vmatpush1.bf16.msra.mxu0 %v5815_v35  ;;  %4683 = vmatpush3.bf16.msra.mxu1 %v5713_v39 }
 0x4d2   :  { %4658 = vmatprep.subr.bf16.mxu0 %v5820_v23  ;;  %4684 = vmatprep.subr.bf16.mxu1 %v5362_v25 }
 0x4d5   :  { %4660 = vmatpush1.bf16.msra.mxu0 %v5827_v58  ;;  %4686 = vmatpush3.bf16.msra.mxu1 %v5723_v57 }
 0x4d6   :  { %4662 = vmatprep.subr.bf16.mxu0 %v5830_v28  ;;  %4687 = vmatprep.subr.bf16.mxu1 %v5362_v25 }
 0x4d9   :  { %4664 = vmatpush1.bf16.msra.mxu0 %v5837_v2  ;;  %4689 = vmatpush3.bf16.msra.mxu1 %v5728_v11 }
 0x4da   :  { %4666 = vmatprep.subr.bf16.mxu0 %v5840_v53  ;;  %4690 = vmatprep.subr.bf16.mxu1 %v5362_v25 }
 0x4dd   :  { %4668 = vmatpush1.bf16.msra.mxu0 %v5845_v18  ;;  %4692 = vmatpush3.bf16.msra.mxu1 %v5734_v33 }
 0x4de   :  { %4694 = vmatprep.subr.bf16.mxu0 %v5774_v27  ;;  %4725 = vmatprep.subr.bf16.mxu1 %v5362_v25 }
 0x593   :  { %v2082_v1 = vpop.f32.mrb[6].mxu0  ;;  %v2153_v62 = vpop.f32.mrb[70].mxu1 }
 0x594   :  { %v4995_v16 = vadd.f32 %v2082_v1, %v5894_v20  ;;  %v2084_v36 = vpop.f32.mrb[7].mxu0  ;;  %v3888_v6 = vpop.f32.mrb[71].mxu1  ;;  %v2171_v54 = vadd.f32 %v5902_v51, %v2153_v62 }
 0x595   :  { %v4996_v15 = vadd.f32 %v2084_v36, %v5898_v43 }
 0x596   :  { %v3378_v32 = vmul.f32 -1.442695, %v4995_v16 }
 0x597   :  { %v3379_v4 = vmul.f32 -1.442695, %v4996_v15 }
 0x598   :  { %5114 = vpow2.f32 %v3378_v32 }
 0x599   :  { %5116 = vpow2.f32 %v3379_v4 }
 0x5a2   :  { %v5115_v60 = vpop.eup %5114 }
 0x5a3   :  { %v2161_v61 = vadd.f32 1.0, %v5115_v60  ;;  %v5117_v38 = vpop.eup %5116 }
 0x5a4   :  { %v2168_v26 = vadd.f32 1.0, %v5117_v38 }
 0x5a5   :  { %5118 = vrcp.f32 %v2161_v61 }
 0x5a6   :  { %5120 = vrcp.f32 %v2168_v26 }
 0x5af   :  { %v5119_v52 = vpop.eup %5118 }
 0x5b0   :  { %v2172_v47 = vmul.f32 %v5119_v52, %v2171_v54  ;;  %v5121_v0 = vpop.eup %5120 }
 0x5b1   :  { %v2175_v34 = vsub.f32 1.0, %v5121_v0  ;;  %v2177_v55 = vmul.f32 %v5121_v0, %v2015_v24 }
 0x5b2   :  { %v2173_v59 = vadd.f32 %v2172_v47, %v5876_v7 }
 0x5b4   :  { %5122 = vtanh.f32 %v2173_v59 }
 0x5be   :  { %v5123_v44 = vpop.eup %5122 }
 0x5bf   :  { %v2176_v14 = vmul.f32 %v5123_v44, %v2175_v34 }
 0x5c1   :  { %v2178_v41 = vadd.f32 %v2177_v55, %v2176_v14 }
 0x5c3   :  { %2244 = vmatmul.mubr.f32.vlgmr.msra.gmra.mrb[8].mxu0 %v2178_v41  ;;  %3922 = vmatmul.mubr.f32.vlgmr.msra.gmra.mrb[72].mxu1 %v2178_v41 }
 0x5c4   :  { %4696 = vmatpush1.bf16.msra.mxu0 %v5776_v50  ;;  %4727 = vmatpush3.bf16.msra.mxu1 %v5676_v37 }
 0x5c5   :  { %4698 = vmatprep.subr.bf16.mxu0 %v5779_v42  ;;  %4728 = vmatprep.subr.bf16.mxu1 %v5362_v25 }
 0x5c6   :  { %2406 = vmatprep.mubr.f32.mxu0 %v5364_v13  ;;  %3956 = vmatprep.mubr.msk.f32.mxu1 %vm5363_vm0, %v5364_v13 }
 0x5c8   :  { %4700 = vmatpush1.bf16.msra.mxu0 %v5784_v31  ;;  %4730 = vmatpush3.bf16.msra.mxu1 %v5683_v49 }
 0x5c9   :  { %4702 = vmatprep.subr.bf16.mxu0 %v5787_v46  ;;  %4731 = vmatprep.subr.bf16.mxu1 %v5362_v25 }
 0x5cc   :  { %4704 = vmatpush1.bf16.msra.mxu0 %v5792_v8  ;;  %4733 = vmatpush3.bf16.msra.mxu1 %v5693_v63 }
 0x5cd   :  { %4706 = vmatprep.subr.bf16.mxu0 %v5795_v9  ;;  %4734 = vmatprep.subr.bf16.mxu1 %v5362_v25 }
 0x5d0   :  { %4708 = vmatpush1.bf16.msra.mxu0 %v5802_v12  ;;  %4736 = vmatpush3.bf16.msra.mxu1 %v5703_v19 }
 0x5d1   :  { %4710 = vmatprep.subr.bf16.mxu0 %v5805_v21  ;;  %4737 = vmatprep.subr.bf16.mxu1 %v5362_v25 }
 0x5d4   :  { %4712 = vmatpush1.bf16.msra.mxu0 %v5815_v35  ;;  %4739 = vmatpush3.bf16.msra.mxu1 %v5713_v39 }
 0x5d5   :  { %4714 = vmatprep.subr.bf16.mxu0 %v5820_v23  ;;  %4740 = vmatprep.subr.bf16.mxu1 %v5362_v25 }
 0x5d8   :  { %4716 = vmatpush1.bf16.msra.mxu0 %v5827_v58  ;;  %4742 = vmatpush3.bf16.msra.mxu1 %v5723_v57 }
 0x5d9   :  { %4718 = vmatprep.subr.bf16.mxu0 %v5830_v28  ;;  %4743 = vmatprep.subr.bf16.mxu1 %v5362_v25 }
 0x5dc   :  { %4720 = vmatpush1.bf16.msra.mxu0 %v5837_v2  ;;  %4745 = vmatpush3.bf16.msra.mxu1 %v5728_v11 }
 0x5dd   :  { %4722 = vmatprep.subr.bf16.mxu0 %v5840_v53  ;;  %4746 = vmatprep.subr.bf16.mxu1 %v5362_v25 }
 0x5e0   :  { %4724 = vmatpush1.bf16.msra.mxu0 %v5845_v18  ;;  %4748 = vmatpush3.bf16.msra.mxu1 %v5734_v33 }
 0x5e1   :  { %4750 = vmatprep.subr.bf16.mxu0 %v5774_v27  ;;  %4781 = vmatprep.subr.bf16.mxu1 %v5362_v25 }
 0x696   :  { %v2245_v7 = vpop.f32.mrb[8].mxu0  ;;  %v2316_v17 = vpop.f32.mrb[72].mxu1 }
 0x697   :  { %v4997_v45 = vadd.f32 %v2245_v7, %v5894_v20  ;;  %v2247_v10 = vpop.f32.mrb[9].mxu0  ;;  %v3923_v24 = vpop.f32.mrb[73].mxu1  ;;  %v2334_v4 = vadd.f32 %v5902_v51, %v2316_v17 }
 0x698   :  { %v4998_v62 = vadd.f32 %v2247_v10, %v5898_v43 }
 0x699   :  { %v3380_v1 = vmul.f32 -1.442695, %v4997_v45 }
 0x69a   :  { %v3381_v16 = vmul.f32 -1.442695, %v4998_v62 }
 0x69b   :  { %5124 = vpow2.f32 %v3380_v1 }
 0x69c   :  { %5126 = vpow2.f32 %v3381_v16 }
 0x6a5   :  { %v5125_v36 = vpop.eup %5124 }
 0x6a6   :  { %v2324_v6 = vadd.f32 1.0, %v5125_v36  ;;  %v5127_v32 = vpop.eup %5126 }
 0x6a7   :  { %v2331_v15 = vadd.f32 1.0, %v5127_v32 }
 0x6a8   :  { %5128 = vrcp.f32 %v2324_v6 }
 0x6a9   :  { %5130 = vrcp.f32 %v2331_v15 }
 0x6b2   :  { %v5129_v60 = vpop.eup %5128 }
 0x6b3   :  { %v2335_v61 = vmul.f32 %v5129_v60, %v2334_v4  ;;  %v5131_v26 = vpop.eup %5130 }
 0x6b4   :  { %v2338_v54 = vsub.f32 1.0, %v5131_v26  ;;  %v2340_v59 = vmul.f32 %v5131_v26, %v2178_v41  ;;  %v2839_v26 = vld [vmem:[#allocation11 + $0x40] sm:$0xff] }
 0x6b5   :  { %v2336_v38 = vadd.f32 %v2335_v61, %v5878_v56 }
 0x6b7   :  { %5132 = vtanh.f32 %v2336_v38  ;;  %v2831_v38 = vld [vmem:[#allocation11] sm:$0xff] }
 0x6c1   :  { %v5133_v52 = vpop.eup %5132 }
 0x6c2   :  { %v2339_v47 = vmul.f32 %v5133_v52, %v2338_v54  ;;  %v2848_v54 = vld [vmem:[#allocation11 + $0x88] sm:$0xff] }
 0x6c3   :  { %v2856_v52 = vld [vmem:[#allocation11 + $0xc8] sm:$0xff] }
 0x6c4   :  { %v2341_v0 = vadd.f32 %v2340_v59, %v2339_v47  ;;  %v4865_v47 = vpack.c.bf16 %v2856_v52, %v2848_v54  ;;  %v2847_v59 = vld [vmem:[#allocation11 + $0x80] sm:$0xff] }
 0x6c6   :  { %2407 = vmatmul.mubr.f32.vlgmr.msra.gmra.mrb[10].mxu0 %v2341_v0  ;;  %3957 = vmatmul.mubr.f32.vlgmr.msra.gmra.mrb[74].mxu1 %v2341_v0 }
 0x6c7   :  { %4752 = vmatpush1.bf16.msra.mxu0 %v5776_v50  ;;  %4783 = vmatpush3.bf16.msra.mxu1 %v5676_v37 }
 0x6c8   :  { %4754 = vmatprep.subr.bf16.mxu0 %v5779_v42  ;;  %4784 = vmatprep.subr.bf16.mxu1 %v5362_v25 }
 0x6c9   :  { %2569 = vmatprep.mubr.f32.mxu0 %v5364_v13  ;;  %3991 = vmatprep.mubr.msk.f32.mxu1 %vm5363_vm0, %v5364_v13 }
 0x6cb   :  { %4756 = vmatpush1.bf16.msra.mxu0 %v5784_v31  ;;  %4786 = vmatpush3.bf16.msra.mxu1 %v5683_v49 }
 0x6cc   :  { %4758 = vmatprep.subr.bf16.mxu0 %v5787_v46  ;;  %4787 = vmatprep.subr.bf16.mxu1 %v5362_v25 }
 0x6cf   :  { %4760 = vmatpush1.bf16.msra.mxu0 %v5792_v8  ;;  %4789 = vmatpush3.bf16.msra.mxu1 %v5693_v63 }
 0x6d0   :  { %4762 = vmatprep.subr.bf16.mxu0 %v5795_v9  ;;  %4790 = vmatprep.subr.bf16.mxu1 %v5362_v25 }
 0x6d3   :  { %4764 = vmatpush1.bf16.msra.mxu0 %v5802_v12  ;;  %4792 = vmatpush3.bf16.msra.mxu1 %v5703_v19 }
 0x6d4   :  { %4766 = vmatprep.subr.bf16.mxu0 %v5805_v21  ;;  %4793 = vmatprep.subr.bf16.mxu1 %v5362_v25 }
 0x6d7   :  { %4768 = vmatpush1.bf16.msra.mxu0 %v5815_v35  ;;  %4795 = vmatpush3.bf16.msra.mxu1 %v5713_v39 }
 0x6d8   :  { %4770 = vmatprep.subr.bf16.mxu0 %v5820_v23  ;;  %4796 = vmatprep.subr.bf16.mxu1 %v5362_v25 }
 0x6db   :  { %4772 = vmatpush1.bf16.msra.mxu0 %v5827_v58  ;;  %4798 = vmatpush3.bf16.msra.mxu1 %v5723_v57 }
 0x6dc   :  { %4774 = vmatprep.subr.bf16.mxu0 %v5830_v28  ;;  %4799 = vmatprep.subr.bf16.mxu1 %v5362_v25 }
 0x6df   :  { %4776 = vmatpush1.bf16.msra.mxu0 %v5837_v2  ;;  %4801 = vmatpush3.bf16.msra.mxu1 %v5728_v11 }
 0x6e0   :  { %4778 = vmatprep.subr.bf16.mxu0 %v5840_v53  ;;  %4802 = vmatprep.subr.bf16.mxu1 %v5362_v25 }
 0x6e3   :  { %4780 = vmatpush1.bf16.msra.mxu0 %v5845_v18  ;;  %4804 = vmatpush3.bf16.msra.mxu1 %v5734_v33 }
 0x6e4   :  { %4806 = vmatprep.subr.bf16.mxu0 %v5774_v27  ;;  %4837 = vmatprep.subr.bf16.mxu1 %v5362_v25 }
 0x799   :  { %v2408_v56 = vpop.f32.mrb[10].mxu0  ;;  %v2479_v34 = vpop.f32.mrb[74].mxu1 }
 0x79a   :  { %v4999_v44 = vadd.f32 %v2408_v56, %v5894_v20  ;;  %v2410_v14 = vpop.f32.mrb[11].mxu0  ;;  %v3958_v55 = vpop.f32.mrb[75].mxu1  ;;  %v2497_v27 = vadd.f32 %v5902_v51, %v2479_v34  ;;  %v2864_v34 = vld [vmem:[#allocation11 + $0x108] sm:$0xff] }
 0x79b   :  { %v5000_v7 = vadd.f32 %v2410_v14, %v5898_v43  ;;  %v2863_v55 = vld [vmem:[#allocation11 + $0x100] sm:$0xff] }
 0x79c   :  { %v3382_v41 = vmul.f32 -1.442695, %v4999_v44  ;;  %v2872_v44 = vld [vmem:[#allocation11 + $0x148] sm:$0xff] }
 0x79d   :  { %v3383_v17 = vmul.f32 -1.442695, %v5000_v7  ;;  %v4869_v14 = vpack.c.bf16 %v2872_v44, %v2864_v34 }
 0x79e   :  { %5134 = vpow2.f32 %v3382_v41  ;;  %v2871_v41 = vld [vmem:[#allocation11 + $0x140] sm:$0xff] }
 0x79f   :  { %5136 = vpow2.f32 %v3383_v17  ;;  %v4871_v7 = vpack.c.bf16 %v2871_v41, %v2863_v55  ;;  %v2880_v17 = vld [vmem:[#allocation11 + $0x188] sm:$0xff]  ;;  %v2850_v41 = vld [vmem:[#allocation11 + $0x98] sm:$0xff] }
 0x7a8   :  { %v5135_v45 = vpop.eup %5134 }
 0x7a9   :  { %v2487_v10 = vadd.f32 1.0, %v5135_v45  ;;  %v5137_v24 = vpop.eup %5136  ;;  %v2888_v45 = vld [vmem:[#allocation11 + $0x1c8] sm:$0xff] }
 0x7aa   :  { %v2494_v1 = vadd.f32 1.0, %v5137_v24  ;;  %v2879_v24 = vld [vmem:[#allocation11 + $0x180] sm:$0xff] }
 0x7ab   :  { %5138 = vrcp.f32 %v2487_v10  ;;  %v4873_v10 = vpack.c.bf16 %v2888_v45, %v2880_v17 }
 0x7ac   :  { %5140 = vrcp.f32 %v2494_v1  ;;  %v2887_v1 = vld [vmem:[#allocation11 + $0x1c0] sm:$0xff] }
 0x7b5   :  { %v5139_v62 = vpop.eup %5138 }
 0x7b6   :  { %v2498_v16 = vmul.f32 %v5139_v62, %v2497_v27  ;;  %v5141_v6 = vpop.eup %5140  ;;  %v4875_v27 = vpack.c.bf16 %v2887_v1, %v2879_v24  ;;  %v2896_v62 = vld [vmem:[#allocation11 + $0x208] sm:$0xff]  ;;  %v2849_v1 = vld [vmem:[#allocation11 + $0x90] sm:$0xff] }
 0x7b7   :  { %v2501_v32 = vsub.f32 1.0, %v5141_v6  ;;  %v2503_v60 = vmul.f32 %v5141_v6, %v2341_v0  ;;  %v2855_v0 = vld [vmem:[#allocation11 + $0xc0] sm:$0xff] }
 0x7b8   :  { %v2499_v36 = vadd.f32 %v2498_v16, %v5880_v30  ;;  %v4867_v56 = vpack.c.bf16 %v2855_v0, %v2847_v59  ;;  %v2904_v16 = vld [vmem:[#allocation11 + $0x248] sm:$0xff]  ;;  %v2895_v6 = vld [vmem:[#allocation11 + $0x200] sm:$0xff] }
 0x7ba   :  { %5142 = vtanh.f32 %v2499_v36  ;;  %v4877_v36 = vpack.c.bf16 %v2904_v16, %v2896_v62  ;;  %v2866_v62 = vld [vmem:[#allocation11 + $0x118] sm:$0xff] }
 0x7bb   :  { %v2874_v16 = vld [vmem:[#allocation11 + $0x158] sm:$0xff] }
 0x7c4   :  { %v5143_v15 = vpop.eup %5142 }
 0x7c5   :  { %v2502_v4 = vmul.f32 %v5143_v15, %v2501_v32  ;;  %v2903_v32 = vld [vmem:[#allocation11 + $0x240] sm:$0xff] }
 0x7c6   :  { %v4879_v15 = vpack.c.bf16 %v2903_v32, %v2895_v6  ;;  %v2865_v6 = vld [vmem:[#allocation11 + $0x110] sm:$0xff] }
 0x7c7   :  { %v2504_v61 = vadd.f32 %v2503_v60, %v2502_v4  ;;  %v2912_v4 = vld [vmem:[#allocation11 + $0x288] sm:$0xff]  ;;  %v2873_v32 = vld [vmem:[#allocation11 + $0x150] sm:$0xff] }
 0x7c8   :  { %v2920_v60 = vld [vmem:[#allocation11 + $0x2c8] sm:$0xff] }
 0x7c9   :  { %2570 = vmatmul.mubr.f32.vlgmr.msra.gmra.mrb[12].mxu0 %v2504_v61  ;;  %3992 = vmatmul.mubr.f32.vlgmr.msra.gmra.mrb[76].mxu1 %v2504_v61 }
 0x7ca   :  { %4808 = vmatpush1.bf16.msra.mxu0 %v5776_v50  ;;  %4839 = vmatpush3.bf16.msra.mxu1 %v5676_v37 }
 0x7cb   :  { %4810 = vmatprep.subr.bf16.mxu0 %v5779_v42  ;;  %4840 = vmatprep.subr.bf16.mxu1 %v5362_v25 }
 0x7cc   :  { %2732 = vmatprep.mubr.f32.mxu0 %v5364_v13  ;;  %4026 = vmatprep.mubr.msk.f32.mxu1 %vm5363_vm0, %v5364_v13 }
 0x7ce   :  { %4812 = vmatpush1.bf16.msra.mxu0 %v5784_v31  ;;  %4842 = vmatpush3.bf16.msra.mxu1 %v5683_v49 }
 0x7cf   :  { %4814 = vmatprep.subr.bf16.mxu0 %v5787_v46  ;;  %4843 = vmatprep.subr.bf16.mxu1 %v5362_v25 }
 0x7d2   :  { %4816 = vmatpush1.bf16.msra.mxu0 %v5792_v8  ;;  %4845 = vmatpush3.bf16.msra.mxu1 %v5693_v63 }
 0x7d3   :  { %4818 = vmatprep.subr.bf16.mxu0 %v5795_v9  ;;  %4846 = vmatprep.subr.bf16.mxu1 %v5362_v25 }
 0x7d6   :  { %4820 = vmatpush1.bf16.msra.mxu0 %v5802_v12  ;;  %4848 = vmatpush3.bf16.msra.mxu1 %v5703_v19 }
 0x7d7   :  { %4822 = vmatprep.subr.bf16.mxu0 %v5805_v21  ;;  %4849 = vmatprep.subr.bf16.mxu1 %v5362_v25 }
 0x7da   :  { %4824 = vmatpush1.bf16.msra.mxu0 %v5815_v35  ;;  %4851 = vmatpush3.bf16.msra.mxu1 %v5713_v39 }
 0x7db   :  { %4826 = vmatprep.subr.bf16.mxu0 %v5820_v23  ;;  %4852 = vmatprep.subr.bf16.mxu1 %v5362_v25 }
 0x7de   :  { %4828 = vmatpush1.bf16.msra.mxu0 %v5827_v58  ;;  %4854 = vmatpush3.bf16.msra.mxu1 %v5723_v57 }
 0x7df   :  { %4830 = vmatprep.subr.bf16.mxu0 %v5830_v28  ;;  %4855 = vmatprep.subr.bf16.mxu1 %v5362_v25 }
 0x7e2   :  { %4832 = vmatpush1.bf16.msra.mxu0 %v5837_v2  ;;  %4857 = vmatpush3.bf16.msra.mxu1 %v5728_v11 }
 0x7e3   :  { %4834 = vmatprep.subr.bf16.mxu0 %v5840_v53  ;;  %4858 = vmatprep.subr.bf16.mxu1 %v5362_v25  ;;  %v2832_v53 = vld [vmem:[#allocation11 + $0x8] sm:$0xff] }
 0x7e6   :  { %4836 = vmatpush1.bf16.msra.mxu0 %v5845_v18  ;;  %4860 = vmatpush3.bf16.msra.mxu1 %v5734_v33  ;;  %v2840_v18 = vld [vmem:[#allocation11 + $0x48] sm:$0xff] }
 0x7e7   :  { %v4861_v30 = vpack.c.bf16 %v2840_v18, %v2832_v53 }
 0x7e9   :  { %4862 = vmatprep.subr.bf16.mxu1 %v4861_v30 }
 0x89c   :  { %v2571_v37 = vpop.f32.mrb[12].mxu0  ;;  %v2642_v49 = vpop.f32.mrb[76].mxu1 }
 0x89d   :  { %v5001_v63 = vadd.f32 %v2571_v37, %v5894_v20  ;;  %v2573_v19 = vpop.f32.mrb[13].mxu0  ;;  %v3993_v39 = vpop.f32.mrb[77].mxu1  ;;  %v2660_v8 = vadd.f32 %v5902_v51, %v2642_v49  ;;  %v2911_v37 = vld [vmem:[#allocation11 + $0x280] sm:$0xff] }
 0x89e   :  { %v5002_v50 = vadd.f32 %v2573_v19, %v5898_v43  ;;  %v2919_v49 = vld [vmem:[#allocation11 + $0x2c0] sm:$0xff]  ;;  %v2936_v39 = vld [vmem:[#allocation11 + $0x348] sm:$0xff] }
 0x89f   :  { %v3384_v57 = vmul.f32 -1.442695, %v5001_v63  ;;  %v2928_v63 = vld [vmem:[#allocation11 + $0x308] sm:$0xff]  ;;  %v4883_v19 = vpack.c.bf16 %v2919_v49, %v2911_v37  ;;  %v2889_v37 = vld [vmem:[#allocation11 + $0x1d0] sm:$0xff]  ;;  %v2898_v49 = vld [vmem:[#allocation11 + $0x218] sm:$0xff] }
 0x8a0   :  { %v3385_v42 = vmul.f32 -1.442695, %v5002_v50  ;;  %v2935_v50 = vld [vmem:[#allocation11 + $0x340] sm:$0xff] }
 0x8a1   :  { %5144 = vpow2.f32 %v3384_v57  ;;  %v2927_v57 = vld [vmem:[#allocation11 + $0x300] sm:$0xff] }
 0x8a2   :  { %5146 = vpow2.f32 %v3385_v42  ;;  %v4885_v42 = vpack.c.bf16 %v2936_v39, %v2928_v63  ;;  %v2906_v63 = vld [vmem:[#allocation11 + $0x258] sm:$0xff] }
 0x8a3   :  { %v4909_v39 = vpack.c.bf16 %v2906_v63, %v2898_v49  ;;  %v2915_v49 = vld [vmem:[#allocation11 + $0x2a0] sm:$0xff] }
 0x8a4   :  { %v2923_v63 = vld [vmem:[#allocation11 + $0x2e0] sm:$0xff] }
 0x8ab   :  { %v5145_v11 = vpop.eup %5144 }
 0x8ac   :  { %v2650_v31 = vadd.f32 1.0, %v5145_v11  ;;  %v5147_v25 = vpop.eup %5146  ;;  %v2944_v11 = vld [vmem:[#allocation11 + $0x388] sm:$0xff] }
 0x8ad   :  { %v2657_v46 = vadd.f32 1.0, %v5147_v25  ;;  %v4887_v25 = vpack.c.bf16 %v2935_v50, %v2927_v57  ;;  %v2897_v57 = vld [vmem:[#allocation11 + $0x210] sm:$0xff] }
 0x8ae   :  { %5148 = vrcp.f32 %v2650_v31  ;;  %v2952_v31 = vld [vmem:[#allocation11 + $0x3c8] sm:$0xff]  ;;  %v2905_v50 = vld [vmem:[#allocation11 + $0x250] sm:$0xff] }
 0x8af   :  { %5150 = vrcp.f32 %v2657_v46  ;;  %v4889_v46 = vpack.c.bf16 %v2952_v31, %v2944_v11  ;;  %v2922_v11 = vld [vmem:[#allocation11 + $0x2d8] sm:$0xff]  ;;  %v4911_v31 = vpack.c.bf16 %v2905_v50, %v2897_v57  ;;  %v4947_v57 = vpack.c.bf16 %v2923_v63, %v2915_v49  ;;  %v2949_v63 = vld [vmem:[#allocation11 + $0x3b0] sm:$0xff] }
 0x8b8   :  { %v5149_v33 = vpop.eup %5148 }
 0x8b9   :  { %v2661_v9 = vmul.f32 %v5149_v33, %v2660_v8  ;;  %v5151_v21 = vpop.eup %5150  ;;  %v2943_v8 = vld [vmem:[#allocation11 + $0x380] sm:$0xff] }
 0x8ba   :  { %v2664_v35 = vsub.f32 1.0, %v5151_v21  ;;  %v2666_v28 = vmul.f32 %v5151_v21, %v2504_v61  ;;  %v4881_v61 = vpack.c.bf16 %v2920_v60, %v2912_v4  ;;  %v2951_v33 = vld [vmem:[#allocation11 + $0x3c0] sm:$0xff]  ;;  %v4903_v4 = vpack.c.bf16 %v2873_v32, %v2865_v6 }
 0x8bb   :  { %v2662_v12 = vadd.f32 %v2661_v9, %v5882_v22  ;;  %v4863_v22 = vpack.c.bf16 %v2839_v26, %v2831_v38  ;;  %v2834_v9 = vld [vmem:[#allocation11 + $0x18] sm:$0xff]  ;;  %v4891_v21 = vpack.c.bf16 %v2951_v33, %v2943_v8  ;;  %v2921_v8 = vld [vmem:[#allocation11 + $0x2d0] sm:$0xff] }
 0x8bc   :  { %v2930_v33 = vld [vmem:[#allocation11 + $0x318] sm:$0xff] }
 0x8bd   :  { %5152 = vtanh.f32 %v2662_v12  ;;  %v2842_v12 = vld [vmem:[#allocation11 + $0x58] sm:$0xff] }
 0x8c7   :  { %v5153_v23 = vpop.eup %5152 }
 0x8c8   :  { %v2665_v58 = vmul.f32 %v5153_v23, %v2664_v35  ;;  %v4893_v35 = vpack.c.bf16 %v2842_v12, %v2834_v9  ;;  %v2938_v9 = vld [vmem:[#allocation11 + $0x358] sm:$0xff] }
 0x8ca   :  { %v6137_v2 = vadd.f32 %v2666_v28, %v2665_v58 }
 0x8cc   :  { %2733 = vmatmul.mubr.f32.vlgmr.msra.gmra.mrb[14].mxu0 %v6137_v2  ;;  %4027 = vmatmul.mubr.f32.vlgmr.msra.gmra.mrb[78].mxu1 %v6137_v2 }
 0x8cd   :  { %3065 = vmatprep.mubr.f32.mxu1 %v5364_v13  ;;  %4864 = vmatpush1.bf16.msra.mxu1 %v4863_v22 }
 0x8ce   :  { %4866 = vmatprep.subr.bf16.mxu1 %v4865_v47 }
 0x8d1   :  { %4868 = vmatpush1.bf16.msra.mxu1 %v4867_v56 }
 0x8d2   :  { %4870 = vmatprep.subr.bf16.mxu1 %v4869_v14  ;;  %v2833_v14 = vld [vmem:[#allocation11 + $0x10] sm:$0xff] }
 0x8d5   :  { %4872 = vmatpush1.bf16.msra.mxu1 %v4871_v7  ;;  %v2858_v7 = vld [vmem:[#allocation11 + $0xd8] sm:$0xff] }
 0x8d6   :  { %4874 = vmatprep.subr.bf16.mxu1 %v4873_v10 }
 0x8d9   :  { %4876 = vmatpush1.bf16.msra.mxu1 %v4875_v27  ;;  %v2857_v27 = vld [vmem:[#allocation11 + $0xd0] sm:$0xff] }
 0x8da   :  { %4878 = vmatprep.subr.bf16.mxu1 %v4877_v36  ;;  %v4901_v36 = vpack.c.bf16 %v2874_v16, %v2866_v62  ;;  %v2883_v62 = vld [vmem:[#allocation11 + $0x1a0] sm:$0xff] }
 0x8db   :  { %v2891_v16 = vld [vmem:[#allocation11 + $0x1e0] sm:$0xff] }
 0x8dc   :  { %v4939_v6 = vpack.c.bf16 %v2891_v16, %v2883_v62  ;;  %v2917_v16 = vld [vmem:[#allocation11 + $0x2b0] sm:$0xff] }
 0x8dd   :  { %4880 = vmatpush1.bf16.msra.mxu1 %v4879_v15  ;;  %v2882_v15 = vld [vmem:[#allocation11 + $0x198] sm:$0xff] }
 0x8de   :  { %4882 = vmatprep.subr.bf16.mxu1 %v4881_v61  ;;  %v2881_v61 = vld [vmem:[#allocation11 + $0x190] sm:$0xff] }
 0x8e1   :  { %4884 = vmatpush1.bf16.msra.mxu1 %v4883_v19  ;;  %v4907_v19 = vpack.c.bf16 %v2889_v37, %v2881_v61 }
 0x8e2   :  { %4886 = vmatprep.subr.bf16.mxu1 %v4885_v42  ;;  %v2914_v42 = vld [vmem:[#allocation11 + $0x298] sm:$0xff] }
 0x8e5   :  { %4888 = vmatpush1.bf16.msra.mxu1 %v4887_v25  ;;  %v4913_v25 = vpack.c.bf16 %v2922_v11, %v2914_v42  ;;  %v2931_v42 = vld [vmem:[#allocation11 + $0x320] sm:$0xff] }
 0x8e6   :  { %4890 = vmatprep.subr.bf16.mxu1 %v4889_v46  ;;  %v2913_v46 = vld [vmem:[#allocation11 + $0x290] sm:$0xff]  ;;  %v2939_v11 = vld [vmem:[#allocation11 + $0x360] sm:$0xff] }
 0x8e7   :  { %v4915_v12 = vpack.c.bf16 %v2921_v8, %v2913_v46  ;;  %v4951_v46 = vpack.c.bf16 %v2939_v11, %v2931_v42  ;;  %v3293_v42 = vld [vmem:[#allocation14] sm:$0xff] }
 0x8e9   :  { %4892 = vmatpush1.bf16.msra.mxu1 %v4891_v21  ;;  %v4917_v21 = vpack.c.bf16 %v2938_v9, %v2930_v33  ;;  %v2947_v33 = vld [vmem:[#allocation11 + $0x3a0] sm:$0xff] }
 0x8ea   :  { %4894 = vmatprep.subr.bf16.mxu1 %v4893_v35  ;;  %v2929_v35 = vld [vmem:[#allocation11 + $0x310] sm:$0xff]  ;;  %v2955_v9 = vld [vmem:[#allocation11 + $0x3e0] sm:$0xff] }
 0x99f   :  { %v2734_v23 = vpop.f32.mrb[14].mxu0  ;;  %v2805_v58 = vpop.f32.mrb[78].mxu1 }
 0x9a0   :  { %v5003_v28 = vadd.f32 %v2734_v23, %v5894_v20  ;;  %v2736_v53 = vpop.f32.mrb[15].mxu0  ;;  %v4028_v18 = vpop.f32.mrb[79].mxu1  ;;  %v2823_v59 = vadd.f32 %v5902_v51, %v2805_v58  ;;  %v4897_v51 = vpack.c.bf16 %v2858_v7, %v2850_v41  ;;  %v2937_v23 = vld [vmem:[#allocation11 + $0x350] sm:$0xff]  ;;  %v2946_v58 = vld [vmem:[#allocation11 + $0x398] sm:$0xff] }
 0x9a1   :  { %v5004_v38 = vadd.f32 %v2736_v53, %v5898_v43  ;;  %v2841_v43 = vld [vmem:[#allocation11 + $0x50] sm:$0xff]  ;;  %v4919_v53 = vpack.c.bf16 %v2937_v23, %v2929_v35  ;;  %v4955_v35 = vpack.c.bf16 %v2955_v9, %v2947_v33  ;;  %v3302_v9 = vrot.slane %v3293_v42, %v5890_v48 }
 0x9a2   :  { %v3386_v30 = vmul.f32 -1.442695, %v5003_v28  ;;  %v4895_v10 = vpack.c.bf16 %v2841_v43, %v2833_v14  ;;  %v2954_v28 = vld [vmem:[#allocation11 + $0x3d8] sm:$0xff]  ;;  %v2859_v14 = vld [vmem:[#allocation11 + $0xe0] sm:$0xff]  ;;  %v2868_v43 = vld [vmem:[#allocation11 + $0x128] sm:$0xff] }
 0x9a3   :  { %v3387_v26 = vmul.f32 -1.442695, %v5004_v38  ;;  %v4921_v18 = vpack.c.bf16 %v2954_v28, %v2946_v58  ;;  %v2953_v38 = vld [vmem:[#allocation11 + $0x3d0] sm:$0xff] }
 0x9a4   :  { %5154 = vpow2.f32 %v3386_v30  ;;  %v2945_v30 = vld [vmem:[#allocation11 + $0x390] sm:$0xff] }
 0x9a5   :  { %5156 = vpow2.f32 %v3387_v26  ;;  %v2836_v26 = vld [vmem:[#allocation11 + $0x28] sm:$0xff]  ;;  %v2837_v58 = vld [vmem:[#allocation11 + $0x30] sm:$0xff] }
 0x9a6   :  { %v2845_v28 = vld [vmem:[#allocation11 + $0x70] sm:$0xff] }
 0x9ae   :  { %v5155_v22 = vpop.eup %5154 }
 0x9af   :  { %v2813_v54 = vadd.f32 1.0, %v5155_v22  ;;  %v5157_v52 = vpop.eup %5156  ;;  %v2844_v22 = vld [vmem:[#allocation11 + $0x68] sm:$0xff] }
 0x9b0   :  { %v2820_v47 = vadd.f32 1.0, %v5157_v52  ;;  %v4925_v52 = vpack.c.bf16 %v2844_v22, %v2836_v26  ;;  %v2853_v26 = vld [vmem:[#allocation11 + $0xb0] sm:$0xff] }
 0x9b1   :  { %5158 = vrcp.f32 %v2813_v54  ;;  %v4923_v54 = vpack.c.bf16 %v2953_v38, %v2945_v30  ;;  %v4959_v30 = vpack.c.bf16 %v2845_v28, %v2837_v58  ;;  %v2861_v22 = vld [vmem:[#allocation11 + $0xf0] sm:$0xff] }
 0x9b2   :  { %5160 = vrcp.f32 %v2820_v47  ;;  %v2835_v47 = vld [vmem:[#allocation11 + $0x20] sm:$0xff] }
 0x9bb   :  { %v5159_v0 = vpop.eup %5158 }
 0x9bc   :  { %v2824_v56 = vmul.f32 %v5159_v0, %v2823_v59  ;;  %v5161_v34 = vpop.eup %5160  ;;  %v2843_v59 = vld [vmem:[#allocation11 + $0x60] sm:$0xff]  ;;  %v2852_v0 = vld [vmem:[#allocation11 + $0xa8] sm:$0xff] }
 0x9bd   :  { %v2827_v44 = vsub.f32 1.0, %v5161_v34  ;;  %v2829_v45 = vmul.f32 %v5161_v34, %v6137_v2  ;;  %v2890_v2 = vld [vmem:[#allocation11 + $0x1d8] sm:$0xff] }
 0x9be   :  { %v2825_v20 = vadd.f32 %v2824_v56, %v5884_v40  ;;  %v4899_v40 = vpack.c.bf16 %v2857_v27, %v2849_v1  ;;  %v4905_v60 = vpack.c.bf16 %v2890_v2, %v2882_v15  ;;  %v2860_v56 = vld [vmem:[#allocation11 + $0xe8] sm:$0xff]  ;;  %v2899_v15 = vld [vmem:[#allocation11 + $0x220] sm:$0xff] }
 0x9bf   :  { %v4929_v34 = vpack.c.bf16 %v2860_v56, %v2852_v0  ;;  %v2907_v2 = vld [vmem:[#allocation11 + $0x260] sm:$0xff]  ;;  %v2869_v0 = vld [vmem:[#allocation11 + $0x130] sm:$0xff] }
 0x9c0   :  { %5162 = vtanh.f32 %v2825_v20  ;;  %v4927_v20 = vpack.c.bf16 %v2843_v59, %v2835_v47  ;;  %v4943_v61 = vpack.c.bf16 %v2907_v2, %v2899_v15  ;;  %v4963_v47 = vpack.c.bf16 %v2861_v22, %v2853_v26  ;;  %v2877_v56 = vld [vmem:[#allocation11 + $0x170] sm:$0xff] }
 0x9c1   :  { %v2933_v2 = vld [vmem:[#allocation11 + $0x330] sm:$0xff] }
 0x9ca   :  { %v5163_v55 = vpop.eup %5162 }
 0x9cb   :  { %v2828_v17 = vmul.f32 %v5163_v55, %v2827_v44  ;;  %v2851_v44 = vld [vmem:[#allocation11 + $0xa0] sm:$0xff]  ;;  %v2876_v55 = vld [vmem:[#allocation11 + $0x168] sm:$0xff] }
 0x9cc   :  { %v4931_v41 = vpack.c.bf16 %v2859_v14, %v2851_v44  ;;  %v4933_v7 = vpack.c.bf16 %v2876_v55, %v2868_v43  ;;  %v4967_v44 = vpack.c.bf16 %v2877_v56, %v2869_v0  ;;  %v2885_v43 = vld [vmem:[#allocation11 + $0x1b0] sm:$0xff]  ;;  %v2979_v56 = vsub.s32 4, %v5798_v5 }
 0x9cd   :  { %v6147_v24 = vadd.f32 %v2829_v45, %v2828_v17  ;;  %v2867_v17 = vld [vmem:[#allocation11 + $0x120] sm:$0xff]  ;;  %v2893_v55 = vld [vmem:[#allocation11 + $0x1f0] sm:$0xff] }
 0x9ce   :  { %v2875_v45 = vld [vmem:[#allocation11 + $0x160] sm:$0xff] }
 0x9cf   :  { %3066 = vmatmul.mubr.f32.vlgmr.msra.gmra.mrb[80].mxu1 %v6147_v24  ;;  %v4935_v1 = vpack.c.bf16 %v2875_v45, %v2867_v17  ;;  %v4971_v17 = vpack.c.bf16 %v2893_v55, %v2885_v43  ;;  %v3314_v55 = vrot.slane %v3293_v42, %v2979_v56 }
 0x9d0   :  { %4896 = vmatpush1.bf16.msra.mxu1 %v4895_v10  ;;  %3136 = vmatprep.mubr.f32.mxu1 %v5364_v13  ;;  %v2884_v10 = vld [vmem:[#allocation11 + $0x1a8] sm:$0xff] }
 0x9d1   :  { %4898 = vmatprep.subr.bf16.mxu1 %v4897_v51  ;;  %v2892_v51 = vld [vmem:[#allocation11 + $0x1e8] sm:$0xff] }
 0x9d2   :  { %v4937_v27 = vpack.c.bf16 %v2892_v51, %v2884_v10  ;;  %v2901_v10 = vld [vmem:[#allocation11 + $0x230] sm:$0xff]  ;;  %v2918_v51 = vld [vmem:[#allocation11 + $0x2b8] sm:$0xff] }
 0x9d4   :  { %4900 = vmatpush1.bf16.msra.mxu1 %v4899_v40  ;;  %v2900_v40 = vld [vmem:[#allocation11 + $0x228] sm:$0xff] }
 0x9d5   :  { %4902 = vmatprep.subr.bf16.mxu1 %v4901_v36  ;;  %v2908_v36 = vld [vmem:[#allocation11 + $0x268] sm:$0xff] }
 0x9d6   :  { %v4941_v32 = vpack.c.bf16 %v2908_v36, %v2900_v40  ;;  %v2925_v40 = vld [vmem:[#allocation11 + $0x2f0] sm:$0xff]  ;;  %v2934_v36 = vld [vmem:[#allocation11 + $0x338] sm:$0xff] }
 0x9d8   :  { %4904 = vmatpush1.bf16.msra.mxu1 %v4903_v4  ;;  %v2916_v4 = vld [vmem:[#allocation11 + $0x2a8] sm:$0xff] }
 0x9d9   :  { %4906 = vmatprep.subr.bf16.mxu1 %v4905_v60  ;;  %v2924_v60 = vld [vmem:[#allocation11 + $0x2e8] sm:$0xff] }
 0x9da   :  { %v4945_v37 = vpack.c.bf16 %v2924_v60, %v2916_v4  ;;  %v2941_v4 = vld [vmem:[#allocation11 + $0x370] sm:$0xff]  ;;  %v2950_v60 = vld [vmem:[#allocation11 + $0x3b8] sm:$0xff] }
 0x9dc   :  { %4908 = vmatpush1.bf16.msra.mxu1 %v4907_v19  ;;  %v2932_v19 = vld [vmem:[#allocation11 + $0x328] sm:$0xff] }
 0x9dd   :  { %4910 = vmatprep.subr.bf16.mxu1 %v4909_v39  ;;  %v2940_v39 = vld [vmem:[#allocation11 + $0x368] sm:$0xff] }
 0x9de   :  { %v4949_v50 = vpack.c.bf16 %v2940_v39, %v2932_v19  ;;  %v2957_v19 = vld [vmem:[#allocation11 + $0x3f0] sm:$0xff] }
 0x9df   :  { %v4987_v39 = vpack.c.bf16 %v2957_v19, %v2949_v63 }
 0x9e0   :  { %4912 = vmatpush1.bf16.msra.mxu1 %v4911_v31  ;;  %v2948_v31 = vld [vmem:[#allocation11 + $0x3a8] sm:$0xff] }
 0x9e1   :  { %4914 = vmatprep.subr.bf16.mxu1 %v4913_v25  ;;  %v2956_v25 = vld [vmem:[#allocation11 + $0x3e8] sm:$0xff] }
 0x9e2   :  { %v4953_v8 = vpack.c.bf16 %v2956_v25, %v2948_v31 }
 0x9e4   :  { %4916 = vmatpush1.bf16.msra.mxu1 %v4915_v12  ;;  %v2838_v12 = vld [vmem:[#allocation11 + $0x38] sm:$0xff] }
 0x9e5   :  { %4918 = vmatprep.subr.bf16.mxu1 %v4917_v21  ;;  %v2846_v21 = vld [vmem:[#allocation11 + $0x78] sm:$0xff] }
 0x9e6   :  { %v4957_v23 = vpack.c.bf16 %v2846_v21, %v2838_v12 }
 0x9e8   :  { %4920 = vmatpush1.bf16.msra.mxu1 %v4919_v53  ;;  %v2854_v53 = vld [vmem:[#allocation11 + $0xb8] sm:$0xff] }
 0x9e9   :  { %4922 = vmatprep.subr.bf16.mxu1 %v4921_v18  ;;  %v2862_v18 = vld [vmem:[#allocation11 + $0xf8] sm:$0xff] }
 0x9ea   :  { %v4961_v38 = vpack.c.bf16 %v2862_v18, %v2854_v53 }
 0x9ec   :  { %4924 = vmatpush1.bf16.msra.mxu1 %v4923_v54  ;;  %v2870_v54 = vld [vmem:[#allocation11 + $0x138] sm:$0xff] }
 0x9ed   :  { %4926 = vmatprep.subr.bf16.mxu1 %v4925_v52  ;;  %v2878_v52 = vld [vmem:[#allocation11 + $0x178] sm:$0xff] }
 0x9ee   :  { %v4965_v59 = vpack.c.bf16 %v2878_v52, %v2870_v54 }
 0x9ef   :  { %3137 = vmatmul.mubr.f32.vlgmr.msra.gmra.mrb[82].mxu1 %v6147_v24 }
 0x9f0   :  { %4928 = vmatpush1.bf16.msra.mxu1 %v4927_v20  ;;  %3207 = vmatprep.mubr.f32.mxu1 %v5364_v13  ;;  %v2886_v20 = vld [vmem:[#allocation11 + $0x1b8] sm:$0xff] }
 0x9f1   :  { %4930 = vmatprep.subr.bf16.mxu1 %v4929_v34  ;;  %v2894_v34 = vld [vmem:[#allocation11 + $0x1f8] sm:$0xff] }
 0x9f2   :  { %v4969_v14 = vpack.c.bf16 %v2894_v34, %v2886_v20  ;;  %v2983_v20 = vsub.s32 5, %v5798_v5 }
 0x9f4   :  { %4932 = vmatpush1.bf16.msra.mxu1 %v4931_v41  ;;  %v2902_v41 = vld [vmem:[#allocation11 + $0x238] sm:$0xff] }
 0x9f5   :  { %4934 = vmatprep.subr.bf16.mxu1 %v4933_v7  ;;  %v2910_v7 = vld [vmem:[#allocation11 + $0x278] sm:$0xff] }
 0x9f6   :  { %v4973_v45 = vpack.c.bf16 %v2910_v7, %v2902_v41  ;;  %v3318_v7 = vrot.slane %v3293_v42, %v2983_v20 }
 0x9f8   :  { %4936 = vmatpush1.bf16.msra.mxu1 %v4935_v1  ;;  %v2926_v1 = vld [vmem:[#allocation11 + $0x2f8] sm:$0xff] }
 0x9f9   :  { %4938 = vmatprep.subr.bf16.mxu1 %v4937_v27  ;;  %v4977_v62 = vpack.c.bf16 %v2926_v1, %v2918_v51 }
 0x9fc   :  { %4940 = vmatpush1.bf16.msra.mxu1 %v4939_v6  ;;  %v2942_v6 = vld [vmem:[#allocation11 + $0x378] sm:$0xff] }
 0x9fd   :  { %4942 = vmatprep.subr.bf16.mxu1 %v4941_v32  ;;  %v4979_v32 = vpack.c.bf16 %v2925_v40, %v2917_v16  ;;  %v4981_v15 = vpack.c.bf16 %v2942_v6, %v2934_v36 }
 0xa00   :  { %4944 = vmatpush1.bf16.msra.mxu1 %v4943_v61  ;;  %v2958_v61 = vld [vmem:[#allocation11 + $0x3f8] sm:$0xff] }
 0xa01   :  { %4946 = vmatprep.subr.bf16.mxu1 %v4945_v37  ;;  %v4983_v37 = vpack.c.bf16 %v2941_v4, %v2933_v2  ;;  %v4985_v49 = vpack.c.bf16 %v2958_v61, %v2950_v60 }
 0xa04   :  { %4948 = vmatpush1.bf16.msra.mxu1 %v4947_v57  ;;  %v2959_v57 = vld [vmem:[#allocation13] sm:$0xff] }
 0xa05   :  { %4950 = vmatprep.subr.bf16.mxu1 %v4949_v50  ;;  %v2964_v50 = vrot.slane %v2959_v57, %v5887_v3  ;;  %v2968_v11 = vrot.slane %v2959_v57, %v5890_v48  ;;  %v2972_v28 = vrot.slane %v2959_v57, %v5809_v29  ;;  %v2980_v34 = vrot.slane %v2959_v57, %v2979_v56 }
 0xa08   :  { %4952 = vmatpush1.bf16.msra.mxu1 %v4951_v46  ;;  %v3298_v46 = vrot.slane %v3293_v42, %v5887_v3 }
 0xa09   :  { %4954 = vmatprep.subr.bf16.mxu1 %v4953_v8 }
 0xa0c   :  { %4956 = vmatpush1.bf16.msra.mxu1 %v4955_v35 }
 0xa0d   :  { %4958 = vmatprep.subr.bf16.mxu1 %v4957_v23 }
 0xa0f   :  { %3208 = vmatmul.mubr.f32.vlgmr.msra.gmra.mrb[84].mxu1 %v6147_v24 }
 0xa10   :  { %4960 = vmatpush1.bf16.msra.mxu1 %v4959_v30  ;;  %3278 = vmatprep.mubr.f32.mxu1 %v5364_v13  ;;  %v2909_v13 = vld [vmem:[#allocation11 + $0x270] sm:$0xff] }
 0xa11   :  { %4962 = vmatprep.subr.bf16.mxu1 %v4961_v38  ;;  %v4975_v27 = vpack.c.bf16 %v2909_v13, %v2901_v10  ;;  %v3306_v38 = vrot.slane %v3293_v42, %v5809_v29 }
 0xa14   :  { %4964 = vmatpush1.bf16.msra.mxu1 %v4963_v47 }
 0xa15   :  { %4966 = vmatprep.subr.bf16.mxu1 %v4965_v59 }
 0xa18   :  { %4968 = vmatpush1.bf16.msra.mxu1 %v4967_v44  ;;  %v2984_v44 = vrot.slane %v2959_v57, %v2983_v20 }
 0xa19   :  { %4970 = vmatprep.subr.bf16.mxu1 %v4969_v14 }
 0xa1c   :  { %4972 = vmatpush1.bf16.msra.mxu1 %v4971_v17 }
 0xa1d   :  { %4974 = vmatprep.subr.bf16.mxu1 %v4973_v45 }
 0xa20   :  { %4976 = vmatpush1.bf16.msra.mxu1 %v4975_v27  ;;  %v2987_v27 = vsub.s32 6, %v5798_v5 }
 0xa21   :  { %4978 = vmatprep.subr.bf16.mxu1 %v4977_v62  ;;  %v2991_v62 = vsub.s32 7, %v5798_v5 }
 0xa22   :  { %v2988_v16 = vrot.slane %v2959_v57, %v2987_v27 }
 0xa23   :  { %v2992_v40 = vrot.slane %v2959_v57, %v2991_v62  ;;  %v3326_v4 = vrot.slane %v3293_v42, %v2991_v62 }
 0xa24   :  { %4980 = vmatpush1.bf16.msra.mxu1 %v4979_v32  ;;  %v3322_v32 = vrot.slane %v3293_v42, %v2987_v27 }
 0xa25   :  { %4982 = vmatprep.subr.bf16.mxu1 %v4981_v15 }
 0xa28   :  { %4984 = vmatpush1.bf16.msra.mxu1 %v4983_v37 }
 0xa29   :  { %4986 = vmatprep.subr.bf16.mxu1 %v4985_v49 }
 0xa2c   :  { %4988 = vmatpush1.bf16.msra.mxu1 %v4987_v39  ;;  %v3388_v39 = vld [vmem:[#allocation2] ss:$0 sm:$0xff] }
 0xa2f   :  { %3279 = vmatmul.mubr.f32.vlgmr.msra.gmra.mrb[86].mxu1 %v6147_v24  ;;  %v2975_v24 = vsub.s32 3, %v5798_v5 }
 0xa31   :  { %v2976_v53 = vrot.slane %v2959_v57, %v2975_v24  ;;  %v3310_v22 = vrot.slane %v3293_v42, %v2975_v24 }
 0xaa2   :  { %v3067_v31 = vpop.f32.mrb[80].mxu1 }
 0xaa3   :  { %v3068_v25 = vadd.f32 %v3067_v31, %v2964_v50  ;;  %v3069_v8 = vpop.f32.mrb[81].mxu1 }
 0xaa4   :  { %v3070_v33 = vadd.f32 %v3069_v8, %v2968_v11 }
 0xaa5   :  { %v3285_v12 = vmax.f32 %v3068_v25, 0.0 }
 0xaa6   :  { %v3286_v21 = vmax.f32 %v3070_v33, 0.0 }
 0xaa7   :  { %v3335_v35 = vmul.f32 %v3298_v46, %v3285_v12 }
 0xaa8   :  { %v3336_v23 = vmul.f32 %v3302_v9, %v3286_v21 }
 0xaaa   :  { %v3343_v58 = vadd.f32 %v3336_v23, %v3335_v35 }
 0xac2   :  { %v3138_v18 = vpop.f32.mrb[82].mxu1 }
 0xac3   :  { %v3139_v30 = vadd.f32 %v3138_v18, %v2972_v28  ;;  %v3140_v26 = vpop.f32.mrb[83].mxu1 }
 0xac4   :  { %v3141_v3 = vadd.f32 %v3140_v26, %v2976_v53 }
 0xac5   :  { %v3287_v54 = vmax.f32 %v3139_v30, 0.0 }
 0xac6   :  { %v3288_v52 = vmax.f32 %v3141_v3, 0.0 }
 0xac7   :  { %v3337_v48 = vmul.f32 %v3306_v38, %v3287_v54 }
 0xac8   :  { %v3338_v47 = vmul.f32 %v3310_v22, %v3288_v52 }
 0xac9   :  { %v3344_v59 = vadd.f32 %v3343_v58, %v3337_v48 }
 0xacb   :  { %v3345_v0 = vadd.f32 %v3344_v59, %v3338_v47 }
 0xae2   :  { %v3209_v14 = vpop.f32.mrb[84].mxu1 }
 0xae3   :  { %v3210_v43 = vadd.f32 %v3209_v14, %v2980_v34  ;;  %v3211_v41 = vpop.f32.mrb[85].mxu1 }
 0xae4   :  { %v3212_v29 = vadd.f32 %v3211_v41, %v2984_v44 }
 0xae5   :  { %v3289_v17 = vmax.f32 %v3210_v43, 0.0 }
 0xae6   :  { %v3290_v45 = vmax.f32 %v3212_v29, 0.0 }
 0xae7   :  { %v3339_v10 = vmul.f32 %v3314_v55, %v3289_v17 }
 0xae8   :  { %v3340_v13 = vmul.f32 %v3318_v7, %v3290_v45 }
 0xae9   :  { %v3346_v51 = vadd.f32 %v3345_v0, %v3339_v10 }
 0xaeb   :  { %v3347_v1 = vadd.f32 %v3346_v51, %v3340_v13 }
 0xb02   :  { %v3280_v36 = vpop.f32.mrb[86].mxu1 }
 0xb03   :  { %v3281_v6 = vadd.f32 %v3280_v36, %v2988_v16  ;;  %v3282_v15 = vpop.f32.mrb[87].mxu1 }
 0xb04   :  { %v3283_v2 = vadd.f32 %v3282_v15, %v2992_v40 }
 0xb05   :  { %v3291_v60 = vmax.f32 %v3281_v6, 0.0 }
 0xb06   :  { %v3292_v61 = vmax.f32 %v3283_v2, 0.0 }
 0xb07   :  { %v3341_v37 = vmul.f32 %v3322_v32, %v3291_v60 }
 0xb08   :  { %v3342_v49 = vmul.f32 %v3326_v4, %v3292_v61 }
 0xb09   :  { %v3348_v63 = vadd.f32 %v3347_v1, %v3341_v37 }
 0xb0b   :  { %v3349_v19 = vadd.f32 %v3348_v63, %v3342_v49 }
 0xb0d   :  { %3350 = vadd.xlane.f32.xlu0 %v3349_v19 }
 0xb9a   :  { %v3351_v50 = vpop.xlane.xlu0 %3350 }
 0xb9b   :  { %v3359_v11 = vadd.f32 %v3388_v39, %v3351_v50 }
 0xb9d   :  { %3361 = vst.msk [vmem:[%s6179_s9] sm:$0xff] %vm3360_vm1, %v3359_v11 }
 0xb9e   :  { %3366 = vsyncpa [#allocation4], 1 }
 0xb9f   :  { %3367 = vsyncpa [#allocation6], 1 }
 0xba0   :  { %3368 = vsyncpa [#allocation9], 1 }
 0xba1   :  { %3369 = vsyncpa [#allocation12], 1 }
 0xba2   :  { %3370 = vsyncpa [#allocation15], 1 }

</bundles_post_ra>
